<compile_context>
chip_gen: v7x
topology: tpu7x:2x2x1
jax: 0.10.0
libtpu: 0.0.40
codegen_flags: <defaults>
</compile_context>

<pallas_src>
import math

import jax
import jax.numpy as jnp
from jax import lax
from jax.experimental import pallas as pl
from jax.experimental.pallas import tpu as pltpu

HIDDEN = 64
IN_DIM = 3
OUT_DIM = 2


def _round_up(n, m):
    return ((n + m - 1) // m) * m


def _gelu_exact(v):
    # PyTorch nn.GELU() default: exact erf-based GELU.
    return 0.5 * v * (1.0 + lax.erf(v * (1.0 / math.sqrt(2.0))))


def _gelu_tanh(v):
    # tanh approximation (same as nn.GELU(approximate='tanh')): the
    # transcendental runs on the EUP slot instead of a long VPU erf
    # polynomial; ~1e-3 numerics drift vs the exact form.
    c = math.sqrt(2.0 / math.pi)
    return 0.5 * v * (1.0 + jnp.tanh(c * (v + 0.044715 * v * v * v)))


def _dot(a, b):
    # Full-f32 MXU passes; the MXU is nowhere near the bottleneck (K,N <= 64).
    return jnp.dot(a, b, preferred_element_type=jnp.float32,
                   precision=lax.Precision.HIGHEST)


def _make_kernel(use_tanh_gelu):
    act = _gelu_tanh if use_tanh_gelu else _gelu_exact

    def kernel(inp_ref,
               w0_ref, b0_ref,
               w1a_ref, b1a_ref, w1b_ref, b1b_ref,
               w2a_ref, b2a_ref, w2b_ref, b2b_ref,
               w3_ref, b3_ref,
               out_ref):
        x = inp_ref[...]                                    # (3, TN)

        # Hoist all weight / bias loads once per grid step.
        w0, b0 = w0_ref[...], b0_ref[...]                   # (64, 3), (64, 1)
        w1a, b1a = w1a_ref[...], b1a_ref[...]
        w1b, b1b = w1b_ref[...], b1b_ref[...]
        w2a, b2a = w2a_ref[...], b2a_ref[...]
        w2b, b2b = w2b_ref[...], b2b_ref[...]
        w3, b3 = w3_ref[...], b3_ref[...]                   # (2, 64), (2, 1)

        # Input projection + GELU.  Activations are (64, TN): hidden units on
        # sublanes, batch rows on lanes (always 128-lane dense VPU work).
        h = act(_dot(w0, x) + b0)

        # SimplifiedResBlock 1: GELU(h + Linear(GELU(Linear(h))))
        z = act(_dot(w1a, h) + b1a)
        z = _dot(w1b, z) + b1b
        h = act(h + z)

        # SimplifiedResBlock 2
        z = act(_dot(w2a, h) + b2a)
        z = _dot(w2b, z) + b2b
        h = act(h + z)

        # Output head: (2, 64) @ (64, TN) -> (2, TN).  Lane-dense store, only
        # 8 bytes/row of HBM writeback (no 128-lane zero padding).
        out_ref[...] = (_dot(w3, h) + b3).astype(out_ref.dtype)

    return kernel


def adapted_pinn_forward(x, y, t, params, *, tn=4096, use_tanh_gelu=False):
    """Forward of AdaptedPINN.net_A: returns (A_r, A_i), each (N, 1)."""
    (w0, b0, w1a, b1a, w1b, b1b, w2a, b2a, w2b, b2b, w3, b3) = params

    N = x.shape[0]
    # Batch-on-lanes input: (3, N).
    inp = jnp.concatenate(
        [x.astype(jnp.float32).T,
         y.astype(jnp.float32).T,
         t.astype(jnp.float32).T], axis=0)

    # Batch tiling: large tiles amortize the ~0.35 us per-grid-step overhead.
    # When N > 128, force at least 2 grid steps so the "parallel" batch axis
    # shards across both TensorCores on v7x (no effect on 1-TC v5e/v6e).
    tn = max(128, (int(tn) // 128) * 128)
    if N > 128:
        tn_eff = min(tn, _round_up((N + 1) // 2, 128))
    else:
        tn_eff = 128
    N_pad = _round_up(N, tn_eff)
    if N_pad != N:
        inp = jnp.pad(inp, ((0, 0), (0, N_pad - N)))
    grid = (N_pad // tn_eff,)

    def resident(arr):
        # Constant index_map -> fetched once, never re-DMA'd across steps.
        return pl.BlockSpec(arr.shape, lambda i: (0, 0))

    grid_spec = pltpu.PrefetchScalarGridSpec(
        num_scalar_prefetch=0,
        grid=grid,
        in_specs=[
            pl.BlockSpec((IN_DIM, tn_eff), lambda i: (0, i)),   # input tile
            resident(w0), resident(b0),
            resident(w1a), resident(b1a),
            resident(w1b), resident(b1b),
            resident(w2a), resident(b2a),
            resident(w2b), resident(b2b),
            resident(w3), resident(b3),
        ],
        out_specs=pl.BlockSpec((OUT_DIM, tn_eff), lambda i: (0, i)),
    )

    out = pl.pallas_call(
        _make_kernel(use_tanh_gelu),
        out_shape=jax.ShapeDtypeStruct((OUT_DIM, N_pad), jnp.float32),
        grid_spec=grid_spec,
        compiler_params=pltpu.CompilerParams(
            dimension_semantics=("parallel",)),
    )(inp, w0, b0, w1a, b1a, w1b, b1b, w2a, b2a, w2b, b2b, w3, b3)

    A_r = out[0, :N].reshape(N, 1)
    A_i = out[1, :N].reshape(N, 1)
    return A_r, A_i


def init_params(key):
    """Xavier-uniform weights, zero biases (matches CompactDNN._init_weights).

    Weights use PyTorch's (out_features, in_features) layout so the kernel
    computes W @ x directly in the transposed (batch-on-lanes) dataflow.
    Biases are stored as (out, 1) columns so they broadcast along lanes.
    """
    def xavier(k, fan_out, fan_in):
        bound = math.sqrt(6.0 / (fan_in + fan_out))
        return jax.random.uniform(k, (fan_out, fan_in), jnp.float32,
                                  minval=-bound, maxval=bound)

    keys = jax.random.split(key, 6)
    w0 = xavier(keys[0], HIDDEN, IN_DIM)
    b0 = jnp.zeros((HIDDEN, 1), jnp.float32)
    w1a = xavier(keys[1], HIDDEN, HIDDEN)
    b1a = jnp.zeros((HIDDEN, 1), jnp.float32)
    w1b = xavier(keys[2], HIDDEN, HIDDEN)
    b1b = jnp.zeros((HIDDEN, 1), jnp.float32)
    w2a = xavier(keys[3], HIDDEN, HIDDEN)
    b2a = jnp.zeros((HIDDEN, 1), jnp.float32)
    w2b = xavier(keys[4], HIDDEN, HIDDEN)
    b2b = jnp.zeros((HIDDEN, 1), jnp.float32)
    w3 = xavier(keys[5], OUT_DIM, HIDDEN)
    b3 = jnp.zeros((OUT_DIM, 1), jnp.float32)
    return (w0, b0, w1a, b1a, w1b, b1b, w2a, b2a, w2b, b2b, w3, b3)


def _reference_forward(x, y, t, params, *, use_tanh_gelu=False):
    """Pure-JAX reference of the same forward pass (for a sanity check)."""
    act = _gelu_tanh if use_tanh_gelu else _gelu_exact
    (w0, b0, w1a, b1a, w1b, b1b, w2a, b2a, w2b, b2b, w3, b3) = params
    inp = jnp.concatenate([x, y, t], axis=1).astype(jnp.float32)  # (N, 3)

    def lin(v, w, b):
        return _dot(v, w.T) + b.T

    h = act(lin(inp, w0, b0))
    z = lin(act(lin(h, w1a, b1a)), w1b, b1b)
    h = act(h + z)
    z = lin(act(lin(h, w2a, b2a)), w2b, b2b)
    h = act(h + z)
    out = lin(h, w3, b3)
    return out[:, 0:1], out[:, 1:2]


# TODO(synk): pde_residual / loss_* use torch.autograd and the mu_small
# collocation lookup; only the forward pass (net_A) is implemented here.

if __name__ == "__main__":
    key = jax.random.PRNGKey(0)
    kx, ky, kt, kp = jax.random.split(key, 4)

    # Small, non-multiple-of-128 batch of collocation points: exercises the
    # padding path and the forced >=2-step grid (two 256-row tiles here).
    N = 300
    # Physical domain scales from the module:
    # x in [0, Nx*dx), y in [0, Ny*dy), t in [0, Nt*dt)
    x = jax.random.uniform(kx, (N, 1), jnp.float32, minval=0.0, maxval=64 * 0.3)
    y = jax.random.uniform(ky, (N, 1), jnp.float32, minval=0.0, maxval=64 * 0.3)
    t = jax.random.uniform(kt, (N, 1), jnp.float32, minval=0.0, maxval=750 * 0.05)

    params = init_params(kp)

    # Exact erf-GELU path (matches PyTorch nn.GELU() numerics).
    A_r, A_i = adapted_pinn_forward(x, y, t, params)
    A_r = jax.block_until_ready(A_r)
    A_i = jax.block_until_ready(A_i)
    A_r_ref, A_i_ref = _reference_forward(x, y, t, params)
    assert A_r.shape == (N, 1) and A_i.shape == (N, 1)
    assert jnp.allclose(A_r, A_r_ref, atol=1e-5, rtol=1e-5)
    assert jnp.allclose(A_i, A_i_ref, atol=1e-5, rtol=1e-5)

    # Fast path: tanh-GELU routes the transcendental to the EUP slot.
    A_r2, A_i2 = adapted_pinn_forward(x, y, t, params, use_tanh_gelu=True)
    A_r2 = jax.block_until_ready(A_r2)
    A_i2 = jax.block_until_ready(A_i2)
    A_r2_ref, A_i2_ref = _reference_forward(x, y, t, params,
                                            use_tanh_gelu=True)
    assert jnp.allclose(A_r2, A_r2_ref, atol=1e-5, rtol=1e-5)
    assert jnp.allclose(A_i2, A_i2_ref, atol=1e-5, rtol=1e-5)

    print("KERNEL_OK")
</pallas_src>

<mosaic_0001>
module attributes {stable_mosaic.version = 11 : i64} {
  func.func @kernel(%arg0: i32, %arg1: memref<3x256xf32, #tpu.memory_space<vmem>>, %arg2: memref<64x3xf32, #tpu.memory_space<vmem>>, %arg3: memref<64x1xf32, #tpu.memory_space<vmem>>, %arg4: memref<64x64xf32, #tpu.memory_space<vmem>>, %arg5: memref<64x1xf32, #tpu.memory_space<vmem>>, %arg6: memref<64x64xf32, #tpu.memory_space<vmem>>, %arg7: memref<64x1xf32, #tpu.memory_space<vmem>>, %arg8: memref<64x64xf32, #tpu.memory_space<vmem>>, %arg9: memref<64x1xf32, #tpu.memory_space<vmem>>, %arg10: memref<64x64xf32, #tpu.memory_space<vmem>>, %arg11: memref<64x1xf32, #tpu.memory_space<vmem>>, %arg12: memref<2x64xf32, #tpu.memory_space<vmem>>, %arg13: memref<2x1xf32, #tpu.memory_space<vmem>>, %arg14: memref<2x256xf32, #tpu.memory_space<vmem>>) attributes {dimension_semantics = [#tpu.dimension_semantics<parallel>], iteration_bounds = array<i64: 2>, scalar_prefetch = 0 : i64, scratch_operands = 0 : i64, tpu.core_type = #tpu.core_type<tc>, window_params = [{transform_indices = @transform_0, window_bounds = array<i64: 3, 256>}, {pipeline_mode = #tpu.pipeline_mode<synchronous>, transform_indices = @transform_1, window_bounds = array<i64: 64, 3>}, {pipeline_mode = #tpu.pipeline_mode<synchronous>, transform_indices = @transform_2, window_bounds = array<i64: 64, 1>}, {pipeline_mode = #tpu.pipeline_mode<synchronous>, transform_indices = @transform_3, window_bounds = array<i64: 64, 64>}, {pipeline_mode = #tpu.pipeline_mode<synchronous>, transform_indices = @transform_4, window_bounds = array<i64: 64, 1>}, {pipeline_mode = #tpu.pipeline_mode<synchronous>, transform_indices = @transform_5, window_bounds = array<i64: 64, 64>}, {pipeline_mode = #tpu.pipeline_mode<synchronous>, transform_indices = @transform_6, window_bounds = array<i64: 64, 1>}, {pipeline_mode = #tpu.pipeline_mode<synchronous>, transform_indices = @transform_7, window_bounds = array<i64: 64, 64>}, {pipeline_mode = #tpu.pipeline_mode<synchronous>, transform_indices = @transform_8, window_bounds = array<i64: 64, 1>}, {pipeline_mode = #tpu.pipeline_mode<synchronous>, transform_indices = @transform_9, window_bounds = array<i64: 64, 64>}, {pipeline_mode = #tpu.pipeline_mode<synchronous>, transform_indices = @transform_10, window_bounds = array<i64: 64, 1>}, {pipeline_mode = #tpu.pipeline_mode<synchronous>, transform_indices = @transform_11, window_bounds = array<i64: 2, 64>}, {pipeline_mode = #tpu.pipeline_mode<synchronous>, transform_indices = @transform_12, window_bounds = array<i64: 2, 1>}, {transform_indices = @transform_13, window_bounds = array<i64: 2, 256>}]} {
    %c0 = arith.constant 0 : index
    %c0_0 = arith.constant 0 : index
    %0 = vector.load %arg1[%c0, %c0_0] : memref<3x256xf32, #tpu.memory_space<vmem>>, vector<3x256xf32>
    %c0_1 = arith.constant 0 : index
    %c0_2 = arith.constant 0 : index
    %1 = vector.load %arg2[%c0_1, %c0_2] : memref<64x3xf32, #tpu.memory_space<vmem>>, vector<64x3xf32>
    %c0_3 = arith.constant 0 : index
    %c0_4 = arith.constant 0 : index
    %2 = vector.load %arg3[%c0_3, %c0_4] : memref<64x1xf32, #tpu.memory_space<vmem>>, vector<64x1xf32>
    %c0_5 = arith.constant 0 : index
    %c0_6 = arith.constant 0 : index
    %3 = vector.load %arg4[%c0_5, %c0_6] : memref<64x64xf32, #tpu.memory_space<vmem>>, vector<64x64xf32>
    %c0_7 = arith.constant 0 : index
    %c0_8 = arith.constant 0 : index
    %4 = vector.load %arg5[%c0_7, %c0_8] : memref<64x1xf32, #tpu.memory_space<vmem>>, vector<64x1xf32>
    %c0_9 = arith.constant 0 : index
    %c0_10 = arith.constant 0 : index
    %5 = vector.load %arg6[%c0_9, %c0_10] : memref<64x64xf32, #tpu.memory_space<vmem>>, vector<64x64xf32>
    %c0_11 = arith.constant 0 : index
    %c0_12 = arith.constant 0 : index
    %6 = vector.load %arg7[%c0_11, %c0_12] : memref<64x1xf32, #tpu.memory_space<vmem>>, vector<64x1xf32>
    %c0_13 = arith.constant 0 : index
    %c0_14 = arith.constant 0 : index
    %7 = vector.load %arg8[%c0_13, %c0_14] : memref<64x64xf32, #tpu.memory_space<vmem>>, vector<64x64xf32>
    %c0_15 = arith.constant 0 : index
    %c0_16 = arith.constant 0 : index
    %8 = vector.load %arg9[%c0_15, %c0_16] : memref<64x1xf32, #tpu.memory_space<vmem>>, vector<64x1xf32>
    %c0_17 = arith.constant 0 : index
    %c0_18 = arith.constant 0 : index
    %9 = vector.load %arg10[%c0_17, %c0_18] : memref<64x64xf32, #tpu.memory_space<vmem>>, vector<64x64xf32>
    %c0_19 = arith.constant 0 : index
    %c0_20 = arith.constant 0 : index
    %10 = vector.load %arg11[%c0_19, %c0_20] : memref<64x1xf32, #tpu.memory_space<vmem>>, vector<64x1xf32>
    %c0_21 = arith.constant 0 : index
    %c0_22 = arith.constant 0 : index
    %11 = vector.load %arg12[%c0_21, %c0_22] : memref<2x64xf32, #tpu.memory_space<vmem>>, vector<2x64xf32>
    %c0_23 = arith.constant 0 : index
    %c0_24 = arith.constant 0 : index
    %12 = vector.load %arg13[%c0_23, %c0_24] : memref<2x1xf32, #tpu.memory_space<vmem>>, vector<2x1xf32>
    %cst = arith.constant dense<0.000000e+00> : vector<64x256xf32>
    %13 = tpu.matmul %1, %0, %cst {dimension_numbers = #tpu.dot_dimension_numbers<[1], [0], [0], [1], [0, 0, 1, 1], [], []>, precision = #tpu.contract_precision<fp32>} : vector<64x3xf32>, vector<3x256xf32>, vector<64x256xf32> -> vector<64x256xf32>
    %14 = vector.broadcast %2 : vector<64x1xf32> to vector<64x256xf32>
    %15 = arith.addf %13, %14 : vector<64x256xf32>
    %cst_25 = arith.constant 5.000000e-01 : f32
    %16 = vector.broadcast %cst_25 : f32 to vector<64x256xf32>
    %17 = arith.mulf %16, %15 : vector<64x256xf32>
    %cst_26 = arith.constant 0.707106769 : f32
    %18 = vector.broadcast %cst_26 : f32 to vector<64x256xf32>
    %19 = arith.mulf %15, %18 : vector<64x256xf32>
    %20 = math.erf %19 : vector<64x256xf32>
    %cst_27 = arith.constant 1.000000e+00 : f32
    %21 = vector.broadcast %cst_27 : f32 to vector<64x256xf32>
    %22 = arith.addf %21, %20 : vector<64x256xf32>
    %23 = arith.mulf %17, %22 : vector<64x256xf32>
    %cst_28 = arith.constant dense<0.000000e+00> : vector<64x256xf32>
    %24 = tpu.matmul %3, %23, %cst_28 {dimension_numbers = #tpu.dot_dimension_numbers<[1], [0], [0], [1], [0, 0, 1, 1], [], []>, precision = #tpu.contract_precision<fp32>} : vector<64x64xf32>, vector<64x256xf32>, vector<64x256xf32> -> vector<64x256xf32>
    %25 = vector.broadcast %4 : vector<64x1xf32> to vector<64x256xf32>
    %26 = arith.addf %24, %25 : vector<64x256xf32>
    %cst_29 = arith.constant 5.000000e-01 : f32
    %27 = vector.broadcast %cst_29 : f32 to vector<64x256xf32>
    %28 = arith.mulf %27, %26 : vector<64x256xf32>
    %cst_30 = arith.constant 0.707106769 : f32
    %29 = vector.broadcast %cst_30 : f32 to vector<64x256xf32>
    %30 = arith.mulf %26, %29 : vector<64x256xf32>
    %31 = math.erf %30 : vector<64x256xf32>
    %cst_31 = arith.constant 1.000000e+00 : f32
    %32 = vector.broadcast %cst_31 : f32 to vector<64x256xf32>
    %33 = arith.addf %32, %31 : vector<64x256xf32>
    %34 = arith.mulf %28, %33 : vector<64x256xf32>
    %cst_32 = arith.constant dense<0.000000e+00> : vector<64x256xf32>
    %35 = tpu.matmul %5, %34, %cst_32 {dimension_numbers = #tpu.dot_dimension_numbers<[1], [0], [0], [1], [0, 0, 1, 1], [], []>, precision = #tpu.contract_precision<fp32>} : vector<64x64xf32>, vector<64x256xf32>, vector<64x256xf32> -> vector<64x256xf32>
    %36 = vector.broadcast %6 : vector<64x1xf32> to vector<64x256xf32>
    %37 = arith.addf %35, %36 : vector<64x256xf32>
    %38 = arith.addf %23, %37 : vector<64x256xf32>
    %cst_33 = arith.constant 5.000000e-01 : f32
    %39 = vector.broadcast %cst_33 : f32 to vector<64x256xf32>
    %40 = arith.mulf %39, %38 : vector<64x256xf32>
    %cst_34 = arith.constant 0.707106769 : f32
    %41 = vector.broadcast %cst_34 : f32 to vector<64x256xf32>
    %42 = arith.mulf %38, %41 : vector<64x256xf32>
    %43 = math.erf %42 : vector<64x256xf32>
    %cst_35 = arith.constant 1.000000e+00 : f32
    %44 = vector.broadcast %cst_35 : f32 to vector<64x256xf32>
    %45 = arith.addf %44, %43 : vector<64x256xf32>
    %46 = arith.mulf %40, %45 : vector<64x256xf32>
    %cst_36 = arith.constant dense<0.000000e+00> : vector<64x256xf32>
    %47 = tpu.matmul %7, %46, %cst_36 {dimension_numbers = #tpu.dot_dimension_numbers<[1], [0], [0], [1], [0, 0, 1, 1], [], []>, precision = #tpu.contract_precision<fp32>} : vector<64x64xf32>, vector<64x256xf32>, vector<64x256xf32> -> vector<64x256xf32>
    %48 = vector.broadcast %8 : vector<64x1xf32> to vector<64x256xf32>
    %49 = arith.addf %47, %48 : vector<64x256xf32>
    %cst_37 = arith.constant 5.000000e-01 : f32
    %50 = vector.broadcast %cst_37 : f32 to vector<64x256xf32>
    %51 = arith.mulf %50, %49 : vector<64x256xf32>
    %cst_38 = arith.constant 0.707106769 : f32
    %52 = vector.broadcast %cst_38 : f32 to vector<64x256xf32>
    %53 = arith.mulf %49, %52 : vector<64x256xf32>
    %54 = math.erf %53 : vector<64x256xf32>
    %cst_39 = arith.constant 1.000000e+00 : f32
    %55 = vector.broadcast %cst_39 : f32 to vector<64x256xf32>
    %56 = arith.addf %55, %54 : vector<64x256xf32>
    %57 = arith.mulf %51, %56 : vector<64x256xf32>
    %cst_40 = arith.constant dense<0.000000e+00> : vector<64x256xf32>
    %58 = tpu.matmul %9, %57, %cst_40 {dimension_numbers = #tpu.dot_dimension_numbers<[1], [0], [0], [1], [0, 0, 1, 1], [], []>, precision = #tpu.contract_precision<fp32>} : vector<64x64xf32>, vector<64x256xf32>, vector<64x256xf32> -> vector<64x256xf32>
    %59 = vector.broadcast %10 : vector<64x1xf32> to vector<64x256xf32>
    %60 = arith.addf %58, %59 : vector<64x256xf32>
    %61 = arith.addf %46, %60 : vector<64x256xf32>
    %cst_41 = arith.constant 5.000000e-01 : f32
    %62 = vector.broadcast %cst_41 : f32 to vector<64x256xf32>
    %63 = arith.mulf %62, %61 : vector<64x256xf32>
    %cst_42 = arith.constant 0.707106769 : f32
    %64 = vector.broadcast %cst_42 : f32 to vector<64x256xf32>
    %65 = arith.mulf %61, %64 : vector<64x256xf32>
    %66 = math.erf %65 : vector<64x256xf32>
    %cst_43 = arith.constant 1.000000e+00 : f32
    %67 = vector.broadcast %cst_43 : f32 to vector<64x256xf32>
    %68 = arith.addf %67, %66 : vector<64x256xf32>
    %69 = arith.mulf %63, %68 : vector<64x256xf32>
    %cst_44 = arith.constant dense<0.000000e+00> : vector<2x256xf32>
    %70 = tpu.matmul %11, %69, %cst_44 {dimension_numbers = #tpu.dot_dimension_numbers<[1], [0], [0], [1], [0, 0, 1, 1], [], []>, precision = #tpu.contract_precision<fp32>} : vector<2x64xf32>, vector<64x256xf32>, vector<2x256xf32> -> vector<2x256xf32>
    %71 = vector.broadcast %12 : vector<2x1xf32> to vector<2x256xf32>
    %72 = arith.addf %70, %71 : vector<2x256xf32>
    %c0_45 = arith.constant 0 : index
    %c0_46 = arith.constant 0 : index
    %73 = vector.load %arg14[%c0_45, %c0_46] : memref<2x256xf32, #tpu.memory_space<vmem>>, vector<2x256xf32>
    tpu.vector_store %arg14[%c0_45, %c0_46], %72 {strides = array<i32>} : memref<2x256xf32, #tpu.memory_space<vmem>>, vector<2x256xf32>,
    return
  }
  func.func @transform_0(%arg0: i32) -> (i32, i32) {
    %c0_i32 = arith.constant 0 : i32
    %c0_i32_0 = arith.constant 0 : i32
    return %c0_i32, %arg0 : i32, i32
  }
  func.func @transform_1(%arg0: i32) -> (i32, i32) {
    %c0_i32 = arith.constant 0 : i32
    %c0_i32_0 = arith.constant 0 : i32
    %c0_i32_1 = arith.constant 0 : i32
    return %c0_i32, %c0_i32_0 : i32, i32
  }
  func.func @transform_2(%arg0: i32) -> (i32, i32) {
    %c0_i32 = arith.constant 0 : i32
    %c0_i32_0 = arith.constant 0 : i32
    %c0_i32_1 = arith.constant 0 : i32
    return %c0_i32, %c0_i32_0 : i32, i32
  }
  func.func @transform_3(%arg0: i32) -> (i32, i32) {
    %c0_i32 = arith.constant 0 : i32
    %c0_i32_0 = arith.constant 0 : i32
    %c0_i32_1 = arith.constant 0 : i32
    return %c0_i32, %c0_i32_0 : i32, i32
  }
  func.func @transform_4(%arg0: i32) -> (i32, i32) {
    %c0_i32 = arith.constant 0 : i32
    %c0_i32_0 = arith.constant 0 : i32
    %c0_i32_1 = arith.constant 0 : i32
    return %c0_i32, %c0_i32_0 : i32, i32
  }
  func.func @transform_5(%arg0: i32) -> (i32, i32) {
    %c0_i32 = arith.constant 0 : i32
    %c0_i32_0 = arith.constant 0 : i32
    %c0_i32_1 = arith.constant 0 : i32
    return %c0_i32, %c0_i32_0 : i32, i32
  }
  func.func @transform_6(%arg0: i32) -> (i32, i32) {
    %c0_i32 = arith.constant 0 : i32
    %c0_i32_0 = arith.constant 0 : i32
    %c0_i32_1 = arith.constant 0 : i32
    return %c0_i32, %c0_i32_0 : i32, i32
  }
  func.func @transform_7(%arg0: i32) -> (i32, i32) {
    %c0_i32 = arith.constant 0 : i32
    %c0_i32_0 = arith.constant 0 : i32
    %c0_i32_1 = arith.constant 0 : i32
    return %c0_i32, %c0_i32_0 : i32, i32
  }
  func.func @transform_8(%arg0: i32) -> (i32, i32) {
    %c0_i32 = arith.constant 0 : i32
    %c0_i32_0 = arith.constant 0 : i32
    %c0_i32_1 = arith.constant 0 : i32
    return %c0_i32, %c0_i32_0 : i32, i32
  }
  func.func @transform_9(%arg0: i32) -> (i32, i32) {
    %c0_i32 = arith.constant 0 : i32
    %c0_i32_0 = arith.constant 0 : i32
    %c0_i32_1 = arith.constant 0 : i32
    return %c0_i32, %c0_i32_0 : i32, i32
  }
  func.func @transform_10(%arg0: i32) -> (i32, i32) {
    %c0_i32 = arith.constant 0 : i32
    %c0_i32_0 = arith.constant 0 : i32
    %c0_i32_1 = arith.constant 0 : i32
    return %c0_i32, %c0_i32_0 : i32, i32
  }
  func.func @transform_11(%arg0: i32) -> (i32, i32) {
    %c0_i32 = arith.constant 0 : i32
    %c0_i32_0 = arith.constant 0 : i32
    %c0_i32_1 = arith.constant 0 : i32
    return %c0_i32, %c0_i32_0 : i32, i32
  }
  func.func @transform_12(%arg0: i32) -> (i32, i32) {
    %c0_i32 = arith.constant 0 : i32
    %c0_i32_0 = arith.constant 0 : i32
    %c0_i32_1 = arith.constant 0 : i32
    return %c0_i32, %c0_i32_0 : i32, i32
  }
  func.func @transform_13(%arg0: i32) -> (i32, i32) {
    %c0_i32 = arith.constant 0 : i32
    %c0_i32_0 = arith.constant 0 : i32
    return %c0_i32, %arg0 : i32, i32
  }
}

</mosaic_0001>

<bundles_post_ra>
// kernel: tpu_custom_call.1
= control target key start
LH: loop header
LB: loop body
LE: loop exit
PB: predicated region body
PF: predicated region fallthrough
CT: control target
= control target key end

     0   :  { %s10777_s0 = inlined_call_operand.vmem [shape: f32[3,512], index: 0, kind: input, shape index: {}]   ;;  %s10778_s1 = inlined_call_operand.vmem [shape: f32[64,3], index: 1, kind: input, shape index: {}]   ;;  %s10779_s2 = inlined_call_operand.vmem [shape: f32[64,1], index: 2, kind: input, shape index: {}]   ;;  %s10780_s3 = inlined_call_operand.vmem [shape: f32[64,64], index: 3, kind: input, shape index: {}]   ;;  %s10781_s4 = inlined_call_operand.vmem [shape: f32[64,1], index: 4, kind: input, shape index: {}]   ;;  %s10782_s5 = inlined_call_operand.vmem [shape: f32[64,64], index: 5, kind: input, shape index: {}]   ;;  %s10783_s6 = inlined_call_operand.vmem [shape: f32[64,1], index: 6, kind: input, shape index: {}]   ;;  %s10784_s7 = inlined_call_operand.vmem [shape: f32[64,64], index: 7, kind: input, shape index: {}]   ;;  %s10785_s8 = inlined_call_operand.vmem [shape: f32[64,1], index: 8, kind: input, shape index: {}]   ;;  %s10786_s9 = inlined_call_operand.vmem [shape: f32[64,64], index: 9, kind: input, shape index: {}]   ;;  %s10787_s10 = inlined_call_operand.vmem [shape: f32[64,1], index: 10, kind: input, shape index: {}]   ;;  %s10788_s11 = inlined_call_operand.vmem [shape: f32[2,64], index: 11, kind: input, shape index: {}]   ;;  %s10789_s12 = inlined_call_operand.vmem [shape: f32[2,1], index: 12, kind: input, shape index: {}]   ;;  %s10790_s13 = inlined_call_operand.hbm [shape: f32[2,512], index: 13, kind: output, shape index: {}]  }
   0x1   :  { %10912 = sst [smem:[#allocation30_spill]] %s10777_s0 }
   0x2   :  { %10913 = sst [smem:[#allocation31_spill]] %s10778_s1 }
   0x3   :  { %10914 = sst [smem:[#allocation32_spill]] %s10779_s2 }
   0x4   :  { %18 = vsyncpa [#allocation3], 0 }
   0x5   :  { %20 = vsyncpa [#allocation3 + $0x1], 0  ;;  %s8124_s25 = smov 0   ;;  %s8126_s26 = smov 0  }
   0x6   :  { %s8128_s27 = smov 0   ;;  %s8130_s28 = smov 0  }
   0x7 LB: > { %s8145_s29 = sadd.s32 4294967295, %s8049_s28   ;;  %s6795_s30 = sadd.s32 4294967294, %s8049_s28   ;;  %s8049_s28 = sphi %s8130_s28, %s11119_s28   ;;  %s8045_s27 = sphi %s8128_s27, %s11118_s27   ;;  %s8041_s26 = sphi %s8126_s26, %s11117_s26   ;;  %s8037_s25 = sphi %s8124_s25, %s11116_s25  }
   0x8   : > { %s8149_s14 = sadd.s32 1, %s8049_s28   ;;  %s311_s15 = sadd.s32 1, %s8045_s27 }
   0x9   : > { %s308_s16 = ssub.s32 %s8049_s28, %s8149_s14  ;;  %p321_p0 = scmp.ne.s32.totalorder %s8045_s27, %s8041_s26 }
   0xa   : > { %p309_p1 = scmp.eq.s32.totalorder %s308_s16, 0  ;;  %p322_p2 = scmp.eq.s32.totalorder %s8145_s29, 1 }
   0xb   : > { %p327_p3 = scmp.ne.s32.totalorder %s8041_s26, %s8037_s25  ;;  %p328_p4 = scmp.eq.s32.totalorder %s6795_s30, 1 }
   0xc   : > { %s8160_s17 = scalar_select %p309_p1, %s8045_s27, %s311_s15  }
   0xd   : > { %p8162_p5 = por %p322_p2, %p321_p0  ;;  %p8166_p6 = por %p328_p4, %p327_p3 }
   0xe   : > { %p6798_p7 = scmp.ge.s32.totalorder %s8049_s28, 1  ;;  %p391_p8 = scmp.lt.s32.totalorder %s8049_s28, 3 }
  0x10   : > { %p392_p9 = pnand %p6798_p7, %p391_p8 }
  0x12   : > { %395 = sbr.rel (%p392_p9) target bundleno = 2467 (0x9a3), region = 72 }
  0x19   : > { %s6800_s20 = sshll.u32 %s8145_s29, 1  ;;  %s10917_s1 = sld [smem:[#allocation31_spill]]  ;;  %vm567_vm0 = vcmask 23552   ;;  %v10794_v2 = vmov 0.0   ;;  %vm592_vm1 = vcmask 1042432   ;;  %v8052_v38 = vmov 0  }
  0x1a   : > { %p436_p10 = scmp.lt.s32.totalorder %s6800_s20, 3  ;;  %826 = vmatprep.mubr.f32.mxu0 %v10794_v2  ;;  %663 = vmatprep.mubr.f32.mxu1 %v10794_v2  ;;  %s10918_s0 = sld [smem:[#allocation30_spill]]  ;;  %vm1525_vm2 = vcmask 523264  }
  0x1b   : > { %s10919_s2 = sld [smem:[#allocation32_spill]]  ;;  %7824 = vset.pattern.permute.xlu0 %v8052_v38  ;;  %7825 = vset.pattern.permute.xlu1 %v8052_v38  ;;  %v483_v38 = vld [vmem:[%s10783_s6] sm:$0xff]  ;;  %s432_s22 = sand.u32 1, %s8041_s26  }
  0x1c   : > { %s11121_s20 = smov (!%p436_p10, %s6800_s20), 3  ;;  %s6808_s24 = sshll.u32 %s8145_s29, 6 }
  0x1d   : > { %s6801_s16 = sshll.u32 %s11121_s20, 2  ;;  %s10735_s21 = scalar_lea.hbm %s10790_s13, %s6808_s24 }
  0x1e   : > { %s8053_s29 = smov [#allocation2]  }
  0x1f   : > { %v443_v0 = vld [vmem:[%s10917_s1] sm:$0xff]  ;;  %v444_v1 = vld [vmem:[%s10917_s1 + $0x8] sm:$0xff]  ;;  %v445_v6 = vld [vmem:[%s10917_s1 + $0x10] sm:$0xff] }
  0x20   : > { %v569_v3 = vsel %vm567_vm0, %v443_v0, 0  ;;  %v572_v4 = vsel %vm567_vm0, %v444_v1, 0  ;;  %s439_s23 = scalar_lea.vmem %s10918_s0, %s6801_s16  ;;  %v575_v10 = vsel %vm567_vm0, %v445_v6, 0  ;;  %v446_v12 = vld [vmem:[%s10917_s1 + $0x18] sm:$0xff]  ;;  %v447_v24 = vld [vmem:[%s10917_s1 + $0x20] sm:$0xff]  ;;  %v448_v35 = vld [vmem:[%s10917_s1 + $0x28] sm:$0xff] }
  0x21   : > { %v8183_v5 = vand.u32 4294901760, %v569_v3  ;;  %v8191_v8 = vand.u32 4294901760, %v572_v4  ;;  %v442_v9 = vld [vmem:[%s439_s23] sm:$0x77]  ;;  %v8210_v20 = vand.u32 4294901760, %v575_v10  ;;  %v578_v21 = vsel %vm567_vm0, %v446_v12, 0 }
  0x22   : > { %v566_v14 = vcombine.high %v442_v9, %v442_v9  ;;  %v593_v15 = vsel %vm592_vm1, %v442_v9, 0  ;;  %v8231_v30 = vand.u32 4294901760, %v578_v21  ;;  %v581_v31 = vsel %vm567_vm0, %v447_v24, 0  ;;  %v451_v37 = vld [vmem:[%s10919_s2] sm:$0xff]  ;;  %v449_v46 = vld [vmem:[%s10917_s1 + $0x30] sm:$0xff]  ;;  %v450_v53 = vld [vmem:[%s10917_s1 + $0x38] sm:$0xff] }
  0x23   : > { %v8189_v7 = vsub.f32 %v569_v3, %v8183_v5  ;;  %v8198_v11 = vsub.f32 %v572_v4, %v8191_v8  ;;  %v8204_v16 = vand.u32 4294901760, %v593_v15  ;;  %v8225_v27 = vsub.f32 %v575_v10, %v8210_v20  ;;  %527 = vperm.xlu0 %7824, %v451_v37   ;;  %v452_v55 = vld [vmem:[%s10919_s2 + $0x8] sm:$0xff]  ;;  %v453_v56 = vld [vmem:[%s10919_s2 + $0x10] sm:$0xff]  ;;  %v455_v63 = vld [vmem:[%s10919_s2 + $0x20] sm:$0xff]  ;;  %s6799_s23 = sshll.u32 %s432_s22, 2  ;;  %s6722_s0 = scalar_lea.sflag [#allocation3], %s432_s22 }
  0x24   : > { %v595_v19 = vsel %vm592_vm1, %v566_v14, 0  ;;  %v8252_v40 = vsub.f32 %v578_v21, %v8231_v30  ;;  %v8254_v41 = vand.u32 4294901760, %v581_v31  ;;  %v584_v44 = vsel %vm567_vm0, %v448_v35, 0  ;;  %537 = vperm.xlu1 %7825, %v453_v56   ;;  %v454_v0 = vld [vmem:[%s10919_s2 + $0x18] sm:$0xff]  ;;  %v457_v10 = vld [vmem:[%s10919_s2 + $0x30] sm:$0xff]  ;;  %v456_v12 = vld [vmem:[%s10919_s2 + $0x28] sm:$0xff] }
  0x25   : > { %v666_v13 = vand.u32 4294901760, %v8189_v7  ;;  %v677_v17 = vand.u32 4294901760, %v8198_v11  ;;  %v8213_v22 = vand.u32 4294901760, %v595_v19  ;;  %v8216_v23 = vsub.f32 %v593_v15, %v8204_v16  ;;  %v467_v21 = vld [vmem:[%s10781_s4] sm:$0xff]  ;;  %v458_v24 = vld [vmem:[%s10919_s2 + $0x38] sm:$0xff]  ;;  %v472_v37 = vld [vmem:[%s10781_s4 + $0x28] sm:$0xff] }
  0x26   : > { %v688_v32 = vand.u32 4294901760, %v8225_v27  ;;  %v699_v47 = vand.u32 4294901760, %v8252_v40  ;;  %v8266_v48 = vsub.f32 %v581_v31, %v8254_v41  ;;  %v8268_v49 = vand.u32 4294901760, %v584_v44  ;;  %v469_v31 = vld [vmem:[%s10781_s4 + $0x10] sm:$0xff]  ;;  %v470_v35 = vld [vmem:[%s10781_s4 + $0x18] sm:$0xff]  ;;  %s434_s30 = scalar_lea.vmem [#allocation2], %s6799_s23 }
  0x27   : > { %v667_v18 = vsub.f32 %v8189_v7, %v666_v13  ;;  %v678_v26 = vsub.f32 %v8198_v11, %v677_v17  ;;  %v8228_v28 = vsub.f32 %v595_v19, %v8213_v22  ;;  %v760_v29 = vand.u32 4294901760, %v8216_v23  ;;  %598 = vmatprep.subr.mxu1 %v8213_v22  ;;  %532 = vperm.xlu0 %7824, %v452_v55   ;;  %v524_v55 = vld [vmem:[%s10789_s12] sm:$0x3]  ;;  %v522_v56 = vld [vmem:[%s10787_s10 + $0x38] sm:$0xff]  ;;  %s6736_s20 = sshll.u32 %s434_s30, 4  ;;  %s7991_s23 = sshll.u32 %s8053_s29, 4  ;;  %s10737_s20 = int_to_ptr.vmem [resolvable:$true] %s6736_s20  ;;  %s7992_s23 = int_to_ptr.vmem [resolvable:$false] %s7991_s23 }
  0x28   : > { %600 = vmatpush1.msra.mxu1 %v8204_v16  ;;  %v689_v42 = vsub.f32 %v8225_v27, %v688_v32  ;;  %v700_v51 = vsub.f32 %v8252_v40, %v699_v47  ;;  %v587_v52 = vsel %vm567_vm0, %v449_v46, 0  ;;  %v710_v54 = vand.u32 4294901760, %v8266_v48  ;;  %542 = vperm.xlu1 %7825, %v454_v0   ;;  %v489_v46 = vld [vmem:[%s10783_s6 + $0x30] sm:$0xff]  ;;  %s7987_s1 = scalar_lea.vmem %s10737_s20, 64  ;;  %s7993_s2 = scalar_lea.vmem %s7992_s23, 128 }
  0x29   : > { %v668_v25 = vand.u32 4294901760, %v667_v18  ;;  %v754_v33 = vand.u32 4294901760, %v8228_v28  ;;  %v761_v34 = vsub.f32 %v8216_v23, %v760_v29  ;;  %v679_v36 = vand.u32 4294901760, %v678_v26  ;;  %p7988_p11 = scmp.ne.s32.totalorder %s10737_s20, %s7987_s1  ;;  %p7994_p0 = scmp.lt.s32.totalorder %s10737_s20, %s7992_s23 }
  0x2a   : > { %v690_v50 = vand.u32 4294901760, %v689_v42  ;;  %v8290_v57 = vsub.f32 %v584_v44, %v8268_v49  ;;  %v8292_v58 = vand.u32 4294901760, %v587_v52  ;;  %v701_v59 = vand.u32 4294901760, %v700_v51  ;;  %v485_v42 = vld [vmem:[%s10783_s6 + $0x10] sm:$0xff]  ;;  %v487_v44 = vld [vmem:[%s10783_s6 + $0x20] sm:$0xff]  ;;  %p7995_p1 = scmp.lt.s32.totalorder %s7993_s2, %s7987_s1 }
  0x2b   : > { %669 = vmatmul.mubr.f32.vlgmr.msra.gmra.mrb[0].mxu1 %v668_v25  ;;  %v755_v39 = vsub.f32 %v8228_v28, %v754_v33  ;;  %v762_v43 = vand.u32 4294901760, %v761_v34  ;;  %v711_v60 = vsub.f32 %v8266_v48, %v710_v54  ;;  %v590_v61 = vsel %vm567_vm0, %v450_v53, 0  ;;  %547 = vperm.xlu0 %7824, %v455_v63   ;;  %v471_v34 = vld [vmem:[%s10781_s4 + $0x20] sm:$0xff]  ;;  %v521_v53 = vld [vmem:[%s10787_s10 + $0x30] sm:$0xff]  ;;  %p7989_p12 = pnand %p7988_p11, %p8162_p5 }
  0x2c   : > { %674 = vmatprep.mubr.f32.mxu1 %v10794_v2  ;;  %v721_v62 = vand.u32 4294901760, %v8290_v57  ;;  %v8309_v1 = vsub.f32 %v587_v52, %v8292_v58  ;;  %v8311_v3 = vand.u32 4294901760, %v590_v61  ;;  %552 = vperm.xlu1 %7825, %v456_v12   ;;  %v499_v51 = vld [vmem:[%s10785_s8] sm:$0xff]  ;;  %v490_v52 = vld [vmem:[%s10783_s6 + $0x38] sm:$0xff]  ;;  %p7996_p2 = por %p7995_p1, %p7994_p0 }
  0x2d   : > { %v756_v45 = vand.u32 4294901760, %v755_v39  ;;  %v712_v4 = vand.u32 4294901760, %v711_v60  ;;  %v474_v39 = vld [vmem:[%s10781_s4 + $0x38] sm:$0xff]  ;;  %p7990_p13 = pneg %p7989_p12 }
  0x2e   : > { %v722_v6 = vsub.f32 %v8290_v57, %v721_v62  ;;  %v732_v9 = vand.u32 4294901760, %v8309_v1  ;;  %v8327_v14 = vsub.f32 %v590_v61, %v8311_v3 }
  0x2f   : > { %680 = vmatmul.mubr.f32.gmra.mrb[2].mxu1 %v679_v36  ;;  %757 = vmatprep.subr.mxu0 %v756_v45  ;;  %v473_v36 = vld [vmem:[%s10781_s4 + $0x30] sm:$0xff]  ;;  %p7997_p3 = pnand %p7996_p2, %p7990_p13 }
  0x30   : > { %685 = vmatprep.mubr.f32.mxu1 %v10794_v2  ;;  %7289 = vmatprep.subr.mxu1 %v756_v45  ;;  %v723_v15 = vand.u32 4294901760, %v722_v6  ;;  %v733_v18 = vsub.f32 %v8309_v1, %v732_v9  ;;  %v743_v19 = vand.u32 4294901760, %v8327_v14  ;;  %v486_v45 = vld [vmem:[%s10783_s6 + $0x18] sm:$0xff] }
  0x31   : > { %763 = vmatpush1.msra.mxu0 %v762_v43  ;;  %7290 = vmatpush1.msra.mxu1 %v762_v43  ;;  %v484_v43 = vld [vmem:[%s10783_s6 + $0x8] sm:$0xff] }
  0x32   : > { %828 = vmatmul.mubr.f32.vlgmr.msra.gmra.mrb[0].mxu0 %v8183_v5  ;;  %885 = vmatprep.subr.mxu0 %v8228_v28  ;;  %v734_v25 = vand.u32 4294901760, %v733_v18  ;;  %v744_v26 = vsub.f32 %v8327_v14, %v743_v19  ;;  %v468_v28 = vld [vmem:[%s10781_s4 + $0x8] sm:$0xff] }
  0x33   : > { %833 = vmatprep.mubr.f32.mxu0 %v10794_v2  ;;  %888 = vmatpush1.msra.mxu0 %v8216_v23  ;;  %v504_v23 = vld [vmem:[%s10785_s8 + $0x28] sm:$0xff] }
  0x34   : > { %1017 = vmatprep.subr.mxu0 %v8213_v22  ;;  %691 = vmatmul.mubr.f32.gmra.mrb[4].mxu1 %v690_v50  ;;  %v488_v50 = vld [vmem:[%s10783_s6 + $0x28] sm:$0xff] }
  0x35   : > { %696 = vmatprep.mubr.f32.mxu1 %v10794_v2  ;;  %557 = vperm.xlu0 %7824, %v457_v10  }
  0x36   : > { %835 = vmatmul.mubr.f32.gmra.mrb[2].mxu0 %v8191_v8  ;;  %562 = vperm.xlu1 %7825, %v458_v24  }
  0x37   : > { %840 = vmatprep.mubr.f32.mxu0 %v10794_v2 }
  0x38   : > { %702 = vmatmul.mubr.f32.gmra.mrb[6].mxu1 %v701_v59 }
  0x39   : > { %707 = vmatprep.mubr.f32.mxu1 %v10794_v2  ;;  %1487 = vperm.xlu0 %7824, %v467_v21  }
  0x3a   : > { %842 = vmatmul.mubr.f32.gmra.mrb[4].mxu0 %v8210_v20  ;;  %1492 = vperm.xlu1 %7825, %v468_v28  }
  0x3b   : > { %951 = vmatprep.mubr.f32.mxu0 %v10794_v2 }
  0x3c   : > { %713 = vmatmul.mubr.f32.gmra.mrb[8].mxu1 %v712_v4  ;;  %v460_v4 = vld [vmem:[%s10780_s3 + $0x8] sm:$0xff] }
  0x3d   : > { %718 = vmatprep.mubr.f32.mxu1 %v10794_v2  ;;  %1497 = vperm.xlu0 %7824, %v469_v31  }
  0x3e   : > { %954 = vmatmul.mubr.f32.vlgmr.msra.gmra.mrb[0].mxu0 %v8189_v7  ;;  %1502 = vperm.xlu1 %7825, %v470_v35   ;;  %v501_v7 = vld [vmem:[%s10785_s8 + $0x10] sm:$0xff] }
  0x3f   : > { %959 = vmatprep.mubr.f32.mxu0 %v10794_v2  ;;  %1019 = vmatpush1.msra.mxu0 %v8204_v16 }
  0x40   : > { %1158 = vmatprep.subr.mxu0 %v754_v33  ;;  %724 = vmatmul.mubr.f32.gmra.mrb[10].mxu1 %v723_v15  ;;  %v745_v33 = vand.u32 4294901760, %v744_v26 }
  0x41   : > { %729 = vmatprep.mubr.f32.mxu1 %v10794_v2  ;;  %1507 = vperm.xlu0 %7824, %v471_v34  }
  0x42   : > { %962 = vmatmul.mubr.f32.gmra.mrb[2].mxu0 %v8198_v11  ;;  %1512 = vperm.xlu1 %7825, %v472_v37   ;;  %v503_v11 = vld [vmem:[%s10785_s8 + $0x20] sm:$0xff] }
  0x43   : > { %967 = vmatprep.mubr.f32.mxu0 %v10794_v2 }
  0x44   : > { %735 = vmatmul.mubr.f32.gmra.mrb[12].mxu1 %v734_v25 }
  0x45   : > { %740 = vmatprep.mubr.f32.mxu1 %v10794_v2  ;;  %1517 = vperm.xlu0 %7824, %v473_v36  }
  0x46   : > { %970 = vmatmul.mubr.f32.gmra.mrb[4].mxu0 %v8225_v27  ;;  %1522 = vperm.xlu1 %7825, %v474_v39   ;;  %v515_v27 = vld [vmem:[%s10787_s10] sm:$0xff] }
  0x47   : > { %975 = vmatprep.mubr.f32.mxu0 %v10794_v2 }
  0x48   : > { %746 = vmatmul.mubr.f32.gmra.mrb[14].mxu1 %v745_v33 }
  0x49   : > { %847 = vmatprep.mubr.f32.mxu1 %v10794_v2  ;;  %2622 = vperm.xlu0 %7824, %v483_v38  }
  0x4a   : > { %978 = vmatmul.mubr.f32.gmra.mrb[6].mxu0 %v8252_v40  ;;  %2627 = vperm.xlu1 %7825, %v484_v43   ;;  %v516_v40 = vld [vmem:[%s10787_s10 + $0x8] sm:$0xff] }
  0x4b   : > { %983 = vmatprep.mubr.f32.mxu0 %v10794_v2 }
  0x4c   : > { %849 = vmatmul.mubr.f32.vlgmr.msra.gmra.mrb[6].mxu1 %v8231_v30 }
  0x4d   : > { %854 = vmatprep.mubr.f32.mxu1 %v10794_v2  ;;  %2632 = vperm.xlu0 %7824, %v485_v42  }
  0x4e   : > { %986 = vmatmul.mubr.f32.gmra.mrb[8].mxu0 %v8266_v48  ;;  %2637 = vperm.xlu1 %7825, %v486_v45   ;;  %v518_v48 = vld [vmem:[%s10787_s10 + $0x18] sm:$0xff] }
  0x4f   : > { %991 = vmatprep.mubr.f32.mxu0 %v10794_v2 }
  0x50   : > { %856 = vmatmul.mubr.f32.gmra.mrb[8].mxu1 %v8254_v41 }
  0x51   : > { %861 = vmatprep.mubr.f32.mxu1 %v10794_v2  ;;  %2642 = vperm.xlu0 %7824, %v487_v44  }
  0x52   : > { %994 = vmatmul.mubr.f32.gmra.mrb[10].mxu0 %v8290_v57  ;;  %2647 = vperm.xlu1 %7825, %v488_v50  }
  0x53   : > { %999 = vmatprep.mubr.f32.mxu0 %v10794_v2 }
  0x54   : > { %863 = vmatmul.mubr.f32.gmra.mrb[10].mxu1 %v8268_v49 }
  0x55   : > { %868 = vmatprep.mubr.f32.mxu1 %v10794_v2  ;;  %2652 = vperm.xlu0 %7824, %v489_v46  }
  0x56   : > { %1002 = vmatmul.mubr.f32.gmra.mrb[12].mxu0 %v8309_v1  ;;  %2657 = vperm.xlu1 %7825, %v490_v52  }
  0x57   : > { %1007 = vmatprep.mubr.f32.mxu0 %v10794_v2 }
  0x58   : > { %870 = vmatmul.mubr.f32.gmra.mrb[12].mxu1 %v8292_v58 }
  0x59   : > { %875 = vmatprep.mubr.f32.mxu1 %v10794_v2  ;;  %3772 = vperm.xlu0 %7824, %v499_v51   ;;  %v462_v51 = vld [vmem:[%s10780_s3 + $0x18] sm:$0xff] }
  0x5a   : > { %1010 = vmatmul.mubr.f32.gmra.mrb[14].mxu0 %v8327_v14  ;;  %v1530_v14 = vsel %vm1525_vm2, %v460_v4, 0 }
  0x5b   : > { %1082 = vmatprep.mubr.f32.mxu0 %v10794_v2  ;;  %v8555_v25 = vand.u32 4294901760, %v1530_v14 }
  0x5c   : > { %877 = vmatmul.mubr.f32.gmra.mrb[14].mxu1 %v8311_v3 }
  0x5d   : > { %1630 = vmatprep.mubr.f32.mxu1 %v10794_v2  ;;  %3782 = vperm.xlu0 %7824, %v501_v7   ;;  %v8569_v44 = vsub.f32 %v1530_v14, %v8555_v25 }
  0x5e   : > { %1086 = vmatmul.mubr.f32.vlgmr.msra.gmra.mrb[0].mxu0 %v666_v13  ;;  %v500_v13 = vld [vmem:[%s10785_s8 + $0x8] sm:$0xff] }
  0x5f   : > { %1091 = vmatprep.mubr.f32.mxu0 %v10794_v2  ;;  %1162 = vmatpush1.msra.mxu0 %v760_v29  ;;  %v506_v29 = vld [vmem:[%s10785_s8 + $0x38] sm:$0xff] }
  0x60   : > { %1283 = vmatprep.subr.mxu0 %v8213_v22  ;;  %3777 = vperm.xlu1 %7825, %v500_v13   ;;  %v505_v22 = vld [vmem:[%s10785_s8 + $0x30] sm:$0xff] }
  0x61   : > { %3792 = vperm.xlu0 %7824, %v503_v11  }
  0x62   : > { %1095 = vmatmul.mubr.f32.gmra.mrb[2].mxu0 %v677_v17  ;;  %v502_v17 = vld [vmem:[%s10785_s8 + $0x18] sm:$0xff] }
  0x63   : > { %1100 = vmatprep.mubr.f32.mxu0 %v10794_v2 }
  0x64   : > { %3787 = vperm.xlu1 %7825, %v502_v17  }
  0x65   : > { %3802 = vperm.xlu0 %7824, %v505_v22  }
  0x66   : > { %1104 = vmatmul.mubr.f32.gmra.mrb[4].mxu0 %v688_v32  ;;  %v517_v32 = vld [vmem:[%s10787_s10 + $0x10] sm:$0xff] }
  0x67   : > { %1109 = vmatprep.mubr.f32.mxu0 %v10794_v2 }
  0x68   : > { %3797 = vperm.xlu1 %7825, %v504_v23  }
  0x69   : > { %4906 = vperm.xlu0 %7824, %v515_v27  }
  0x6a   : > { %1113 = vmatmul.mubr.f32.gmra.mrb[6].mxu0 %v699_v47  ;;  %v519_v47 = vld [vmem:[%s10787_s10 + $0x20] sm:$0xff] }
  0x6b   : > { %1118 = vmatprep.mubr.f32.mxu0 %v10794_v2 }
  0x6c   : > { %3807 = vperm.xlu1 %7825, %v506_v29  }
  0x6d   : > { %4916 = vperm.xlu0 %7824, %v517_v32   ;;  %v10792_v32 = vand.u32 4294901760, %v8569_v44 }
  0x6e   : > { %1122 = vmatmul.mubr.f32.gmra.mrb[8].mxu0 %v710_v54  ;;  %v520_v54 = vld [vmem:[%s10787_s10 + $0x28] sm:$0xff] }
  0x6f   : > { %1127 = vmatprep.mubr.f32.mxu0 %v10794_v2 }
  0x70   : > { %4911 = vperm.xlu1 %7825, %v516_v40   ;;  %v1536_v40 = vsel %vm1525_vm2, %v462_v51, 0 }
  0x71   : > { %4926 = vperm.xlu0 %7824, %v519_v47  }
  0x72   : > { %1131 = vmatmul.mubr.f32.gmra.mrb[10].mxu0 %v721_v62 }
  0x73   : > { %1136 = vmatprep.mubr.f32.mxu0 %v10794_v2 }
  0x74   : > { %4921 = vperm.xlu1 %7825, %v518_v48  }
  0x75   : > { %4936 = vperm.xlu0 %7824, %v521_v53  }
  0x76   : > { %1140 = vmatmul.mubr.f32.gmra.mrb[12].mxu0 %v732_v9  ;;  %v461_v9 = vld [vmem:[%s10780_s3 + $0x10] sm:$0xff] }
  0x77   : > { %1145 = vmatprep.mubr.f32.mxu0 %v10794_v2  ;;  %v1533_v15 = vsel %vm1525_vm2, %v461_v9, 0 }
  0x78   : > { %4931 = vperm.xlu1 %7825, %v520_v54   ;;  %v8559_v33 = vand.u32 4294901760, %v1533_v15 }
  0x79   : > { %6056 = vperm.xlu0 %7824, %v524_v55  }
  0x7a   : > { %1149 = vmatmul.mubr.f32.gmra.mrb[14].mxu0 %v743_v19  ;;  %v8574_v50 = vsub.f32 %v1533_v15, %v8559_v33 }
  0x7b   : > { %1225 = vmatprep.mubr.f32.mxu0 %v10794_v2 }
  0x7c   : > { %4941 = vperm.xlu1 %7825, %v522_v56   ;;  %10920 = vst [vmem:[#allocation5_spill] sm:$0xff] %v8574_v50  ;;  %v10791_v53 = vand.u32 4294901760, %v8574_v50 }
  0x7e   : > { %1227 = vmatmul.mubr.f32.vlgmr.msra.gmra.mrb[0].mxu0 %v8183_v5  ;;  %v8614_v9 = vsub.f32 %v8574_v50, %v10791_v53 }
  0x7f   : > { %1232 = vmatprep.mubr.f32.mxu0 %v10794_v2  ;;  %1285 = vmatpush1.msra.mxu0 %v8204_v16 }
  0x82   : > { %1234 = vmatmul.mubr.f32.gmra.mrb[2].mxu0 %v8191_v8 }
  0x83   : > { %1239 = vmatprep.mubr.f32.mxu0 %v10794_v2 }
  0x86   : > { %1241 = vmatmul.mubr.f32.gmra.mrb[4].mxu0 %v8210_v20 }
  0x87   : > { %1246 = vmatprep.mubr.f32.mxu0 %v10794_v2 }
  0x8a   : > { %1248 = vmatmul.mubr.f32.gmra.mrb[6].mxu0 %v8231_v30 }
  0x8b   : > { %1253 = vmatprep.mubr.f32.mxu0 %v10794_v2 }
  0x8e   : > { %1255 = vmatmul.mubr.f32.gmra.mrb[8].mxu0 %v8254_v41 }
  0x8f   : > { %1260 = vmatprep.mubr.f32.mxu0 %v10794_v2 }
  0x92   : > { %1262 = vmatmul.mubr.f32.gmra.mrb[10].mxu0 %v8268_v49 }
  0x93   : > { %1267 = vmatprep.mubr.f32.mxu0 %v10794_v2 }
  0x96   : > { %1269 = vmatmul.mubr.f32.gmra.mrb[12].mxu0 %v8292_v58 }
  0x97   : > { %1274 = vmatprep.mubr.f32.mxu0 %v10794_v2 }
  0x9a   : > { %1276 = vmatmul.mubr.f32.gmra.mrb[14].mxu0 %v8311_v3 }
  0x9b   : > { %1348 = vmatprep.mubr.f32.mxu0 %v10794_v2 }
  0x9e   : > { %1350 = vmatmul.mubr.f32.vlgmr.msra.gmra.mrb[0].mxu0 %v8183_v5 }
  0x9f   : > { %1355 = vmatprep.mubr.f32.mxu0 %v10794_v2 }
  0xa2   : > { %1357 = vmatmul.mubr.f32.gmra.mrb[2].mxu0 %v8191_v8  ;;  %v528_v6 = vpop.permute.xlu0 %527 }
  0xa3   : > { %1362 = vmatprep.mubr.f32.mxu0 %v10794_v2  ;;  %v538_v10 = vpop.permute.xlu1 %537 }
  0xa6   : > { %1364 = vmatmul.mubr.f32.gmra.mrb[4].mxu0 %v8210_v20  ;;  %v533_v26 = vpop.permute.xlu0 %532 }
  0xa7   : > { %1369 = vmatprep.mubr.f32.mxu0 %v10794_v2  ;;  %v543_v34 = vpop.permute.xlu1 %542 }
  0xaa   : > { %1371 = vmatmul.mubr.f32.gmra.mrb[6].mxu0 %v8231_v30  ;;  %v548_v7 = vpop.permute.xlu0 %547 }
  0xab   : > { %1376 = vmatprep.mubr.f32.mxu0 %v10794_v2  ;;  %v553_v22 = vpop.permute.xlu1 %552 }
  0xae   : > { %1378 = vmatmul.mubr.f32.gmra.mrb[8].mxu0 %v8254_v41 }
  0xaf   : > { %1383 = vmatprep.mubr.f32.mxu0 %v10794_v2 }
  0xb2   : > { %1385 = vmatmul.mubr.f32.gmra.mrb[10].mxu0 %v8268_v49 }
  0xb3   : > { %1390 = vmatprep.mubr.f32.mxu0 %v10794_v2 }
  0xb6   : > { %1392 = vmatmul.mubr.f32.gmra.mrb[12].mxu0 %v8292_v58 }
  0xb7   : > { %1397 = vmatprep.mubr.f32.mxu0 %v10794_v2 }
  0xba   : > { %1399 = vmatmul.mubr.f32.gmra.mrb[14].mxu0 %v8311_v3  ;;  %v459_v3 = vld [vmem:[%s10780_s3] sm:$0xff] }
  0xbb   : > { %2764 = vmatprep.mubr.f32.mxu0 %v10794_v2  ;;  %v1527_v12 = vsel %vm1525_vm2, %v459_v3, 0 }
  0xbc   : > { %v8553_v24 = vand.u32 4294901760, %v1527_v12 }
  0xbe   : > { %v8566_v43 = vsub.f32 %v1527_v12, %v8553_v24 }
  0xc0   : > { %v10793_v29 = vand.u32 4294901760, %v8566_v43 }
  0xc2   : > { %v8598_v4 = vsub.f32 %v8566_v43, %v10793_v29 }
  0xfe   : > { %v670_v5 = vpop.f32.mrb[0].mxu1 }
  0xff   : > { %v672_v8 = vpop.f32.mrb[1].mxu1  ;;  %v671_v18 = vadd.f32 %v670_v5, %v528_v6 }
 0x100   : > { %v673_v19 = vadd.f32 %v672_v8, %v528_v6 }
 0x102   : > { %v681_v16 = vpop.f32.mrb[2].mxu1 }
 0x103   : > { %v683_v20 = vpop.f32.mrb[3].mxu1  ;;  %v682_v36 = vadd.f32 %v681_v16, %v533_v26 }
 0x104   : > { %v684_v38 = vadd.f32 %v683_v20, %v533_v26  ;;  %v8592_v20 = vand.u32 4294901760, %v1536_v40 }
 0x107   : > { %v692_v30 = vpop.f32.mrb[4].mxu1 }
 0x108   : > { %v694_v41 = vpop.f32.mrb[5].mxu1  ;;  %v693_v13 = vadd.f32 %v692_v30, %v538_v10 }
 0x109   : > { %v695_v11 = vadd.f32 %v694_v41, %v538_v10  ;;  %v563_v10 = vpop.permute.xlu1 %562 }
 0x11f   : > { %v850_v57 = vpop.f32.mrb[6].mxu1 }
 0x120   : > { %v852_v59 = vpop.f32.mrb[7].mxu1  ;;  %v7303_v54 = vadd.f32 %v850_v57, %v543_v34  ;;  %v8603_v57 = vsub.f32 %v8569_v44, %v10792_v32 }
 0x121   : > { %v7305_v55 = vadd.f32 %v852_v59, %v543_v34  ;;  %v463_v59 = vld [vmem:[%s10780_s3 + $0x20] sm:$0xff] }
 0x123   : > { %v857_v60 = vpop.f32.mrb[8].mxu1 }
 0x124   : > { %v859_v49 = vpop.f32.mrb[9].mxu1  ;;  %v7307_v5 = vadd.f32 %v857_v60, %v548_v7  ;;  %v558_v60 = vpop.permute.xlu0 %557 }
 0x125   : > { %v7309_v8 = vadd.f32 %v859_v49, %v548_v7 }
 0x127   : > { %v864_v61 = vpop.f32.mrb[10].mxu1 }
 0x128   : > { %v8531_v62 = vpop.f32.mrb[11].mxu1  ;;  %v7311_v30 = vadd.f32 %v864_v61, %v553_v22 }
 0x129   : > { %v7313_v49 = vadd.f32 %v8531_v62, %v553_v22 }
 0x12b   : > { %v8533_v58 = vpop.f32.mrb[12].mxu1 }
 0x12c   : > { %v8535_v63 = vpop.f32.mrb[13].mxu1  ;;  %v7315_v12 = vadd.f32 %v8533_v58, %v558_v60 }
 0x12d   : > { %v8618_v14 = vadd.f32 %v8535_v63, %v558_v60 }
 0x12f   : > { %v8537_v0 = vpop.f32.mrb[14].mxu1 }
 0x130   : > { %v8539_v1 = vpop.f32.mrb[15].mxu1  ;;  %v8623_v62 = vadd.f32 %v8537_v0, %v563_v10  ;;  %v464_v0 = vld [vmem:[%s10780_s3 + $0x28] sm:$0xff] }
 0x171   : > { %v1351_v21 = vpop.f32.mrb[0].mxu0 }
 0x172   : > { %v8557_v31 = vadd.f32 %v1351_v21, %v671_v18  ;;  %v1353_v28 = vpop.f32.mrb[1].mxu0  ;;  %v1539_v21 = vsel %vm1525_vm2, %v463_v59, 0 }
 0x173   : > { %v8561_v35 = vadd.f32 %v1353_v28, %v673_v19  ;;  %v8627_v19 = vsub.f32 %v1536_v40, %v8592_v20  ;;  %v8631_v28 = vadd.f32 %v8539_v1, %v563_v10  ;;  %v8645_v7 = vand.u32 4294901760, %v1539_v21 }
 0x174   : > { %v1421_v37 = vmul.f32 0.70710677, %v8557_v31 }
 0x175   : > { %v1422_v39 = vmul.f32 0.70710677, %v8561_v35  ;;  %v1358_v42 = vpop.f32.mrb[2].mxu0  ;;  %10921 = vst [vmem:[#allocation6_spill] sm:$0xff] %v8627_v19  ;;  %v8663_v59 = vsub.f32 %v1539_v21, %v8645_v7 }
 0x176   : > { %v8571_v45 = vadd.f32 %v1358_v42, %v682_v36  ;;  %v1360_v46 = vpop.f32.mrb[3].mxu0 }
 0x177   : > { %7827 = verf.f32 %v1422_v39  ;;  %v8579_v52 = vadd.f32 %v1360_v46, %v684_v38  ;;  %v1406_v46 = vmul.f32 0.5, %v8561_v35 }
 0x178   : > { %7829 = verf.f32 %v1421_v37  ;;  %v1423_v17 = vmul.f32 0.70710677, %v8571_v45 }
 0x179   : > { %v1424_v23 = vmul.f32 0.70710677, %v8579_v52  ;;  %v1365_v27 = vpop.f32.mrb[4].mxu0 }
 0x17a   : > { %7831 = verf.f32 %v1423_v17  ;;  %v8586_v47 = vadd.f32 %v1365_v27, %v693_v13  ;;  %v1367_v48 = vpop.f32.mrb[5].mxu0 }
 0x17b   : > { %7833 = verf.f32 %v1424_v23  ;;  %v8589_v56 = vadd.f32 %v1367_v48, %v695_v11  ;;  %v1407_v11 = vmul.f32 0.5, %v8571_v45  ;;  %v8651_v23 = vsel %vm1525_vm2, %v464_v0, 0 }
 0x17c   : > { %v1425_v16 = vmul.f32 0.70710677, %v8586_v47 }
 0x17d   : > { %v1426_v41 = vmul.f32 0.70710677, %v8589_v56  ;;  %v1372_v3 = vpop.f32.mrb[6].mxu0 }
 0x17e   : > { %7835 = verf.f32 %v1425_v16  ;;  %v8609_v61 = vadd.f32 %v7303_v54, %v1372_v3  ;;  %v1374_v6 = vpop.f32.mrb[7].mxu0 }
 0x17f   : > { %7837 = verf.f32 %v1426_v41  ;;  %v8620_v15 = vadd.f32 %v7305_v55, %v1374_v6  ;;  %v1405_v41 = vmul.f32 0.5, %v8557_v31  ;;  %v1409_v31 = vmul.f32 0.5, %v8586_v47 }
 0x180   : > { %v1427_v18 = vmul.f32 0.70710677, %v8609_v61 }
 0x181   : > { %v7828_v26 = vpop.eup %7827  ;;  %v1428_v58 = vmul.f32 0.70710677, %v8620_v15  ;;  %v1379_v63 = vpop.f32.mrb[8].mxu0 }
 0x182   : > { %v7830_v37 = vpop.eup %7829  ;;  %v1454_v38 = vadd.f32 1.0, %v7828_v26  ;;  %7839 = verf.f32 %v1427_v18  ;;  %v8639_v39 = vadd.f32 %v7307_v5, %v1379_v63  ;;  %v1381_v42 = vpop.f32.mrb[9].mxu0  ;;  %v1408_v5 = vmul.f32 0.5, %v8579_v52 }
 0x183   : > { %7841 = verf.f32 %v1428_v58  ;;  %v8643_v51 = vadd.f32 %v7309_v8, %v1381_v42  ;;  %v1453_v40 = vadd.f32 1.0, %v7830_v37  ;;  %v8671_v18 = vand.u32 4294901760, %v8651_v23 }
 0x184   : > { %v7832_v13 = vpop.eup %7831  ;;  %v1429_v17 = vmul.f32 0.70710677, %v8639_v39  ;;  %v8653_v48 = vmul.f32 %v1454_v38, %v1406_v46  ;;  %v1410_v46 = vmul.f32 0.5, %v8589_v56  ;;  %v1412_v56 = vmul.f32 0.5, %v8620_v15 }
 0x185   : > { %v7834_v27 = vpop.eup %7833  ;;  %v1455_v35 = vadd.f32 1.0, %v7832_v13  ;;  %v1430_v54 = vmul.f32 0.70710677, %v8643_v51  ;;  %v1386_v55 = vpop.f32.mrb[10].mxu0  ;;  %v8673_v26 = vmul.f32 %v1453_v40, %v1405_v41 }
 0x186   : > { %10922 = vst [vmem:[#allocation7_spill] sm:$0xff] %v8653_v48  ;;  %v1456_v8 = vadd.f32 1.0, %v7834_v27  ;;  %7843 = verf.f32 %v1429_v17  ;;  %v8657_v45 = vadd.f32 %v7311_v30, %v1386_v55  ;;  %v1388_v16 = vpop.f32.mrb[11].mxu0  ;;  %v1550_v21 = vand.u32 4294901760, %v8653_v48 }
 0x187   : > { %7845 = verf.f32 %v1430_v54  ;;  %v8660_v3 = vadd.f32 %v7313_v49, %v1388_v16  ;;  %v8665_v6 = vmul.f32 %v1455_v35, %v1407_v11  ;;  %10925 = vst [vmem:[#allocation10_spill] sm:$0xff] %v8673_v26  ;;  %v1411_v17 = vmul.f32 0.5, %v8609_v61 }
 0x188   : > { %v7836_v60 = vpop.eup %7835  ;;  %v8667_v10 = vmul.f32 %v1456_v8, %v1408_v5  ;;  %v1431_v52 = vmul.f32 0.70710677, %v8657_v45  ;;  %v1552_v54 = vand.u32 4294901760, %v8673_v26 }
 0x189   : > { %10923 = vst [vmem:[#allocation8_spill] sm:$0xff] %v8665_v6  ;;  %v7838_v30 = vpop.eup %7837  ;;  %v1432_v49 = vmul.f32 0.70710677, %v8660_v3  ;;  %v1393_v58 = vpop.f32.mrb[12].mxu0  ;;  %v1457_v42 = vadd.f32 1.0, %v7836_v60  ;;  %v1556_v47 = vand.u32 4294901760, %v8665_v6 }
 0x18a   : > { %10924 = vst [vmem:[#allocation9_spill] sm:$0xff] %v8667_v10  ;;  %v1458_v63 = vadd.f32 1.0, %v7838_v30  ;;  %7847 = verf.f32 %v1431_v52  ;;  %v7316_v0 = vadd.f32 %v7315_v12, %v1393_v58  ;;  %v1395_v37 = vpop.f32.mrb[13].mxu0  ;;  %v1554_v38 = vand.u32 4294901760, %v8667_v10  ;;  %v465_v12 = vld [vmem:[%s10780_s3 + $0x30] sm:$0xff] }
 0x18b   : > { %7849 = verf.f32 %v1432_v49  ;;  %v7318_v13 = vadd.f32 %v8618_v14, %v1395_v37  ;;  %v8694_v60 = vmul.f32 %v1457_v42, %v1409_v31  ;;  %v8704_v37 = vsel %vm1525_vm2, %v465_v12, 0 }
 0x18c   : > { %v7840_v11 = vpop.eup %7839  ;;  %v1433_v27 = vmul.f32 0.70710677, %v7316_v0  ;;  %v8683_v40 = vpack.c.bf16 %v1554_v38, %v1550_v21  ;;  %v8690_v8 = vmul.f32 %v1458_v63, %v1410_v46  ;;  %v8701_v63 = vpack.c.bf16 %v1556_v47, %v1552_v54 }
 0x18d   : > { %v7842_v35 = vpop.eup %7841  ;;  %v1459_v55 = vadd.f32 1.0, %v7840_v11  ;;  %v1434_v5 = vmul.f32 0.70710677, %v7318_v13  ;;  %v1400_v14 = vpop.f32.mrb[14].mxu0  ;;  %10927 = vst [vmem:[#allocation12_spill] sm:$0xff] %v8694_v60  ;;  %v1413_v31 = vmul.f32 0.5, %v8639_v39  ;;  %v8716_v39 = vsub.f32 %v8673_v26, %v1552_v54 }
 0x18e   : > { %10926 = vst [vmem:[#allocation11_spill] sm:$0xff] %v8690_v8  ;;  %v1460_v16 = vadd.f32 1.0, %v7842_v35  ;;  %7851 = verf.f32 %v1433_v27  ;;  %v7320_v61 = vadd.f32 %v8623_v62, %v1400_v14  ;;  %v1402_v41 = vpop.f32.mrb[15].mxu0  ;;  %6810 = vmatprep.subr.bf16.mxu1 %v8683_v40  ;;  %v1560_v35 = vand.u32 4294901760, %v8694_v60 }
 0x18f   : > { %v8696_v52 = vmul.f32 %v1459_v55, %v1411_v17  ;;  %7853 = verf.f32 %v1434_v5  ;;  %v7322_v30 = vadd.f32 %v8631_v28, %v1402_v41  ;;  %6812 = vmatpush1.bf16.msra.mxu1 %v8701_v63  ;;  %v1558_v28 = vand.u32 4294901760, %v8690_v8 }
 0x190   : > { %v7844_v49 = vpop.eup %7843  ;;  %v8699_v15 = vmul.f32 %v1460_v16, %v1412_v56  ;;  %v1435_v58 = vmul.f32 0.70710677, %v7320_v61  ;;  %v1414_v12 = vmul.f32 0.5, %v8643_v51  ;;  %v8719_v5 = vsub.f32 %v8653_v48, %v1550_v21 }
 0x191   : > { %10928 = vst [vmem:[#allocation13_spill] sm:$0xff] %v8696_v52  ;;  %v7846_v62 = vpop.eup %7845  ;;  %v1564_v46 = vand.u32 4294901760, %v8696_v52  ;;  %v1461_v42 = vadd.f32 1.0, %v7844_v49  ;;  %v1436_v11 = vmul.f32 0.70710677, %v7322_v30  ;;  %v8722_v14 = vsub.f32 %v8667_v10, %v1554_v38 }
 0x192   : > { %10929 = vst [vmem:[#allocation14_spill] sm:$0xff] %v8699_v15  ;;  %v1462_v17 = vadd.f32 1.0, %v7846_v62  ;;  %7855 = verf.f32 %v1435_v58  ;;  %v1562_v27 = vand.u32 4294901760, %v8699_v15  ;;  %v1415_v58 = vmul.f32 0.5, %v8657_v45 }
 0x193   : > { %v8712_v55 = vmul.f32 %v1461_v42, %v1413_v31  ;;  %7857 = verf.f32 %v1436_v11  ;;  %v8729_v51 = vpack.c.bf16 %v1564_v46, %v1560_v35  ;;  %v8732_v31 = vsub.f32 %v8665_v6, %v1556_v47 }
 0x194   : > { %v7848_v56 = vpop.eup %7847  ;;  %v8724_v16 = vpack.c.bf16 %v1562_v27, %v1558_v28  ;;  %v8726_v49 = vmul.f32 %v1462_v17, %v1414_v12  ;;  %v1416_v54 = vmul.f32 0.5, %v8660_v3  ;;  %v1417_v42 = vmul.f32 0.5, %v7316_v0 }
 0x195   : > { %10930 = vst [vmem:[#allocation15_spill] sm:$0xff] %v8712_v55  ;;  %v7850_v41 = vpop.eup %7849  ;;  %v1463_v62 = vadd.f32 1.0, %v7848_v56  ;;  %10932 = vst [vmem:[#allocation17_spill] sm:$0xff] %v8729_v51  ;;  %v8737_v38 = vsub.f32 %v8694_v60, %v1560_v35  ;;  %v1568_v11 = vand.u32 4294901760, %v8712_v55  ;;  %v1418_v45 = vmul.f32 0.5, %v7318_v13 }
 0x196   : > { %10931 = vst [vmem:[#allocation16_spill] sm:$0xff] %v8726_v49  ;;  %v1464_v21 = vadd.f32 1.0, %v7850_v41  ;;  %6814 = vmatprep.subr.bf16.mxu1 %v8724_v16  ;;  %v1419_v47 = vmul.f32 0.5, %v7320_v61  ;;  %v10796_v3 = vand.u32 4294901760, %v8719_v5  ;;  %v10797_v0 = vand.u32 4294901760, %v8722_v14 }
 0x197   : > { %v8740_v17 = vmul.f32 %v1463_v62, %v1415_v58  ;;  %6816 = vmatpush1.bf16.msra.mxu1 %v8729_v51  ;;  %v1420_v35 = vmul.f32 0.5, %v7322_v30  ;;  %v1566_v32 = vand.u32 4294901760, %v8726_v49  ;;  %v10798_v58 = vand.u32 4294901760, %v8716_v39 }
 0x198   : > { %v7852_v12 = vpop.eup %7851  ;;  %v8743_v56 = vmul.f32 %v1464_v21, %v1416_v54  ;;  %v8751_v29 = vsub.f32 %v8699_v15, %v1562_v27  ;;  %v8755_v61 = vsub.f32 %v8696_v52, %v1564_v46  ;;  %v8758_v21 = vsub.f32 %v8712_v55, %v1568_v11 }
 0x199   : > { %10933 = vst [vmem:[#allocation18_spill] sm:$0xff] %v8740_v17  ;;  %v7854_v41 = vpop.eup %7853  ;;  %v1572_v53 = vand.u32 4294901760, %v8740_v17  ;;  %v1465_v62 = vadd.f32 1.0, %v7852_v12  ;;  %v8761_v1 = vsub.f32 %v8690_v8, %v1558_v28  ;;  %v1722_v27 = vsub.f32 %v8719_v5, %v10796_v3 }
 0x19a   : > { %10934 = vst [vmem:[#allocation19_spill] sm:$0xff] %v8743_v56  ;;  %v1466_v13 = vadd.f32 1.0, %v7854_v41  ;;  %v1570_v54 = vand.u32 4294901760, %v8743_v56  ;;  %v1734_v46 = vsub.f32 %v8722_v14, %v10797_v0  ;;  %v8775_v28 = vsub.f32 %v8726_v49, %v1566_v32 }
 0x19b   : > { %v8777_v22 = vpack.c.bf16 %v1572_v53, %v1568_v11  ;;  %v10941_v49 = vand.u32 4294901760, %v8732_v31  ;;  %v8801_v0 = vsub.f32 %v8740_v17, %v1572_v53  ;;  %v10944_v17 = vand.u32 4294901760, %v8755_v61 }
 0x19c   : > { %v7856_v36 = vpop.eup %7855  ;;  %v8764_v2 = vmul.f32 %v1466_v13, %v1418_v45  ;;  %v8766_v12 = vpack.c.bf16 %v1570_v54, %v1566_v32  ;;  %v1728_v45 = vsub.f32 %v8716_v39, %v10798_v58  ;;  %v8782_v13 = vmul.f32 %v1465_v62, %v1417_v42 }
 0x19d   : > { %v7858_v41 = vpop.eup %7857  ;;  %v1467_v34 = vadd.f32 1.0, %v7856_v36  ;;  %10937 = vst [vmem:[#allocation22_spill] sm:$0xff] %v8777_v22  ;;  %v8786_v3 = vsub.f32 %v8743_v56, %v1570_v54  ;;  %v1723_v62 = vand.u32 4294901760, %v1722_v27  ;;  %v1740_v54 = vsub.f32 %v8732_v31, %v10941_v49 }
 0x19e   : > { %10935 = vst [vmem:[#allocation20_spill] sm:$0xff] %v8764_v2  ;;  %10936 = vst [vmem:[#allocation21_spill] sm:$0xff] %v8766_v12  ;;  %v1468_v30 = vadd.f32 1.0, %v7858_v41  ;;  %6818 = vmatprep.subr.bf16.mxu1 %v8766_v12  ;;  %v1574_v32 = vand.u32 4294901760, %v8764_v2  ;;  %v1735_v41 = vand.u32 4294901760, %v1734_v46  ;;  %v1751_v56 = vand.u32 4294901760, %v8737_v38 }
 0x19f   : > { %10938 = vst [vmem:[#allocation23_spill] sm:$0xff] %v8782_v13  ;;  %v8789_v36 = vmul.f32 %v1467_v34, %v1419_v47  ;;  %6820 = vmatpush1.bf16.msra.mxu1 %v8777_v22  ;;  %v1729_v47 = vand.u32 4294901760, %v1728_v45  ;;  %v10942_v58 = vand.u32 4294901760, %v8751_v29  ;;  %v1781_v27 = vand.u32 4294901760, %v8786_v3 }
 0x1a0   : > { %v8795_v42 = vmul.f32 %v1468_v30, %v1420_v35  ;;  %v1769_v30 = vand.u32 4294901760, %v8775_v28  ;;  %v1576_v49 = vand.u32 4294901760, %v8782_v13  ;;  %v8813_v53 = vsub.f32 %v8764_v2, %v1574_v32 }
 0x1a1   : > { %10939 = vst [vmem:[#allocation24_spill] sm:$0xff] %v8789_v36  ;;  %v1580_v34 = vand.u32 4294901760, %v8789_v36  ;;  %v1758_v35 = vsub.f32 %v8751_v29, %v10942_v58  ;;  %v10943_v46 = vand.u32 4294901760, %v8761_v1  ;;  %v1764_v55 = vsub.f32 %v8755_v61, %v10944_v17 }
 0x1a2   : > { %10940 = vst [vmem:[#allocation25_spill] sm:$0xff] %v8795_v42  ;;  %v1578_v11 = vand.u32 4294901760, %v8795_v42  ;;  %v1782_v8 = vsub.f32 %v8786_v3, %v1781_v27  ;;  %v1741_v60 = vand.u32 4294901760, %v1740_v54  ;;  %v1752_v10 = vsub.f32 %v8737_v38, %v1751_v56 }
 0x1a3   : > { %v1746_v45 = vsub.f32 %v8761_v1, %v10943_v46  ;;  %v8822_v15 = vsub.f32 %v8789_v36, %v1580_v34  ;;  %v8830_v2 = vpack.c.bf16 %v1580_v34, %v1576_v49  ;;  %v1787_v46 = vand.u32 4294901760, %v8801_v0 }
 0x1a4   : > { %v8824_v58 = vpack.c.bf16 %v1578_v11, %v1574_v32  ;;  %v8827_v52 = vsub.f32 %v8795_v42, %v1578_v11  ;;  %v6825_v17 = vpack.c.bf16 %v1735_v41, %v1723_v62  ;;  %v1759_v6 = vand.u32 4294901760, %v1758_v35 }
 0x1a5   : > { %10946 = vst [vmem:[#allocation27_spill] sm:$0xff] %v8830_v2  ;;  %v1770_v36 = vsub.f32 %v8775_v28, %v1769_v30  ;;  %v8838_v11 = vsub.f32 %v8782_v13, %v1576_v49  ;;  %v1747_v34 = vand.u32 4294901760, %v1746_v45  ;;  %v1765_v42 = vand.u32 4294901760, %v1764_v55 }
 0x1a6   : > { %10945 = vst [vmem:[#allocation26_spill] sm:$0xff] %v8824_v58  ;;  %6822 = vmatprep.subr.bf16.mxu1 %v8824_v58  ;;  %v1805_v32 = vand.u32 4294901760, %v8827_v52  ;;  %v1775_v54 = vand.u32 4294901760, %v8758_v21  ;;  %v1783_v48 = vand.u32 4294901760, %v1782_v8  ;;  %v1788_v26 = vsub.f32 %v8801_v0, %v1787_v46 }
 0x1a7   : > { %6824 = vmatpush1.bf16.msra.mxu1 %v8830_v2  ;;  %v1793_v62 = vand.u32 4294901760, %v8813_v53  ;;  %v1811_v41 = vand.u32 4294901760, %v8822_v15  ;;  %v6827_v35 = vpack.c.bf16 %v1741_v60, %v1729_v47  ;;  %v1753_v58 = vand.u32 4294901760, %v1752_v10 }
 0x1a8   : > { %6826 = vmatprep.subr.bf16.mxu1 %v6825_v17  ;;  %v1806_v22 = vsub.f32 %v8827_v52, %v1805_v32  ;;  %v10947_v49 = vand.u32 4294901760, %v8627_v19  ;;  %v10948_v55 = vand.u32 4294901760, %v8598_v4  ;;  %v6829_v45 = vpack.c.bf16 %v1759_v6, %v1747_v34 }
 0x1a9   : > { %v1771_v17 = vand.u32 4294901760, %v1770_v36  ;;  %v8854_v2 = vsub.f32 %v8651_v23, %v8671_v18  ;;  %v10949_v60 = vmov 0.0   ;;  %v6831_v10 = vpack.c.bf16 %v1765_v42, %v1753_v58  ;;  %v466_v23 = vld [vmem:[%s10780_s3 + $0x38] sm:$0xff] }
 0x1aa   : > { %v1667_v13 = vsub.f32 %v8627_v19, %v10947_v49  ;;  %1636 = vmatmul.mubr.f32.vlgmr.msra.gmra.mrb[16].mxu1 %v10948_v55  ;;  %v1776_v47 = vsub.f32 %v8758_v21, %v1775_v54  ;;  %v1799_v50 = vand.u32 4294901760, %v8838_v11  ;;  %v8860_v49 = vand.u32 4294901760, %v8704_v37 }
 0x1ab   : > { %6828 = vmatpush1.bf16.msra.mxu1 %v6827_v35  ;;  %1641 = vmatprep.mubr.f32.mxu1 %v10949_v60  ;;  %v6833_v4 = vpack.c.bf16 %v1783_v48, %v1771_v17  ;;  %v1789_v6 = vand.u32 4294901760, %v1788_v26  ;;  %v1794_v36 = vsub.f32 %v8813_v53, %v1793_v62  ;;  %v1812_v34 = vsub.f32 %v8822_v15, %v1811_v41 }
 0x1ac   : > { %6830 = vmatprep.subr.bf16.mxu1 %v6829_v45  ;;  %v1807_v35 = vand.u32 4294901760, %v1806_v22  ;;  %v10950_v42 = vand.u32 4294901760, %v8719_v5  ;;  %v10951_v58 = vand.u32 4294901760, %v8722_v14  ;;  %v10953_v8 = vand.u32 4294901760, %v8716_v39 }
 0x1ad   : > { %v10954_v48 = vand.u32 4294901760, %v8732_v31  ;;  %v10955_v45 = vand.u32 4294901760, %v8761_v1  ;;  %v10956_v17 = vand.u32 4294901760, %v8751_v29  ;;  %v10957_v22 = vand.u32 4294901760, %v8603_v57 }
 0x1ae   : > { %v8871_v55 = vpack.c.bf16 %v10951_v58, %v10950_v42  ;;  %v10958_v12 = vand.u32 4294901760, %v8755_v61  ;;  %v8891_v42 = vpack.c.bf16 %v1781_v27, %v1769_v30  ;;  %v8893_v58 = vpack.c.bf16 %v1787_v46, %v1775_v54 }
 0x1af   : > { %v8877_v26 = vpack.c.bf16 %v10954_v48, %v10953_v8  ;;  %v8883_v19 = vpack.c.bf16 %v10956_v17, %v10955_v45  ;;  %1647 = vmatmul.mubr.f32.gmra.mrb[18].mxu1 %v10957_v22  ;;  %v1777_v8 = vand.u32 4294901760, %v1776_v47  ;;  %v1800_v48 = vsub.f32 %v8838_v11, %v1799_v50 }
 0x1b0   : > { %10952 = vst [vmem:[#allocation28_spill] sm:$0xff] %v8871_v55  ;;  %v8889_v51 = vpack.c.bf16 %v10958_v12, %v1751_v56  ;;  %v8895_v55 = vpack.c.bf16 %v1805_v32, %v1793_v62  ;;  %6832 = vmatpush1.bf16.msra.mxu1 %v6831_v10  ;;  %1652 = vmatprep.mubr.f32.mxu1 %v10949_v60  ;;  %v1548_v45 = vsel %vm1525_vm2, %v466_v23, 0  ;;  %v1795_v17 = vand.u32 4294901760, %v1794_v36 }
 0x1b1   : > { %v8900_v57 = vpack.c.bf16 %v1811_v41, %v1799_v50  ;;  %6834 = vmatprep.subr.bf16.mxu1 %v6833_v4  ;;  %v6835_v56 = vpack.c.bf16 %v1789_v6, %v1777_v8  ;;  %v1668_v12 = vand.u32 4294901760, %v1667_v13  ;;  %v1813_v30 = vand.u32 4294901760, %v1812_v34 }
 0x1b2   : > { %v10959_v27 = vand.u32 4294901760, %v8663_v59  ;;  %v10960_v32 = vand.u32 4294901760, %v8614_v9  ;;  %v6837_v54 = vpack.c.bf16 %v1807_v35, %v1795_v17  ;;  %v1688_v62 = vand.u32 4294901760, %v8854_v2 }
 0x1b3   : > { %v8910_v10 = vsub.f32 %v8704_v37, %v8860_v49  ;;  %v8912_v50 = vand.u32 4294901760, %v1548_v45  ;;  %v1801_v13 = vand.u32 4294901760, %v1800_v48  ;;  %v6841_v9 = vpack.c.bf16 %v8722_v14, %v8719_v5 }
 0x1b4   : > { %v1678_v46 = vsub.f32 %v8663_v59, %v10959_v27  ;;  %1658 = vmatmul.mubr.f32.gmra.mrb[20].mxu1 %v10960_v32  ;;  %v1689_v4 = vsub.f32 %v8854_v2, %v1688_v62  ;;  %v6843_v22 = vpack.c.bf16 %v8732_v31, %v8716_v39  ;;  %v6845_v8 = vpack.c.bf16 %v8751_v29, %v8761_v1  ;;  %v10963_v31 = vld [vmem:[#allocation5_spill] sm:$0xff] }
 0x1b5   : > { %6836 = vmatpush1.bf16.msra.mxu1 %v6835_v56  ;;  %1663 = vmatprep.mubr.f32.mxu1 %v10949_v60  ;;  %v6839_v41 = vpack.c.bf16 %v1813_v30, %v1801_v13  ;;  %v1699_v37 = vand.u32 4294901760, %v8910_v10  ;;  %v8922_v6 = vsub.f32 %v1548_v45, %v8912_v50  ;;  %v6847_v48 = vpack.c.bf16 %v8755_v61, %v8737_v38  ;;  %v10964_v38 = vld [vmem:[#allocation22_spill] sm:$0xff]  ;;  %v10967_v61 = vld [vmem:[#allocation27_spill] sm:$0xff] }
 0x1b6   : > { %6838 = vmatprep.subr.bf16.mxu1 %v6837_v54  ;;  %v1679_v47 = vand.u32 4294901760, %v1678_v46  ;;  %v1690_v36 = vand.u32 4294901760, %v1689_v4  ;;  %v6849_v45 = vpack.c.bf16 %v8786_v3, %v8775_v28  ;;  %v6851_v39 = vpack.c.bf16 %v8801_v0, %v8758_v21  ;;  %v10965_v3 = vld [vmem:[#allocation26_spill] sm:$0xff]  ;;  %v479_v54 = vld [vmem:[%s10782_s5 + $0x20] sm:$0xff] }
 0x1b7   : > { %v1700_v34 = vsub.f32 %v8910_v10, %v1699_v37  ;;  %v1710_v5 = vand.u32 4294901760, %v8922_v6  ;;  %v6853_v29 = vpack.c.bf16 %v8827_v52, %v8813_v53  ;;  %v6855_v1 = vpack.c.bf16 %v8822_v15, %v8838_v11  ;;  %v10961_v52 = vld [vmem:[#allocation17_spill] sm:$0xff]  ;;  %v10966_v0 = vld [vmem:[#allocation6_spill] sm:$0xff]  ;;  %v10968_v21 = vld [vmem:[#allocation28_spill] sm:$0xff] }
 0x1b8   : > { %1669 = vmatmul.mubr.f32.gmra.mrb[22].mxu1 %v1668_v12  ;;  %v10962_v15 = vld [vmem:[#allocation21_spill] sm:$0xff]  ;;  %v10969_v28 = vand.u32 4294901760, %v8566_v43  ;;  %v10970_v53 = vand.u32 4294901760, %v8569_v44  ;;  %v10971_v11 = vand.u32 4294901760, %v10963_v31  ;;  %v1493_v12 = vpop.permute.xlu1 %1492 }
 0x1b9   : > { %6840 = vmatpush1.bf16.msra.mxu1 %v6839_v41  ;;  %1674 = vmatprep.mubr.f32.mxu1 %v10949_v60  ;;  %v1701_v14 = vand.u32 4294901760, %v1700_v34  ;;  %v1711_v23 = vsub.f32 %v8922_v6, %v1710_v5 }
 0x1ba   : > { %6842 = vmatprep.subr.bf16.mxu1 %v6841_v9  ;;  %v2673_v9 = vsel %vm1525_vm2, %v479_v54, 0 }
 0x1bb   : > { %v1712_v35 = vand.u32 4294901760, %v1711_v23 }
 0x1bc   : > { %1680 = vmatmul.mubr.f32.gmra.mrb[24].mxu1 %v1679_v47 }
 0x1bd   : > { %1685 = vmatprep.mubr.f32.mxu1 %v10949_v60 }
 0x1c0   : > { %1691 = vmatmul.mubr.f32.gmra.mrb[26].mxu1 %v1690_v36 }
 0x1c1   : > { %1696 = vmatprep.mubr.f32.mxu1 %v10949_v60 }
 0x1c4   : > { %1702 = vmatmul.mubr.f32.gmra.mrb[28].mxu1 %v1701_v14 }
 0x1c5   : > { %1707 = vmatprep.mubr.f32.mxu1 %v10949_v60 }
 0x1c8   : > { %1713 = vmatmul.mubr.f32.gmra.mrb[30].mxu1 %v1712_v35 }
 0x1c9   : > { %1863 = vmatprep.mubr.f32.mxu1 %v10949_v60 }
 0x1cc   : > { %1865 = vmatmul.mubr.f32.vlgmr.msra.gmra.mrb[16].mxu1 %v8553_v24 }
 0x1cd   : > { %6844 = vmatpush1.bf16.msra.mxu1 %v6843_v22  ;;  %1870 = vmatprep.mubr.f32.mxu1 %v10949_v60 }
 0x1ce   : > { %6846 = vmatprep.subr.bf16.mxu1 %v6845_v8 }
 0x1d0   : > { %1872 = vmatmul.mubr.f32.gmra.mrb[18].mxu1 %v8555_v25 }
 0x1d1   : > { %6848 = vmatpush1.bf16.msra.mxu1 %v6847_v48  ;;  %1877 = vmatprep.mubr.f32.mxu1 %v10949_v60  ;;  %v9124_v48 = vand.u32 4294901760, %v2673_v9 }
 0x1d2   : > { %6850 = vmatprep.subr.bf16.mxu1 %v6849_v45 }
 0x1d4   : > { %1879 = vmatmul.mubr.f32.gmra.mrb[20].mxu1 %v8559_v33 }
 0x1d5   : > { %6852 = vmatpush1.bf16.msra.mxu1 %v6851_v39  ;;  %1884 = vmatprep.mubr.f32.mxu1 %v10949_v60 }
 0x1d6   : > { %6854 = vmatprep.subr.bf16.mxu1 %v6853_v29  ;;  %v1503_v29 = vpop.permute.xlu1 %1502 }
 0x1d8   : > { %1886 = vmatmul.mubr.f32.gmra.mrb[22].mxu1 %v8592_v20 }
 0x1d9   : > { %6856 = vmatpush1.bf16.msra.mxu1 %v6855_v1  ;;  %1891 = vmatprep.mubr.f32.mxu1 %v10949_v60 }
 0x1da   : > { %6858 = vmatprep.subr.bf16.mxu1 %v8683_v40 }
 0x1dc   : > { %1893 = vmatmul.mubr.f32.gmra.mrb[24].mxu1 %v8645_v7 }
 0x1dd   : > { %1898 = vmatprep.mubr.f32.mxu1 %v10949_v60 }
 0x1e0   : > { %1900 = vmatmul.mubr.f32.gmra.mrb[26].mxu1 %v8671_v18 }
 0x1e1   : > { %1905 = vmatprep.mubr.f32.mxu1 %v10949_v60 }
 0x1e4   : > { %1907 = vmatmul.mubr.f32.gmra.mrb[28].mxu1 %v8860_v49 }
 0x1e5   : > { %1912 = vmatprep.mubr.f32.mxu1 %v10949_v60 }
 0x1e8   : > { %1914 = vmatmul.mubr.f32.gmra.mrb[30].mxu1 %v8912_v50 }
 0x1e9   : > { %2016 = vmatprep.mubr.f32.mxu1 %v10949_v60 }
 0x1ec   : > { %2019 = vmatmul.mubr.f32.vlgmr.msra.gmra.mrb[16].mxu1 %v8566_v43  ;;  %v10972_v43 = vand.u32 4294901760, %v10966_v0 }
 0x1ed   : > { %6860 = vmatpush1.bf16.msra.mxu1 %v8701_v63  ;;  %2024 = vmatprep.mubr.f32.mxu1 %v10949_v60 }
 0x1ee   : > { %6862 = vmatprep.subr.bf16.mxu1 %v8724_v16 }
 0x1f0   : > { %2027 = vmatmul.mubr.f32.gmra.mrb[18].mxu1 %v8569_v44  ;;  %v10973_v44 = vmov %v10959_v27 }
 0x1f1   : > { %6864 = vmatpush1.bf16.msra.mxu1 %v10961_v52  ;;  %2032 = vmatprep.mubr.f32.mxu1 %v10949_v60 }
 0x1f2   : > { %6866 = vmatprep.subr.bf16.mxu1 %v10962_v15 }
 0x1f4   : > { %2035 = vmatmul.mubr.f32.gmra.mrb[20].mxu1 %v10963_v31 }
 0x1f5   : > { %6868 = vmatpush1.bf16.msra.mxu1 %v10964_v38  ;;  %2040 = vmatprep.mubr.f32.mxu1 %v10949_v60 }
 0x1f6   : > { %6870 = vmatprep.subr.bf16.mxu1 %v10965_v3 }
 0x1f8   : > { %2043 = vmatmul.mubr.f32.gmra.mrb[22].mxu1 %v10966_v0 }
 0x1f9   : > { %6872 = vmatpush1.bf16.msra.mxu1 %v10967_v61  ;;  %2048 = vmatprep.mubr.f32.mxu1 %v10949_v60 }
 0x1fa   : > { %6874 = vmatprep.subr.bf16.mxu1 %v10968_v21 }
 0x1fc   : > { %2051 = vmatmul.mubr.f32.gmra.mrb[24].mxu1 %v8663_v59 }
 0x1fd   : > { %2056 = vmatprep.mubr.f32.mxu1 %v10949_v60 }
 0x200   : > { %2059 = vmatmul.mubr.f32.gmra.mrb[26].mxu1 %v8854_v2  ;;  %v475_v2 = vld [vmem:[%s10782_s5] sm:$0xff] }
 0x201   : > { %2064 = vmatprep.mubr.f32.mxu1 %v10949_v60 }
 0x204   : > { %2067 = vmatmul.mubr.f32.gmra.mrb[28].mxu1 %v8910_v10 }
 0x205   : > { %2072 = vmatprep.mubr.f32.mxu1 %v10949_v60 }
 0x208   : > { %2075 = vmatmul.mubr.f32.gmra.mrb[30].mxu1 %v8922_v6 }
 0x209   : > { %2161 = vmatprep.mubr.f32.mxu1 %v10949_v60 }
 0x20c   : > { %2165 = vmatmul.mubr.f32.vlgmr.msra.gmra.mrb[16].mxu1 %v10969_v28  ;;  %v9138_v28 = vsub.f32 %v2673_v9, %v9124_v48  ;;  %v1513_v9 = vpop.permute.xlu1 %1512 }
 0x20d   : > { %6876 = vmatpush1.bf16.msra.mxu1 %v8877_v26  ;;  %2170 = vmatprep.mubr.f32.mxu1 %v10949_v60 }
 0x20e   : > { %6878 = vmatprep.subr.bf16.mxu1 %v8883_v19 }
 0x210   : > { %2174 = vmatmul.mubr.f32.gmra.mrb[18].mxu1 %v10970_v53 }
 0x211   : > { %6880 = vmatpush1.bf16.msra.mxu1 %v8889_v51  ;;  %2179 = vmatprep.mubr.f32.mxu1 %v10949_v60 }
 0x212   : > { %6882 = vmatprep.subr.bf16.mxu1 %v8891_v42 }
 0x214   : > { %2183 = vmatmul.mubr.f32.gmra.mrb[20].mxu1 %v10971_v11 }
 0x215   : > { %6884 = vmatpush1.bf16.msra.mxu1 %v8893_v58  ;;  %2188 = vmatprep.mubr.f32.mxu1 %v10949_v60 }
 0x216   : > { %6886 = vmatprep.subr.bf16.mxu1 %v8895_v55 }
 0x218   : > { %2192 = vmatmul.mubr.f32.gmra.mrb[22].mxu1 %v10972_v43 }
 0x219   : > { %6888 = vmatpush1.bf16.msra.mxu1 %v8900_v57  ;;  %2197 = vmatprep.mubr.f32.mxu1 %v10949_v60 }
 0x21a   : > { %6890 = vmatprep.subr.bf16.mxu1 %v8683_v40 }
 0x21c   : > { %2201 = vmatmul.mubr.f32.gmra.mrb[24].mxu1 %v10973_v44 }
 0x21d   : > { %2206 = vmatprep.mubr.f32.mxu1 %v10949_v60 }
 0x220   : > { %2210 = vmatmul.mubr.f32.gmra.mrb[26].mxu1 %v1688_v62 }
 0x221   : > { %2215 = vmatprep.mubr.f32.mxu1 %v10949_v60 }
 0x224   : > { %2219 = vmatmul.mubr.f32.gmra.mrb[28].mxu1 %v1699_v37 }
 0x225   : > { %2224 = vmatprep.mubr.f32.mxu1 %v10949_v60 }
 0x228   : > { %2228 = vmatmul.mubr.f32.gmra.mrb[30].mxu1 %v1710_v5  ;;  %v480_v5 = vld [vmem:[%s10782_s5 + $0x28] sm:$0xff] }
 0x229   : > { %2346 = vmatprep.mubr.f32.mxu1 %v10949_v60  ;;  %v9127_v39 = vsel %vm1525_vm2, %v480_v5, 0 }
 0x22a   : > { %v9141_v53 = vand.u32 4294901760, %v9127_v39 }
 0x22c   : > { %2348 = vmatmul.mubr.f32.vlgmr.msra.gmra.mrb[16].mxu1 %v8553_v24 }
 0x22d   : > { %6892 = vmatpush1.bf16.msra.mxu1 %v8701_v63  ;;  %2353 = vmatprep.mubr.f32.mxu1 %v10949_v60 }
 0x22e   : > { %6894 = vmatprep.subr.bf16.mxu1 %v8724_v16  ;;  %v1488_v16 = vpop.permute.xlu0 %1487 }
 0x230   : > { %2355 = vmatmul.mubr.f32.gmra.mrb[18].mxu1 %v8555_v25 }
 0x231   : > { %6896 = vmatpush1.bf16.msra.mxu1 %v10961_v52  ;;  %2360 = vmatprep.mubr.f32.mxu1 %v10949_v60 }
 0x232   : > { %6898 = vmatprep.subr.bf16.mxu1 %v10962_v15  ;;  %v1498_v4 = vpop.permute.xlu0 %1497 }
 0x234   : > { %2362 = vmatmul.mubr.f32.gmra.mrb[20].mxu1 %v8559_v33 }
 0x235   : > { %6900 = vmatpush1.bf16.msra.mxu1 %v10964_v38  ;;  %2367 = vmatprep.mubr.f32.mxu1 %v10949_v60 }
 0x236   : > { %6902 = vmatprep.subr.bf16.mxu1 %v10965_v3 }
 0x238   : > { %2369 = vmatmul.mubr.f32.gmra.mrb[22].mxu1 %v8592_v20 }
 0x239   : > { %6904 = vmatpush1.bf16.msra.mxu1 %v10967_v61  ;;  %2374 = vmatprep.mubr.f32.mxu1 %v10949_v60 }
 0x23c   : > { %2376 = vmatmul.mubr.f32.gmra.mrb[24].mxu1 %v8645_v7 }
 0x23d   : > { %2381 = vmatprep.mubr.f32.mxu1 %v10949_v60 }
 0x240   : > { %2383 = vmatmul.mubr.f32.gmra.mrb[26].mxu1 %v8671_v18 }
 0x241   : > { %2388 = vmatprep.mubr.f32.mxu1 %v10949_v60 }
 0x244   : > { %2390 = vmatmul.mubr.f32.gmra.mrb[28].mxu1 %v8860_v49 }
 0x245   : > { %2395 = vmatprep.mubr.f32.mxu1 %v10949_v60 }
 0x248   : > { %2397 = vmatmul.mubr.f32.gmra.mrb[30].mxu1 %v8912_v50 }
 0x249   : > { %2483 = vmatprep.mubr.f32.mxu1 %v10949_v60 }
 0x24c   : > { %2485 = vmatmul.mubr.f32.vlgmr.msra.gmra.mrb[16].mxu1 %v8553_v24  ;;  %v476_v24 = vld [vmem:[%s10782_s5 + $0x8] sm:$0xff] }
 0x24d   : > { %2490 = vmatprep.mubr.f32.mxu1 %v10949_v60 }
 0x250   : > { %2492 = vmatmul.mubr.f32.gmra.mrb[18].mxu1 %v8555_v25  ;;  %v477_v25 = vld [vmem:[%s10782_s5 + $0x10] sm:$0xff] }
 0x251   : > { %2497 = vmatprep.mubr.f32.mxu1 %v10949_v60  ;;  %v2667_v19 = vsel %vm1525_vm2, %v477_v25, 0 }
 0x252   : > { %v9081_v40 = vand.u32 4294901760, %v2667_v19 }
 0x254   : > { %2499 = vmatmul.mubr.f32.gmra.mrb[20].mxu1 %v8559_v33  ;;  %v2661_v33 = vsel %vm1525_vm2, %v475_v2, 0  ;;  %v9091_v58 = vsub.f32 %v2667_v19, %v9081_v40 }
 0x255   : > { %2504 = vmatprep.mubr.f32.mxu1 %v10949_v60  ;;  %v9077_v59 = vand.u32 4294901760, %v2661_v33 }
 0x258   : > { %2506 = vmatmul.mubr.f32.gmra.mrb[22].mxu1 %v8592_v20  ;;  %v2664_v20 = vsel %vm1525_vm2, %v476_v24, 0 }
 0x259   : > { %2511 = vmatprep.mubr.f32.mxu1 %v10949_v60 }
 0x25c   : > { %2513 = vmatmul.mubr.f32.gmra.mrb[24].mxu1 %v8645_v7  ;;  %v478_v7 = vld [vmem:[%s10782_s5 + $0x18] sm:$0xff] }
 0x25d   : > { %2518 = vmatprep.mubr.f32.mxu1 %v10949_v60  ;;  %v2670_v63 = vsel %vm1525_vm2, %v478_v7, 0 }
 0x25e   : > { %v9093_v57 = vand.u32 4294901760, %v2670_v63 }
 0x260   : > { %2520 = vmatmul.mubr.f32.gmra.mrb[26].mxu1 %v8671_v18  ;;  %v9079_v18 = vand.u32 4294901760, %v2664_v20  ;;  %v9102_v13 = vsub.f32 %v2670_v63, %v9093_v57 }
 0x261   : > { %2525 = vmatprep.mubr.f32.mxu1 %v10949_v60 }
 0x262   : > { %v9088_v55 = vsub.f32 %v2664_v20, %v9079_v18  ;;  %10974 = vst [vmem:[#allocation17_spill] sm:$0xff] %v9102_v13  ;;  %v10829_v22 = vand.u32 4294901760, %v9102_v13 }
 0x264   : > { %2527 = vmatmul.mubr.f32.gmra.mrb[28].mxu1 %v8860_v49  ;;  %v9085_v49 = vsub.f32 %v2661_v33, %v9077_v59  ;;  %v10831_v32 = vand.u32 4294901760, %v9088_v55  ;;  %v9135_v61 = vsub.f32 %v9102_v13, %v10829_v22  ;;  %v1508_v33 = vpop.permute.xlu0 %1507 }
 0x265   : > { %2532 = vmatprep.mubr.f32.mxu1 %v10949_v60 }
 0x266   : > { %v10832_v46 = vand.u32 4294901760, %v9085_v49  ;;  %v9113_v34 = vsub.f32 %v9088_v55, %v10831_v32 }
 0x268   : > { %2534 = vmatmul.mubr.f32.gmra.mrb[30].mxu1 %v8912_v50  ;;  %v10830_v50 = vand.u32 4294901760, %v9091_v58  ;;  %v9108_v36 = vsub.f32 %v9085_v49, %v10832_v46 }
 0x269   : > { %3914 = vmatprep.mubr.f32.mxu1 %v10949_v60 }
 0x26a   : > { %v9121_v35 = vsub.f32 %v9091_v58, %v10830_v50 }
 0x31f   : > { %v2486_v51 = vpop.f32.mrb[16].mxu1 }
 0x320   : > { %v7323_v26 = vadd.f32 %v2486_v51, %v1488_v16  ;;  %v2488_v42 = vpop.f32.mrb[17].mxu1 }
 0x321   : > { %v7324_v17 = vadd.f32 %v2488_v42, %v1488_v16 }
 0x322   : > { %v2556_v56 = vmul.f32 0.70710677, %v7323_v26  ;;  %v2540_v43 = vmul.f32 0.5, %v7323_v26 }
 0x323   : > { %v2557_v30 = vmul.f32 0.70710677, %v7324_v17  ;;  %v2493_v27 = vpop.f32.mrb[18].mxu1  ;;  %v2541_v44 = vmul.f32 0.5, %v7324_v17 }
 0x324   : > { %7859 = verf.f32 %v2556_v56  ;;  %v7325_v62 = vadd.f32 %v2493_v27, %v1493_v12  ;;  %v2495_v10 = vpop.f32.mrb[19].mxu1 }
 0x325   : > { %7861 = verf.f32 %v2557_v30  ;;  %v7326_v41 = vadd.f32 %v2495_v10, %v1493_v12 }
 0x326   : > { %v2558_v47 = vmul.f32 0.70710677, %v7325_v62  ;;  %v2542_v2 = vmul.f32 0.5, %v7325_v62 }
 0x327   : > { %v2559_v37 = vmul.f32 0.70710677, %v7326_v41  ;;  %v2500_v6 = vpop.f32.mrb[20].mxu1  ;;  %v2543_v19 = vmul.f32 0.5, %v7326_v41 }
 0x328   : > { %7863 = verf.f32 %v2558_v47  ;;  %v7327_v14 = vadd.f32 %v2500_v6, %v1498_v4  ;;  %v2502_v23 = vpop.f32.mrb[21].mxu1 }
 0x329   : > { %7865 = verf.f32 %v2559_v37  ;;  %v7328_v8 = vadd.f32 %v2502_v23, %v1498_v4 }
 0x32a   : > { %v2560_v45 = vmul.f32 0.70710677, %v7327_v14  ;;  %v2544_v7 = vmul.f32 0.5, %v7327_v14 }
 0x32b   : > { %v2561_v1 = vmul.f32 0.70710677, %v7328_v8  ;;  %v2507_v52 = vpop.f32.mrb[22].mxu1  ;;  %v2545_v42 = vmul.f32 0.5, %v7328_v8 }
 0x32c   : > { %7867 = verf.f32 %v2560_v45  ;;  %v7329_v38 = vadd.f32 %v2507_v52, %v1503_v29  ;;  %v2509_v3 = vpop.f32.mrb[23].mxu1 }
 0x32d   : > { %7869 = verf.f32 %v2561_v1  ;;  %v7330_v21 = vadd.f32 %v2509_v3, %v1503_v29 }
 0x32e   : > { %v7860_v11 = vpop.eup %7859  ;;  %v2562_v24 = vmul.f32 0.70710677, %v7329_v38  ;;  %v9145_v27 = vmul.f32 0.5, %v7329_v38 }
 0x32f   : > { %v7862_v25 = vpop.eup %7861  ;;  %v2588_v20 = vadd.f32 1.0, %v7860_v11  ;;  %v2563_v63 = vmul.f32 0.70710677, %v7330_v21  ;;  %v2514_v16 = vpop.f32.mrb[24].mxu1  ;;  %v2547_v62 = vmul.f32 0.5, %v7330_v21 }
 0x330   : > { %v2589_v51 = vadd.f32 1.0, %v7862_v25  ;;  %7871 = verf.f32 %v2562_v24  ;;  %v7331_v56 = vadd.f32 %v2514_v16, %v1508_v33  ;;  %v2516_v12 = vpop.f32.mrb[25].mxu1  ;;  %v1518_v25 = vpop.permute.xlu0 %1517 }
 0x331   : > { %v9143_v30 = vmul.f32 %v2588_v20, %v2540_v43  ;;  %7873 = verf.f32 %v2563_v63  ;;  %v7332_v26 = vadd.f32 %v2516_v12, %v1508_v33 }
 0x332   : > { %v7864_v17 = vpop.eup %7863  ;;  %v2605_v54 = vmul.f32 %v2589_v51, %v2541_v44  ;;  %v9147_v10 = vmul.f32 0.5, %v7331_v56  ;;  %v2564_v41 = vmul.f32 0.70710677, %v7331_v56 }
 0x333   : > { %v7866_v47 = vpop.eup %7865  ;;  %v2686_v4 = vand.u32 4294901760, %v9143_v30  ;;  %v2590_v37 = vadd.f32 1.0, %v7864_v17  ;;  %v9150_v6 = vmul.f32 0.5, %v7332_v26  ;;  %v2565_v5 = vmul.f32 0.70710677, %v7332_v26  ;;  %v2521_v14 = vpop.f32.mrb[26].mxu1 }
 0x334   : > { %v2591_v23 = vadd.f32 1.0, %v7866_v47  ;;  %7875 = verf.f32 %v2564_v41  ;;  %v7333_v8 = vadd.f32 %v2521_v14, %v1513_v9  ;;  %v2523_v45 = vpop.f32.mrb[27].mxu1  ;;  %v2684_v29 = vand.u32 4294901760, %v2605_v54 }
 0x335   : > { %v9155_v1 = vsub.f32 %v9143_v30, %v2686_v4  ;;  %v9157_v52 = vmul.f32 %v2590_v37, %v2542_v2  ;;  %7877 = verf.f32 %v2565_v5  ;;  %v7334_v38 = vadd.f32 %v2523_v45, %v1513_v9 }
 0x336   : > { %v7868_v3 = vpop.eup %7867  ;;  %v2607_v21 = vmul.f32 %v2591_v23, %v2543_v19  ;;  %v9159_v11 = vmul.f32 0.5, %v7333_v8  ;;  %v2566_v43 = vmul.f32 0.70710677, %v7333_v8  ;;  %v9161_v44 = vsub.f32 %v2605_v54, %v2684_v29  ;;  %v1523_v23 = vpop.permute.xlu1 %1522 }
 0x337   : > { %v7870_v24 = vpop.eup %7869  ;;  %v10834_v33 = vand.u32 4294901760, %v9155_v1  ;;  %v2690_v20 = vand.u32 4294901760, %v9157_v52  ;;  %v2592_v63 = vadd.f32 1.0, %v7868_v3  ;;  %v9165_v16 = vmul.f32 0.5, %v7334_v38  ;;  %v2528_v2 = vpop.f32.mrb[28].mxu1 }
 0x338   : > { %v2593_v51 = vadd.f32 1.0, %v7870_v24  ;;  %7879 = verf.f32 %v2566_v43  ;;  %v2567_v56 = vmul.f32 0.70710677, %v7334_v38  ;;  %v7335_v12 = vadd.f32 %v2528_v2, %v1518_v25  ;;  %v2530_v19 = vpop.f32.mrb[29].mxu1 }
 0x339   : > { %v9168_v26 = vsub.f32 %v9157_v52, %v2690_v20  ;;  %v2608_v17 = vmul.f32 %v2592_v63, %v2544_v7  ;;  %v7336_v54 = vadd.f32 %v2530_v19, %v1518_v25  ;;  %v2688_v41 = vand.u32 4294901760, %v2607_v21 }
 0x33a   : > { %v7872_v47 = vpop.eup %7871  ;;  %v2609_v9 = vmul.f32 %v2593_v51, %v2545_v42  ;;  %7881 = verf.f32 %v2567_v56  ;;  %v9170_v37 = vmul.f32 0.5, %v7335_v12  ;;  %v2568_v5 = vmul.f32 0.70710677, %v7335_v12 }
 0x33b   : > { %v7874_v14 = vpop.eup %7873  ;;  %v10833_v8 = vand.u32 4294901760, %v9168_v26  ;;  %v2694_v45 = vand.u32 4294901760, %v2608_v17  ;;  %v2594_v38 = vadd.f32 1.0, %v7872_v47  ;;  %v9173_v3 = vmul.f32 0.5, %v7336_v54  ;;  %v2535_v43 = vpop.f32.mrb[30].mxu1 }
 0x33c   : > { %v2595_v52 = vadd.f32 1.0, %v7874_v14  ;;  %7883 = verf.f32 %v2568_v5  ;;  %v2569_v7 = vmul.f32 0.70710677, %v7336_v54  ;;  %v7337_v24 = vadd.f32 %v2535_v43, %v1523_v23  ;;  %v2537_v25 = vpop.f32.mrb[31].mxu1 }
 0x33d   : > { %v9175_v63 = vsub.f32 %v2608_v17, %v2694_v45  ;;  %v2610_v42 = vmul.f32 %v2594_v38, %v9145_v27  ;;  %v7338_v2 = vadd.f32 %v2537_v25, %v1523_v23  ;;  %v9178_v51 = vpack.c.bf16 %v2688_v41, %v2684_v29 }
 0x33e   : > { %v7876_v56 = vpop.eup %7875  ;;  %v2611_v12 = vmul.f32 %v2595_v52, %v2547_v62  ;;  %7885 = verf.f32 %v2569_v7  ;;  %v9180_v19 = vmul.f32 0.5, %v7337_v24  ;;  %v2570_v47 = vmul.f32 0.70710677, %v7337_v24 }
 0x33f   : > { %v7878_v22 = vpop.eup %7877  ;;  %v10838_v14 = vand.u32 4294901760, %v9175_v63  ;;  %v2698_v5 = vand.u32 4294901760, %v2610_v42  ;;  %v2596_v54 = vadd.f32 1.0, %v7876_v56  ;;  %v9183_v43 = vmul.f32 0.5, %v7338_v2  ;;  %6906 = vmatprep.subr.bf16.mxu0 %v9178_v51 }
 0x340   : > { %v2597_v17 = vadd.f32 1.0, %v7878_v22  ;;  %7887 = verf.f32 %v2570_v47  ;;  %v2571_v27 = vmul.f32 0.70710677, %v7338_v2  ;;  %v9186_v29 = vsub.f32 %v2607_v21, %v2688_v41 }
 0x341   : > { %v9188_v23 = vsub.f32 %v2610_v42, %v2698_v5  ;;  %v2612_v62 = vmul.f32 %v2596_v54, %v9147_v10  ;;  %v9193_v38 = vpack.c.bf16 %v2690_v20, %v2686_v4  ;;  %v2692_v52 = vand.u32 4294901760, %v2609_v9 }
 0x342   : > { %v7880_v7 = vpop.eup %7879  ;;  %v2613_v24 = vmul.f32 %v2597_v17, %v9150_v6  ;;  %7889 = verf.f32 %v2571_v27  ;;  %v2696_v25 = vand.u32 4294901760, %v2611_v12  ;;  %v9196_v56 = vpack.c.bf16 %v2698_v5, %v2694_v45 }
 0x343   : > { %v10837_v22 = vand.u32 4294901760, %v9188_v23  ;;  %v2702_v21 = vand.u32 4294901760, %v2612_v62  ;;  %v2598_v41 = vadd.f32 1.0, %v7880_v7  ;;  %6908 = vmatpush1.bf16.msra.mxu0 %v9193_v38  ;;  %v9200_v42 = vsub.f32 %v2609_v9, %v2692_v52 }
 0x344   : > { %v7882_v10 = vpop.eup %7881  ;;  %v9202_v30 = vpack.c.bf16 %v2696_v25, %v2692_v52  ;;  %v9204_v4 = vsub.f32 %v2611_v12, %v2696_v25  ;;  %v2700_v20 = vand.u32 4294901760, %v2613_v24  ;;  %v10835_v6 = vand.u32 4294901760, %v9161_v44 }
 0x345   : > { %v9207_v2 = vsub.f32 %v2612_v62, %v2702_v21  ;;  %v2614_v45 = vmul.f32 %v2598_v41, %v9159_v11  ;;  %v2599_v47 = vadd.f32 1.0, %v7882_v10  ;;  %v10836_v5 = vand.u32 4294901760, %v9186_v29 }
 0x346   : > { %v7884_v54 = vpop.eup %7883  ;;  %6910 = vmatprep.subr.bf16.mxu0 %v9202_v30  ;;  %v9212_v9 = vsub.f32 %v2613_v24, %v2700_v20  ;;  %v2856_v12 = vsub.f32 %v9161_v44, %v10835_v6  ;;  %v2862_v17 = vsub.f32 %v9155_v1, %v10834_v33  ;;  %v2874_v11 = vsub.f32 %v9168_v26, %v10833_v8 }
 0x347   : > { %v10841_v27 = vand.u32 4294901760, %v9207_v2  ;;  %v2706_v62 = vand.u32 4294901760, %v2614_v45  ;;  %v2615_v52 = vmul.f32 %v2599_v47, %v9165_v16  ;;  %v2600_v7 = vadd.f32 1.0, %v7884_v54  ;;  %6912 = vmatpush1.bf16.msra.mxu0 %v9196_v56 }
 0x348   : > { %v7886_v24 = vpop.eup %7885  ;;  %v2857_v25 = vand.u32 4294901760, %v2856_v12  ;;  %v2868_v41 = vsub.f32 %v9186_v29, %v10836_v5  ;;  %v2863_v10 = vand.u32 4294901760, %v2862_v17  ;;  %v2875_v50 = vand.u32 4294901760, %v2874_v11 }
 0x349   : > { %v9229_v32 = vsub.f32 %v2614_v45, %v2706_v62  ;;  %v2616_v46 = vmul.f32 %v2600_v7, %v9170_v37  ;;  %v2601_v0 = vadd.f32 1.0, %v7886_v24  ;;  %v2704_v31 = vand.u32 4294901760, %v2615_v52 }
 0x34a   : > { %v7888_v8 = vpop.eup %7887  ;;  %v9232_v33 = vpack.c.bf16 %v2706_v62, %v2702_v21  ;;  %v2869_v16 = vand.u32 4294901760, %v2868_v41  ;;  %v9234_v47 = vpack.c.bf16 %v2875_v50, %v2863_v10  ;;  %v10839_v54 = vand.u32 4294901760, %v9200_v42 }
 0x34b   : > { %v10842_v12 = vand.u32 4294901760, %v9229_v32  ;;  %v2710_v6 = vand.u32 4294901760, %v2616_v46  ;;  %v2617_v17 = vmul.f32 %v2601_v0, %v9173_v3  ;;  %v2602_v11 = vadd.f32 1.0, %v7888_v8 }
 0x34c   : > { %v7890_v45 = vpop.eup %7889  ;;  %v9239_v5 = vpack.c.bf16 %v2704_v31, %v2700_v20  ;;  %v9241_v37 = vsub.f32 %v2615_v52, %v2704_v31  ;;  %v6921_v7 = vpack.c.bf16 %v2869_v16, %v2857_v25  ;;  %v2880_v21 = vsub.f32 %v9200_v42, %v10839_v54 }
 0x34d   : > { %v9246_v50 = vsub.f32 %v2616_v46, %v2710_v6  ;;  %v2618_v62 = vmul.f32 %v2602_v11, %v9180_v19  ;;  %v2603_v24 = vadd.f32 1.0, %v7890_v45  ;;  %v2708_v41 = vand.u32 4294901760, %v2617_v17 }
 0x34e   : > { %6914 = vmatprep.subr.bf16.mxu0 %v9239_v5  ;;  %v2881_v0 = vand.u32 4294901760, %v2880_v21  ;;  %v10840_v8 = vand.u32 4294901760, %v9204_v4  ;;  %v2886_v31 = vsub.f32 %v9175_v63, %v10838_v14  ;;  %v2898_v3 = vsub.f32 %v9188_v23, %v10837_v22 }
 0x34f   : > { %v10843_v46 = vand.u32 4294901760, %v9246_v50  ;;  %v2714_v20 = vand.u32 4294901760, %v2618_v62  ;;  %v2619_v19 = vmul.f32 %v2603_v24, %v9183_v43  ;;  %6916 = vmatpush1.bf16.msra.mxu0 %v9232_v33  ;;  %v9260_v52 = vsub.f32 %v2617_v17, %v2708_v41 }
 0x350   : > { %v2892_v25 = vsub.f32 %v9204_v4, %v10840_v8  ;;  %v2887_v10 = vand.u32 4294901760, %v2886_v31  ;;  %v2899_v16 = vand.u32 4294901760, %v2898_v3  ;;  %v2903_v11 = vand.u32 4294901760, %v9212_v9 }
 0x351   : > { %v9266_v45 = vsub.f32 %v2618_v62, %v2714_v20  ;;  %v2712_v21 = vand.u32 4294901760, %v2619_v19  ;;  %v9268_v22 = vpack.c.bf16 %v2714_v20, %v2710_v6  ;;  %v2915_v14 = vand.u32 4294901760, %v9241_v37 }
 0x352   : > { %v2893_v43 = vand.u32 4294901760, %v2892_v25  ;;  %v6927_v24 = vpack.c.bf16 %v2899_v16, %v2887_v10  ;;  %v2904_v17 = vsub.f32 %v9212_v9, %v2903_v11  ;;  %v2910_v54 = vsub.f32 %v9207_v2, %v10841_v27 }
 0x353   : > { %10975 = vst [vmem:[#allocation21_spill] sm:$0xff] %v9268_v22  ;;  %v2945_v31 = vand.u32 4294901760, %v9266_v45  ;;  %v9276_v3 = vpack.c.bf16 %v2712_v21, %v2708_v41  ;;  %v9278_v8 = vsub.f32 %v2619_v19, %v2712_v21  ;;  %v2916_v62 = vsub.f32 %v9241_v37, %v2915_v14 }
 0x354   : > { %v6925_v6 = vpack.c.bf16 %v2893_v43, %v2881_v0  ;;  %v2905_v20 = vand.u32 4294901760, %v2904_v17  ;;  %v2911_v15 = vand.u32 4294901760, %v2910_v54  ;;  %v2922_v25 = vsub.f32 %v9229_v32, %v10842_v12 }
 0x355   : > { %10976 = vst [vmem:[#allocation5_spill] sm:$0xff] %v9276_v3  ;;  %6918 = vmatprep.subr.bf16.mxu0 %v9276_v3  ;;  %v2917_v10 = vand.u32 4294901760, %v2916_v62  ;;  %v2927_v16 = vand.u32 4294901760, %v9260_v52  ;;  %v2939_v27 = vand.u32 4294901760, %v9278_v8  ;;  %v2934_v41 = vsub.f32 %v9246_v50, %v10843_v46  ;;  %v481_v46 = vld [vmem:[%s10782_s5 + $0x30] sm:$0xff] }
 0x356   : > { %6920 = vmatpush1.bf16.msra.mxu0 %v9268_v22  ;;  %v2923_v0 = vand.u32 4294901760, %v2922_v25  ;;  %v2946_v54 = vsub.f32 %v9266_v45, %v2945_v31  ;;  %v6937_v19 = vpack.c.bf16 %v9186_v29, %v9161_v44  ;;  %v6941_v13 = vpack.c.bf16 %v9204_v4, %v9200_v42 }
 0x357   : > { %6922 = vmatprep.subr.bf16.mxu0 %v6921_v7  ;;  %v6929_v43 = vpack.c.bf16 %v2917_v10, %v2905_v20  ;;  %v2928_v17 = vsub.f32 %v9260_v52, %v2927_v16  ;;  %v2940_v62 = vsub.f32 %v9278_v8, %v2939_v27  ;;  %v2935_v12 = vand.u32 4294901760, %v2934_v41 }
 0x358   : > { %v6931_v25 = vpack.c.bf16 %v2923_v0, %v2911_v15  ;;  %v2947_v22 = vand.u32 4294901760, %v2946_v54  ;;  %v6943_v3 = vpack.c.bf16 %v9188_v23, %v9175_v63  ;;  %v10977_v7 = vand.u32 4294901760, %v9108_v36 }
 0x359   : > { %v2929_v20 = vand.u32 4294901760, %v2928_v17  ;;  %v2941_v10 = vand.u32 4294901760, %v2940_v62  ;;  %v6945_v41 = vpack.c.bf16 %v9241_v37, %v9212_v9  ;;  %v2679_v0 = vsel %vm1525_vm2, %v481_v46, 0  ;;  %v482_v62 = vld [vmem:[%s10782_s5 + $0x38] sm:$0xff]  ;;  %v2628_v9 = vpop.permute.xlu1 %2627 }
 0x35a   : > { %2770 = vmatmul.mubr.f32.vlgmr.msra.gmra.mrb[16].mxu0 %v10977_v7  ;;  %v6935_v15 = vpack.c.bf16 %v2947_v22, %v2935_v12  ;;  %v6949_v54 = vpack.c.bf16 %v9278_v8, %v9260_v52  ;;  %v10978_v7 = vand.u32 4294901760, %v9161_v44  ;;  %v10980_v22 = vand.u32 4294901760, %v9155_v1  ;;  %v11002_v37 = vld [vmem:[#allocation7_spill] sm:$0xff] }
 0x35b   : > { %6924 = vmatpush1.bf16.msra.mxu0 %v9234_v47  ;;  %2775 = vmatprep.mubr.f32.mxu0 %v10949_v60  ;;  %v6933_v17 = vpack.c.bf16 %v2941_v10, %v2929_v20  ;;  %v10979_v47 = vand.u32 4294901760, %v9186_v29  ;;  %v10981_v12 = vand.u32 4294901760, %v9168_v26  ;;  %v10982_v46 = vand.u32 4294901760, %v9200_v42 }
 0x35c   : > { %6926 = vmatprep.subr.bf16.mxu0 %v6925_v6  ;;  %v10983_v52 = vand.u32 4294901760, %v9204_v4  ;;  %v10984_v20 = vand.u32 4294901760, %v9175_v63  ;;  %v10985_v44 = vand.u32 4294901760, %v9188_v23  ;;  %v9345_v29 = vpack.c.bf16 %v2915_v14, %v2903_v11  ;;  %v10996_v63 = vld [vmem:[#allocation21_spill] sm:$0xff] }
 0x35d   : > { %v9325_v21 = vpack.c.bf16 %v10979_v47, %v10978_v7  ;;  %v9331_v8 = vpack.c.bf16 %v10981_v12, %v10980_v22  ;;  %v10986_v7 = vand.u32 4294901760, %v9207_v2  ;;  %v10987_v47 = vand.u32 4294901760, %v9229_v32 }
 0x35e   : > { %v9337_v6 = vpack.c.bf16 %v10983_v52, %v10982_v46  ;;  %v9343_v10 = vpack.c.bf16 %v10985_v44, %v10984_v20  ;;  %v9353_v12 = vpack.c.bf16 %v2939_v27, %v2927_v16  ;;  %v10988_v36 = vand.u32 4294901760, %v9113_v34 }
 0x35f   : > { %v9351_v22 = vpack.c.bf16 %v10987_v47, %v10986_v7  ;;  %v2811_v46 = vand.u32 4294901760, %v9138_v28  ;;  %v9360_v52 = vsub.f32 %v9127_v39, %v9141_v53  ;;  %v9362_v20 = vand.u32 4294901760, %v2679_v0  ;;  %6928 = vmatpush1.bf16.msra.mxu0 %v6927_v24 }
 0x360   : > { %2781 = vmatmul.mubr.f32.gmra.mrb[18].mxu0 %v10988_v36  ;;  %v10989_v14 = vand.u32 4294901760, %v9246_v50  ;;  %v2682_v27 = vsel %vm1525_vm2, %v482_v62, 0  ;;  %6930 = vmatprep.subr.bf16.mxu0 %v6929_v43  ;;  %v2802_v34 = vand.u32 4294901760, %v9135_v61  ;;  %v10990_v16 = vand.u32 4294901760, %v9121_v35 }
 0x361   : > { %2786 = vmatprep.mubr.f32.mxu0 %v10949_v60  ;;  %v2812_v39 = vsub.f32 %v9138_v28, %v2811_v46  ;;  %v2822_v36 = vand.u32 4294901760, %v9360_v52  ;;  %v9380_v24 = vand.u32 4294901760, %v2682_v27  ;;  %v10997_v23 = vand.u32 4294901760, %v9085_v49 }
 0x362   : > { %v9366_v11 = vpack.c.bf16 %v2945_v31, %v10989_v14  ;;  %v9378_v31 = vsub.f32 %v2679_v0, %v9362_v20  ;;  %v10998_v42 = vand.u32 4294901760, %v9088_v55  ;;  %v10999_v4 = vand.u32 4294901760, %v9091_v58 }
 0x363   : > { %6932 = vmatpush1.bf16.msra.mxu0 %v6931_v25  ;;  %v2813_v61 = vand.u32 4294901760, %v2812_v39  ;;  %v2823_v35 = vsub.f32 %v9360_v52, %v2822_v36  ;;  %v9388_v62 = vsub.f32 %v2682_v27, %v9380_v24 }
 0x364   : > { %2792 = vmatmul.mubr.f32.gmra.mrb[20].mxu0 %v10990_v16  ;;  %6934 = vmatprep.subr.bf16.mxu0 %v6933_v17  ;;  %v2833_v43 = vand.u32 4294901760, %v9378_v31 }
 0x365   : > { %2797 = vmatprep.mubr.f32.mxu0 %v10949_v60  ;;  %v2824_v25 = vand.u32 4294901760, %v2823_v35  ;;  %v2844_v17 = vand.u32 4294901760, %v9388_v62 }
 0x366   : > { %v2834_v0 = vsub.f32 %v9378_v31, %v2833_v43 }
 0x367   : > { %6936 = vmatpush1.bf16.msra.mxu0 %v6935_v15  ;;  %v2845_v7 = vsub.f32 %v9388_v62, %v2844_v17  ;;  %v10991_v15 = vpack.c.bf16 %v9168_v26, %v9155_v1  ;;  %v10992_v1 = vpack.c.bf16 %v9229_v32, %v9207_v2  ;;  %v10994_v32 = vld [vmem:[#allocation5_spill] sm:$0xff]  ;;  %v11001_v2 = vld [vmem:[#allocation10_spill] sm:$0xff] }
 0x368   : > { %2803 = vmatmul.mubr.f32.gmra.mrb[22].mxu0 %v2802_v34  ;;  %6938 = vmatprep.subr.bf16.mxu0 %v6937_v19  ;;  %v2835_v44 = vand.u32 4294901760, %v2834_v0  ;;  %v10995_v26 = vld [vmem:[#allocation17_spill] sm:$0xff]  ;;  %v2638_v0 = vpop.permute.xlu1 %2637 }
 0x369   : > { %2808 = vmatprep.mubr.f32.mxu0 %v10949_v60  ;;  %v2846_v19 = vand.u32 4294901760, %v2845_v7 }
 0x36c   : > { %2814 = vmatmul.mubr.f32.gmra.mrb[24].mxu0 %v2813_v61 }
 0x36d   : > { %2819 = vmatprep.mubr.f32.mxu0 %v10949_v60 }
 0x370   : > { %2825 = vmatmul.mubr.f32.gmra.mrb[26].mxu0 %v2824_v25 }
 0x371   : > { %2830 = vmatprep.mubr.f32.mxu0 %v10949_v60 }
 0x374   : > { %2836 = vmatmul.mubr.f32.gmra.mrb[28].mxu0 %v2835_v44 }
 0x375   : > { %2841 = vmatprep.mubr.f32.mxu0 %v10949_v60 }
 0x378   : > { %2847 = vmatmul.mubr.f32.gmra.mrb[30].mxu0 %v2846_v19 }
 0x379   : > { %2997 = vmatprep.mubr.f32.mxu0 %v10949_v60 }
 0x37c   : > { %2999 = vmatmul.mubr.f32.vlgmr.msra.gmra.mrb[16].mxu0 %v9077_v59 }
 0x37d   : > { %6940 = vmatpush1.bf16.msra.mxu0 %v10991_v15  ;;  %3004 = vmatprep.mubr.f32.mxu0 %v10949_v60 }
 0x37e   : > { %6942 = vmatprep.subr.bf16.mxu0 %v6941_v13  ;;  %v10993_v13 = vpack.c.bf16 %v9266_v45, %v9246_v50 }
 0x380   : > { %3006 = vmatmul.mubr.f32.gmra.mrb[18].mxu0 %v9079_v18 }
 0x381   : > { %6944 = vmatpush1.bf16.msra.mxu0 %v6943_v3  ;;  %3011 = vmatprep.mubr.f32.mxu0 %v10949_v60 }
 0x382   : > { %6946 = vmatprep.subr.bf16.mxu0 %v6945_v41 }
 0x384   : > { %3013 = vmatmul.mubr.f32.gmra.mrb[20].mxu0 %v9081_v40 }
 0x385   : > { %6948 = vmatpush1.bf16.msra.mxu0 %v10992_v1  ;;  %3018 = vmatprep.mubr.f32.mxu0 %v10949_v60 }
 0x386   : > { %6950 = vmatprep.subr.bf16.mxu0 %v6949_v54 }
 0x388   : > { %3020 = vmatmul.mubr.f32.gmra.mrb[22].mxu0 %v9093_v57 }
 0x389   : > { %6952 = vmatpush1.bf16.msra.mxu0 %v10993_v13  ;;  %3025 = vmatprep.mubr.f32.mxu0 %v10949_v60 }
 0x38a   : > { %6954 = vmatprep.subr.bf16.mxu0 %v9178_v51 }
 0x38c   : > { %3027 = vmatmul.mubr.f32.gmra.mrb[24].mxu0 %v9124_v48 }
 0x38d   : > { %3032 = vmatprep.mubr.f32.mxu0 %v10949_v60 }
 0x390   : > { %3034 = vmatmul.mubr.f32.gmra.mrb[26].mxu0 %v9141_v53 }
 0x391   : > { %3039 = vmatprep.mubr.f32.mxu0 %v10949_v60 }
 0x394   : > { %3041 = vmatmul.mubr.f32.gmra.mrb[28].mxu0 %v9362_v20 }
 0x395   : > { %3046 = vmatprep.mubr.f32.mxu0 %v10949_v60 }
 0x398   : > { %3048 = vmatmul.mubr.f32.gmra.mrb[30].mxu0 %v9380_v24 }
 0x399   : > { %3150 = vmatprep.mubr.f32.mxu0 %v10949_v60 }
 0x39c   : > { %3153 = vmatmul.mubr.f32.vlgmr.msra.gmra.mrb[16].mxu0 %v9085_v49  ;;  %v11000_v49 = vand.u32 4294901760, %v10995_v26 }
 0x39d   : > { %6956 = vmatpush1.bf16.msra.mxu0 %v9193_v38  ;;  %3158 = vmatprep.mubr.f32.mxu0 %v10949_v60 }
 0x39e   : > { %6958 = vmatprep.subr.bf16.mxu0 %v9202_v30 }
 0x3a0   : > { %3161 = vmatmul.mubr.f32.gmra.mrb[18].mxu0 %v9088_v55 }
 0x3a1   : > { %6960 = vmatpush1.bf16.msra.mxu0 %v9196_v56  ;;  %3166 = vmatprep.mubr.f32.mxu0 %v10949_v60 }
 0x3a2   : > { %6962 = vmatprep.subr.bf16.mxu0 %v9239_v5 }
 0x3a4   : > { %3169 = vmatmul.mubr.f32.gmra.mrb[20].mxu0 %v9091_v58 }
 0x3a5   : > { %6964 = vmatpush1.bf16.msra.mxu0 %v9232_v33  ;;  %3174 = vmatprep.mubr.f32.mxu0 %v10949_v60 }
 0x3a6   : > { %6966 = vmatprep.subr.bf16.mxu0 %v10994_v32 }
 0x3a8   : > { %3177 = vmatmul.mubr.f32.gmra.mrb[22].mxu0 %v10995_v26 }
 0x3a9   : > { %6968 = vmatpush1.bf16.msra.mxu0 %v10996_v63  ;;  %3182 = vmatprep.mubr.f32.mxu0 %v10949_v60 }
 0x3aa   : > { %6970 = vmatprep.subr.bf16.mxu0 %v9325_v21  ;;  %v494_v21 = vld [vmem:[%s10784_s7 + $0x18] sm:$0xff] }
 0x3ac   : > { %3185 = vmatmul.mubr.f32.gmra.mrb[24].mxu0 %v9138_v28 }
 0x3ad   : > { %3190 = vmatprep.mubr.f32.mxu0 %v10949_v60 }
 0x3b0   : > { %3193 = vmatmul.mubr.f32.gmra.mrb[26].mxu0 %v9360_v52 }
 0x3b1   : > { %3198 = vmatprep.mubr.f32.mxu0 %v10949_v60 }
 0x3b4   : > { %3201 = vmatmul.mubr.f32.gmra.mrb[28].mxu0 %v9378_v31  ;;  %v495_v31 = vld [vmem:[%s10784_s7 + $0x20] sm:$0xff] }
 0x3b5   : > { %3206 = vmatprep.mubr.f32.mxu0 %v10949_v60  ;;  %v3823_v19 = vsel %vm1525_vm2, %v495_v31, 0 }
 0x3b8   : > { %3209 = vmatmul.mubr.f32.gmra.mrb[30].mxu0 %v9388_v62  ;;  %v11007_v62 = vld [vmem:[#allocation12_spill] sm:$0xff] }
 0x3b9   : > { %3295 = vmatprep.mubr.f32.mxu0 %v10949_v60 }
 0x3bc   : > { %3299 = vmatmul.mubr.f32.vlgmr.msra.gmra.mrb[16].mxu0 %v10997_v23 }
 0x3bd   : > { %6972 = vmatpush1.bf16.msra.mxu0 %v9331_v8  ;;  %3304 = vmatprep.mubr.f32.mxu0 %v10949_v60 }
 0x3be   : > { %6974 = vmatprep.subr.bf16.mxu0 %v9337_v6 }
 0x3c0   : > { %3308 = vmatmul.mubr.f32.gmra.mrb[18].mxu0 %v10998_v42 }
 0x3c1   : > { %6976 = vmatpush1.bf16.msra.mxu0 %v9343_v10  ;;  %3313 = vmatprep.mubr.f32.mxu0 %v10949_v60 }
 0x3c2   : > { %6978 = vmatprep.subr.bf16.mxu0 %v9345_v29 }
 0x3c4   : > { %3317 = vmatmul.mubr.f32.gmra.mrb[20].mxu0 %v10999_v4 }
 0x3c5   : > { %6980 = vmatpush1.bf16.msra.mxu0 %v9351_v22  ;;  %3322 = vmatprep.mubr.f32.mxu0 %v10949_v60  ;;  %v11005_v22 = vld [vmem:[#allocation8_spill] sm:$0xff] }
 0x3c6   : > { %6982 = vmatprep.subr.bf16.mxu0 %v9353_v12 }
 0x3c8   : > { %3326 = vmatmul.mubr.f32.gmra.mrb[22].mxu0 %v11000_v49 }
 0x3c9   : > { %6984 = vmatpush1.bf16.msra.mxu0 %v9366_v11  ;;  %3331 = vmatprep.mubr.f32.mxu0 %v10949_v60 }
 0x3ca   : > { %6986 = vmatprep.subr.bf16.mxu0 %v9178_v51 }
 0x3cc   : > { %3335 = vmatmul.mubr.f32.gmra.mrb[24].mxu0 %v2811_v46  ;;  %v3820_v46 = vsel %vm1525_vm2, %v494_v21, 0 }
 0x3cd   : > { %3340 = vmatprep.mubr.f32.mxu0 %v10949_v60 }
 0x3d0   : > { %3344 = vmatmul.mubr.f32.gmra.mrb[26].mxu0 %v2822_v36 }
 0x3d1   : > { %3349 = vmatprep.mubr.f32.mxu0 %v10949_v60 }
 0x3d4   : > { %3353 = vmatmul.mubr.f32.gmra.mrb[28].mxu0 %v2833_v43  ;;  %v9585_v43 = vand.u32 4294901760, %v3820_v46 }
 0x3d5   : > { %3358 = vmatprep.mubr.f32.mxu0 %v10949_v60 }
 0x3d6   : > { %v9609_v49 = vsub.f32 %v3820_v46, %v9585_v43 }
 0x3d8   : > { %3362 = vmatmul.mubr.f32.gmra.mrb[30].mxu0 %v2844_v17  ;;  %v11008_v17 = vld [vmem:[#allocation11_spill] sm:$0xff]  ;;  %11009 = vst [vmem:[#allocation6_spill] sm:$0xff] %v9609_v49 }
 0x3d9   : > { %3480 = vmatprep.mubr.f32.mxu0 %v10949_v60 }
 0x3dc   : > { %3482 = vmatmul.mubr.f32.vlgmr.msra.gmra.mrb[16].mxu0 %v9077_v59 }
 0x3dd   : > { %6988 = vmatpush1.bf16.msra.mxu0 %v9193_v38  ;;  %3487 = vmatprep.mubr.f32.mxu0 %v10949_v60 }
 0x3de   : > { %6990 = vmatprep.subr.bf16.mxu0 %v9202_v30 }
 0x3e0   : > { %3489 = vmatmul.mubr.f32.gmra.mrb[18].mxu0 %v9079_v18 }
 0x3e1   : > { %6992 = vmatpush1.bf16.msra.mxu0 %v9196_v56  ;;  %3494 = vmatprep.mubr.f32.mxu0 %v10949_v60 }
 0x3e2   : > { %6994 = vmatprep.subr.bf16.mxu0 %v9239_v5 }
 0x3e4   : > { %3496 = vmatmul.mubr.f32.gmra.mrb[20].mxu0 %v9081_v40 }
 0x3e5   : > { %6996 = vmatpush1.bf16.msra.mxu0 %v9232_v33  ;;  %3501 = vmatprep.mubr.f32.mxu0 %v10949_v60 }
 0x3e6   : > { %6998 = vmatprep.subr.bf16.mxu0 %v10994_v32 }
 0x3e8   : > { %3503 = vmatmul.mubr.f32.gmra.mrb[22].mxu0 %v9093_v57 }
 0x3e9   : > { %7000 = vmatpush1.bf16.msra.mxu0 %v10996_v63  ;;  %3508 = vmatprep.mubr.f32.mxu0 %v10949_v60  ;;  %v496_v63 = vld [vmem:[%s10784_s7 + $0x28] sm:$0xff] }
 0x3ec   : > { %3510 = vmatmul.mubr.f32.gmra.mrb[24].mxu0 %v9124_v48 }
 0x3ed   : > { %3515 = vmatprep.mubr.f32.mxu0 %v10949_v60 }
 0x3f0   : > { %3517 = vmatmul.mubr.f32.gmra.mrb[26].mxu0 %v9141_v53 }
 0x3f1   : > { %3522 = vmatprep.mubr.f32.mxu0 %v10949_v60 }
 0x3f4   : > { %3524 = vmatmul.mubr.f32.gmra.mrb[28].mxu0 %v9362_v20 }
 0x3f5   : > { %3529 = vmatprep.mubr.f32.mxu0 %v10949_v60 }
 0x3f8   : > { %3531 = vmatmul.mubr.f32.gmra.mrb[30].mxu0 %v9380_v24 }
 0x3f9   : > { %3617 = vmatprep.mubr.f32.mxu0 %v10949_v60 }
 0x3fc   : > { %3619 = vmatmul.mubr.f32.vlgmr.msra.gmra.mrb[16].mxu0 %v9077_v59  ;;  %v491_v59 = vld [vmem:[%s10784_s7] sm:$0xff] }
 0x3fd   : > { %3624 = vmatprep.mubr.f32.mxu0 %v10949_v60  ;;  %v3811_v55 = vsel %vm1525_vm2, %v491_v59, 0  ;;  %v11010_v59 = vld [vmem:[#allocation13_spill] sm:$0xff] }
 0x400   : > { %3626 = vmatmul.mubr.f32.gmra.mrb[18].mxu0 %v9079_v18  ;;  %v492_v18 = vld [vmem:[%s10784_s7 + $0x8] sm:$0xff] }
 0x401   : > { %3631 = vmatprep.mubr.f32.mxu0 %v10949_v60  ;;  %v3814_v58 = vsel %vm1525_vm2, %v492_v18, 0 }
 0x402   : > { %v9546_v38 = vand.u32 4294901760, %v3814_v58 }
 0x404   : > { %3633 = vmatmul.mubr.f32.gmra.mrb[20].mxu0 %v9081_v40  ;;  %v493_v40 = vld [vmem:[%s10784_s7 + $0x10] sm:$0xff]  ;;  %v9564_v6 = vsub.f32 %v3814_v58, %v9546_v38 }
 0x405   : > { %3638 = vmatprep.mubr.f32.mxu0 %v10949_v60  ;;  %v11011_v58 = vld [vmem:[#allocation14_spill] sm:$0xff] }
 0x406   : > { %11003 = vst [vmem:[#allocation22_spill] sm:$0xff] %v9564_v6  ;;  %v10851_v36 = vand.u32 4294901760, %v9564_v6 }
 0x408   : > { %3640 = vmatmul.mubr.f32.gmra.mrb[22].mxu0 %v9093_v57  ;;  %v3817_v57 = vsel %vm1525_vm2, %v493_v40, 0  ;;  %v9598_v26 = vsub.f32 %v9564_v6, %v10851_v36  ;;  %v9612_v40 = vand.u32 4294901760, %v3823_v19 }
 0x409   : > { %3645 = vmatprep.mubr.f32.mxu0 %v10949_v60  ;;  %v9548_v30 = vand.u32 4294901760, %v3817_v57 }
 0x40b   : > { %v9568_v47 = vsub.f32 %v3817_v57, %v9548_v30 }
 0x40c   : > { %3647 = vmatmul.mubr.f32.gmra.mrb[24].mxu0 %v9124_v48  ;;  %v2623_v48 = vpop.permute.xlu0 %2622 }
 0x40d   : > { %3652 = vmatprep.mubr.f32.mxu0 %v10949_v60  ;;  %11004 = vst [vmem:[#allocation26_spill] sm:$0xff] %v9568_v47  ;;  %v10850_v35 = vand.u32 4294901760, %v9568_v47 }
 0x40f   : > { %v9606_v4 = vsub.f32 %v9568_v47, %v10850_v35  ;;  %v11046_v47 = vand.u32 4294901760, %v9598_v26 }
 0x410   : > { %3654 = vmatmul.mubr.f32.gmra.mrb[26].mxu0 %v9141_v53  ;;  %v9544_v53 = vand.u32 4294901760, %v3811_v55  ;;  %v2633_v52 = vpop.permute.xlu0 %2632 }
 0x411   : > { %3659 = vmatprep.mubr.f32.mxu0 %v10949_v60 }
 0x412   : > { %v9557_v3 = vsub.f32 %v3811_v55, %v9544_v53 }
 0x414   : > { %3661 = vmatmul.mubr.f32.gmra.mrb[28].mxu0 %v9362_v20  ;;  %v11006_v20 = vld [vmem:[#allocation9_spill] sm:$0xff]  ;;  %v10852_v27 = vand.u32 4294901760, %v9557_v3  ;;  %v2643_v55 = vpop.permute.xlu0 %2642 }
 0x415   : > { %3666 = vmatprep.mubr.f32.mxu0 %v10949_v60 }
 0x416   : > { %v9593_v32 = vsub.f32 %v9557_v3, %v10852_v27 }
 0x418   : > { %3668 = vmatmul.mubr.f32.gmra.mrb[30].mxu0 %v9380_v24 }
 0x419   : > { %5048 = vmatprep.mubr.f32.mxu0 %v10949_v60 }
 0x4cf   : > { %v3620_v28 = vpop.f32.mrb[16].mxu0 }
 0x4d0   : > { %v7339_v33 = vadd.f32 %v3620_v28, %v2623_v48  ;;  %v3622_v51 = vpop.f32.mrb[17].mxu0  ;;  %v9616_v28 = vsel %vm1525_vm2, %v496_v63, 0 }
 0x4d1   : > { %v7340_v56 = vadd.f32 %v3622_v51, %v2623_v48  ;;  %v9629_v46 = vand.u32 4294901760, %v9616_v28 }
 0x4d2   : > { %v9551_v5 = vadd.f32 %v7339_v33, %v11001_v2 }
 0x4d3   : > { %v9554_v50 = vadd.f32 %v7340_v56, %v11002_v37  ;;  %v3627_v45 = vpop.f32.mrb[18].mxu0 }
 0x4d4   : > { %v3706_v41 = vmul.f32 0.70710677, %v9551_v5  ;;  %v7341_v54 = vadd.f32 %v3627_v45, %v2628_v9  ;;  %v3629_v8 = vpop.f32.mrb[19].mxu0 }
 0x4d5   : > { %v3707_v10 = vmul.f32 0.70710677, %v9554_v50  ;;  %v7342_v29 = vadd.f32 %v3629_v8, %v2628_v9 }
 0x4d6   : > { %v9571_v12 = vadd.f32 %v7341_v54, %v11005_v22  ;;  %v9626_v22 = vsub.f32 %v3823_v19, %v9612_v40 }
 0x4d7   : > { %7891 = verf.f32 %v3707_v10  ;;  %v9575_v14 = vadd.f32 %v7342_v29, %v11006_v20  ;;  %v3634_v11 = vpop.f32.mrb[20].mxu0  ;;  %v11012_v10 = vld [vmem:[#allocation15_spill] sm:$0xff]  ;;  %v3690_v20 = vmul.f32 0.5, %v9551_v5 }
 0x4d8   : > { %7893 = verf.f32 %v3706_v41  ;;  %v3708_v34 = vmul.f32 0.70710677, %v9571_v12  ;;  %v7343_v16 = vadd.f32 %v3634_v11, %v2633_v52  ;;  %v3636_v39 = vpop.f32.mrb[21].mxu0 }
 0x4d9   : > { %v3709_v24 = vmul.f32 0.70710677, %v9575_v14  ;;  %v7344_v61 = vadd.f32 %v3636_v39, %v2633_v52  ;;  %v2648_v52 = vpop.permute.xlu1 %2647 }
 0x4da   : > { %7895 = verf.f32 %v3708_v34  ;;  %v3678_v25 = vadd.f32 %v7343_v16, %v11007_v62  ;;  %v11013_v34 = vld [vmem:[#allocation16_spill] sm:$0xff] }
 0x4db   : > { %7897 = verf.f32 %v3709_v24  ;;  %v3679_v44 = vadd.f32 %v7344_v61, %v11008_v17  ;;  %v3641_v7 = vpop.f32.mrb[22].mxu0  ;;  %v3691_v24 = vmul.f32 0.5, %v9554_v50  ;;  %v3692_v61 = vmul.f32 0.5, %v9571_v12 }
 0x4dc   : > { %v3710_v15 = vmul.f32 0.70710677, %v3678_v25  ;;  %v7345_v1 = vadd.f32 %v3641_v7, %v2638_v0  ;;  %v3643_v13 = vpop.f32.mrb[23].mxu0  ;;  %v3694_v63 = vmul.f32 0.5, %v3678_v25 }
 0x4dd   : > { %v3711_v23 = vmul.f32 0.70710677, %v3679_v44  ;;  %v7346_v42 = vadd.f32 %v3643_v13, %v2638_v0  ;;  %v3695_v12 = vmul.f32 0.5, %v3679_v44  ;;  %v11019_v44 = vld [vmem:[#allocation23_spill] sm:$0xff] }
 0x4de   : > { %7899 = verf.f32 %v3710_v15  ;;  %v3680_v18 = vadd.f32 %v7345_v1, %v11010_v59  ;;  %v3693_v15 = vmul.f32 0.5, %v9575_v14  ;;  %v2653_v59 = vpop.permute.xlu0 %2652 }
 0x4df   : > { %7901 = verf.f32 %v3711_v23  ;;  %v3681_v57 = vadd.f32 %v7346_v42, %v11011_v58  ;;  %v3648_v48 = vpop.f32.mrb[24].mxu0  ;;  %v11014_v23 = vld [vmem:[#allocation18_spill] sm:$0xff] }
 0x4e0   : > { %v3712_v33 = vmul.f32 0.70710677, %v3680_v18  ;;  %v7347_v51 = vadd.f32 %v3648_v48, %v2643_v55  ;;  %v3650_v56 = vpop.f32.mrb[25].mxu0 }
 0x4e1   : > { %v7892_v37 = vpop.eup %7891  ;;  %v3713_v45 = vmul.f32 0.70710677, %v3681_v57  ;;  %v7348_v21 = vadd.f32 %v3650_v56, %v2643_v55  ;;  %v11016_v55 = vld [vmem:[#allocation19_spill] sm:$0xff] }
 0x4e2   : > { %v7894_v8 = vpop.eup %7893  ;;  %7903 = verf.f32 %v3712_v33  ;;  %v9623_v29 = vadd.f32 %v7347_v51, %v11012_v10  ;;  %v3739_v11 = vadd.f32 1.0, %v7892_v37 }
 0x4e3   : > { %7905 = verf.f32 %v3713_v45  ;;  %v9633_v16 = vadd.f32 %v7348_v21, %v11013_v34  ;;  %v3655_v39 = vpop.f32.mrb[26].mxu0  ;;  %v3738_v19 = vadd.f32 1.0, %v7894_v8  ;;  %v3696_v8 = vmul.f32 0.5, %v3680_v18 }
 0x4e4   : > { %v7896_v31 = vpop.eup %7895  ;;  %v3714_v62 = vmul.f32 0.70710677, %v9623_v29  ;;  %v7349_v0 = vadd.f32 %v3655_v39, %v2648_v52  ;;  %v3657_v17 = vpop.f32.mrb[27].mxu0  ;;  %v9641_v50 = vmul.f32 %v3739_v11, %v3691_v24  ;;  %v3697_v11 = vmul.f32 0.5, %v3681_v57 }
 0x4e5   : > { %v7898_v7 = vpop.eup %7897  ;;  %v3715_v5 = vmul.f32 0.70710677, %v9633_v16  ;;  %v7350_v1 = vadd.f32 %v3657_v17, %v2648_v52  ;;  %v3740_v51 = vadd.f32 1.0, %v7896_v31  ;;  %v9646_v25 = vmul.f32 %v3738_v19, %v3690_v20  ;;  %v2658_v24 = vpop.permute.xlu1 %2657 }
 0x4e6   : > { %v3741_v13 = vadd.f32 1.0, %v7898_v7  ;;  %7907 = verf.f32 %v3714_v62  ;;  %v3684_v42 = vadd.f32 %v7349_v0, %v11014_v23  ;;  %11015 = vst [vmem:[#allocation27_spill] sm:$0xff] %v9641_v50  ;;  %v11020_v0 = vld [vmem:[#allocation20_spill] sm:$0xff]  ;;  %v3834_v57 = vand.u32 4294901760, %v9641_v50 }
 0x4e7   : > { %7909 = verf.f32 %v3715_v5  ;;  %v3685_v58 = vadd.f32 %v7350_v1, %v11016_v55  ;;  %v3662_v48 = vpop.f32.mrb[28].mxu0  ;;  %11018 = vst [vmem:[#allocation5_spill] sm:$0xff] %v9646_v25  ;;  %v9651_v5 = vmul.f32 %v3740_v51, %v3692_v61  ;;  %v3836_v55 = vand.u32 4294901760, %v9646_v25  ;;  %v11025_v51 = vld [vmem:[#allocation25_spill] sm:$0xff] }
 0x4e8   : > { %v7900_v33 = vpop.eup %7899  ;;  %v9644_v56 = vmul.f32 %v3741_v13, %v3693_v15  ;;  %v3716_v14 = vmul.f32 0.70710677, %v3684_v42  ;;  %v7351_v37 = vadd.f32 %v3662_v48, %v2653_v59  ;;  %v3664_v45 = vpop.f32.mrb[29].mxu0 }
 0x4e9   : > { %v7902_v21 = vpop.eup %7901  ;;  %v3717_v10 = vmul.f32 0.70710677, %v3685_v58  ;;  %v7352_v52 = vadd.f32 %v3664_v45, %v2653_v59  ;;  %v3742_v62 = vadd.f32 1.0, %v7900_v33  ;;  %11021 = vst [vmem:[#allocation17_spill] sm:$0xff] %v9651_v5  ;;  %v11022_v33 = vld [vmem:[#allocation24_spill] sm:$0xff] }
 0x4ea   : > { %11017 = vst [vmem:[#allocation28_spill] sm:$0xff] %v9644_v56  ;;  %7911 = verf.f32 %v3716_v14  ;;  %v3686_v34 = vadd.f32 %v7351_v37, %v11019_v44  ;;  %v3838_v39 = vand.u32 4294901760, %v9644_v56  ;;  %v3743_v31 = vadd.f32 1.0, %v7902_v21 }
 0x4eb   : > { %7913 = verf.f32 %v3717_v10  ;;  %v3687_v17 = vadd.f32 %v7352_v52, %v11020_v0  ;;  %v3669_v7 = vpop.f32.mrb[30].mxu0  ;;  %v9658_v45 = vmul.f32 %v3742_v62, %v3694_v63  ;;  %v3840_v0 = vand.u32 4294901760, %v9651_v5 }
 0x4ec   : > { %v7904_v15 = vpop.eup %7903  ;;  %v3718_v20 = vmul.f32 0.70710677, %v3686_v34  ;;  %v7353_v18 = vadd.f32 %v3669_v7, %v2658_v24  ;;  %v3671_v19 = vpop.f32.mrb[31].mxu0  ;;  %v9656_v37 = vpack.c.bf16 %v3838_v39, %v3834_v57  ;;  %v9660_v61 = vmul.f32 %v3743_v31, %v3695_v12 }
 0x4ed   : > { %v7906_v1 = vpop.eup %7905  ;;  %v3744_v13 = vadd.f32 1.0, %v7904_v15  ;;  %v3719_v23 = vmul.f32 0.70710677, %v3687_v17  ;;  %v7354_v59 = vadd.f32 %v3671_v19, %v2658_v24  ;;  %11023 = vst [vmem:[#allocation21_spill] sm:$0xff] %v9658_v45  ;;  %v3698_v15 = vmul.f32 0.5, %v9623_v29 }
 0x4ee   : > { %v3745_v48 = vadd.f32 1.0, %v7906_v1  ;;  %7915 = verf.f32 %v3718_v20  ;;  %v3688_v14 = vadd.f32 %v7353_v18, %v11022_v33  ;;  %11024 = vst [vmem:[#allocation10_spill] sm:$0xff] %v9660_v61  ;;  %7002 = vmatprep.subr.bf16.mxu1 %v9656_v37  ;;  %v3699_v63 = vmul.f32 0.5, %v9633_v16 }
 0x4ef   : > { %7917 = verf.f32 %v3719_v23  ;;  %v3689_v21 = vadd.f32 %v7354_v59, %v11025_v51  ;;  %v9663_v52 = vmul.f32 %v3744_v13, %v3696_v8  ;;  %v3700_v12 = vmul.f32 0.5, %v3684_v42 }
 0x4f0   : > { %v7908_v10 = vpop.eup %7907  ;;  %v9665_v44 = vmul.f32 %v3745_v48, %v3697_v11  ;;  %v3720_v24 = vmul.f32 0.70710677, %v3688_v14  ;;  %v3701_v20 = vmul.f32 0.5, %v3685_v58  ;;  %v9671_v18 = vpack.c.bf16 %v3840_v0, %v3836_v55 }
 0x4f1   : > { %11026 = vst [vmem:[#allocation7_spill] sm:$0xff] %v9663_v52  ;;  %v7910_v7 = vpop.eup %7909  ;;  %v3721_v62 = vmul.f32 0.70710677, %v3689_v21  ;;  %v3746_v8 = vadd.f32 1.0, %v7908_v10  ;;  %v3842_v11 = vand.u32 4294901760, %v9660_v61  ;;  %v9676_v13 = vsub.f32 %v9641_v50, %v3834_v57 }
 0x4f2   : > { %11027 = vst [vmem:[#allocation8_spill] sm:$0xff] %v9665_v44  ;;  %v3747_v31 = vadd.f32 1.0, %v7910_v7  ;;  %7919 = verf.f32 %v3720_v24  ;;  %v3846_v19 = vand.u32 4294901760, %v9665_v44  ;;  %v9679_v29 = vsub.f32 %v9644_v56, %v3838_v39  ;;  %7004 = vmatpush1.bf16.msra.mxu1 %v9671_v18 }
 0x4f3   : > { %7921 = verf.f32 %v3721_v62  ;;  %v3844_v16 = vand.u32 4294901760, %v9658_v45  ;;  %v3848_v42 = vand.u32 4294901760, %v9663_v52  ;;  %v9687_v48 = vsub.f32 %v9646_v25, %v3836_v55 }
 0x4f4   : > { %v7912_v1 = vpop.eup %7911  ;;  %v9684_v23 = vmul.f32 %v3747_v31, %v3699_v63  ;;  %v9689_v33 = vpack.c.bf16 %v3846_v19, %v3842_v11  ;;  %v3702_v51 = vmul.f32 0.5, %v3686_v34  ;;  %v9692_v39 = vsub.f32 %v9651_v5, %v3840_v0 }
 0x4f5   : > { %v7914_v58 = vpop.eup %7913  ;;  %v3748_v59 = vadd.f32 1.0, %v7912_v1  ;;  %v9694_v10 = vpack.c.bf16 %v3848_v42, %v3844_v16  ;;  %v9696_v24 = vmul.f32 %v3746_v8, %v3698_v15  ;;  %v3703_v62 = vmul.f32 0.5, %v3687_v17 }
 0x4f6   : > { %11028 = vst [vmem:[#allocation9_spill] sm:$0xff] %v9684_v23  ;;  %v3749_v57 = vadd.f32 1.0, %v7914_v58  ;;  %v3704_v63 = vmul.f32 0.5, %v3688_v14  ;;  %7006 = vmatprep.subr.bf16.mxu1 %v9689_v33  ;;  %v3705_v1 = vmul.f32 0.5, %v3689_v21  ;;  %v10854_v34 = vand.u32 4294901760, %v9676_v13 }
 0x4f7   : > { %11029 = vst [vmem:[#allocation12_spill] sm:$0xff] %v9694_v10  ;;  %11030 = vst [vmem:[#allocation11_spill] sm:$0xff] %v9696_v24  ;;  %v9698_v7 = vmul.f32 %v3748_v59, %v3700_v12  ;;  %7008 = vmatpush1.bf16.msra.mxu1 %v9694_v10  ;;  %v10853_v0 = vand.u32 4294901760, %v9679_v29  ;;  %v3850_v15 = vand.u32 4294901760, %v9684_v23  ;;  %v10855_v17 = vand.u32 4294901760, %v9687_v48 }
 0x4f8   : > { %v7916_v31 = vpop.eup %7915  ;;  %v9701_v55 = vmul.f32 %v3749_v57, %v3701_v20  ;;  %v10857_v20 = vand.u32 4294901760, %v9692_v39  ;;  %v9715_v59 = vsub.f32 %v9660_v61, %v3842_v11  ;;  %v9718_v57 = vsub.f32 %v9665_v44, %v3846_v19 }
 0x4f9   : > { %11031 = vst [vmem:[#allocation13_spill] sm:$0xff] %v9698_v7  ;;  %v7918_v58 = vpop.eup %7917  ;;  %v3750_v35 = vadd.f32 1.0, %v7916_v31  ;;  %v3856_v12 = vand.u32 4294901760, %v9698_v7  ;;  %v4018_v21 = vsub.f32 %v9679_v29, %v10853_v0  ;;  %v9721_v31 = vsub.f32 %v9658_v45, %v3844_v16 }
 0x4fa   : > { %11032 = vst [vmem:[#allocation14_spill] sm:$0xff] %v9701_v55  ;;  %v3751_v14 = vadd.f32 1.0, %v7918_v58  ;;  %v3854_v8 = vand.u32 4294901760, %v9701_v55  ;;  %v3852_v36 = vand.u32 4294901760, %v9696_v24  ;;  %v9727_v41 = vsub.f32 %v9663_v52, %v3848_v42 }
 0x4fb   : > { %v4006_v11 = vsub.f32 %v9676_v13, %v10854_v34  ;;  %v9734_v19 = vmul.f32 %v3750_v35, %v3702_v51  ;;  %v9737_v16 = vsub.f32 %v9684_v23, %v3850_v15  ;;  %v4019_v42 = vand.u32 4294901760, %v4018_v21 }
 0x4fc   : > { %v7920_v58 = vpop.eup %7919  ;;  %v9724_v27 = vmul.f32 %v3751_v14, %v3703_v62  ;;  %v9729_v0 = vpack.c.bf16 %v3854_v8, %v3850_v15  ;;  %v9739_v2 = vpack.c.bf16 %v3856_v12, %v3852_v36  ;;  %v4012_v14 = vsub.f32 %v9687_v48, %v10855_v17 }
 0x4fd   : > { %v7922_v9 = vpop.eup %7921  ;;  %11035 = vst [vmem:[#allocation18_spill] sm:$0xff] %v9734_v19  ;;  %v3752_v54 = vadd.f32 1.0, %v7920_v58  ;;  %v4024_v34 = vsub.f32 %v9692_v39, %v10857_v20  ;;  %v9757_v21 = vsub.f32 %v9696_v24, %v3852_v36  ;;  %v9760_v17 = vsub.f32 %v9698_v7, %v3856_v12 }
 0x4fe   : > { %11033 = vst [vmem:[#allocation15_spill] sm:$0xff] %v9724_v27  ;;  %11034 = vst [vmem:[#allocation16_spill] sm:$0xff] %v9729_v0  ;;  %v3753_v62 = vadd.f32 1.0, %v7922_v9  ;;  %7010 = vmatprep.subr.bf16.mxu1 %v9729_v0  ;;  %v3858_v51 = vand.u32 4294901760, %v9724_v27  ;;  %v4007_v23 = vand.u32 4294901760, %v4006_v11  ;;  %v4035_v12 = vand.u32 4294901760, %v9721_v31 }
 0x4ff   : > { %11036 = vst [vmem:[#allocation19_spill] sm:$0xff] %v9739_v2  ;;  %v9748_v35 = vmul.f32 %v3752_v54, %v3704_v63  ;;  %7012 = vmatpush1.bf16.msra.mxu1 %v9739_v2  ;;  %v9763_v54 = vsub.f32 %v9701_v55, %v3854_v8  ;;  %v3860_v63 = vand.u32 4294901760, %v9734_v19  ;;  %v4025_v55 = vand.u32 4294901760, %v4024_v34 }
 0x500   : > { %v9754_v58 = vmul.f32 %v3753_v62, %v3705_v1  ;;  %v4013_v1 = vand.u32 4294901760, %v4012_v14  ;;  %v11039_v62 = vand.u32 4294901760, %v9718_v57  ;;  %v9774_v11 = vsub.f32 %v9724_v27, %v3858_v51 }
 0x501   : > { %11037 = vst [vmem:[#allocation23_spill] sm:$0xff] %v9748_v35  ;;  %v3864_v20 = vand.u32 4294901760, %v9748_v35  ;;  %v7017_v8 = vpack.c.bf16 %v4019_v42, %v4007_v23  ;;  %v11040_v7 = vand.u32 4294901760, %v9715_v59  ;;  %v11042_v14 = vand.u32 4294901760, %v9727_v41  ;;  %v497_v23 = vld [vmem:[%s10784_s7 + $0x30] sm:$0xff] }
 0x502   : > { %11038 = vst [vmem:[#allocation20_spill] sm:$0xff] %v9754_v58  ;;  %v3862_v9 = vand.u32 4294901760, %v9754_v58  ;;  %v4042_v36 = vsub.f32 %v9718_v57, %v11039_v62  ;;  %v4053_v52 = vand.u32 4294901760, %v9737_v16  ;;  %v9794_v42 = vsub.f32 %v9734_v19, %v3860_v63 }
 0x503   : > { %v4030_v24 = vsub.f32 %v9715_v59, %v11040_v7  ;;  %v4048_v62 = vsub.f32 %v9727_v41, %v11042_v14  ;;  %v9791_v34 = vpack.c.bf16 %v3864_v20, %v3860_v63  ;;  %v9797_v7 = vsub.f32 %v9748_v35, %v3864_v20 }
 0x504   : > { %v9779_v44 = vpack.c.bf16 %v3862_v9, %v3858_v51  ;;  %v9782_v15 = vsub.f32 %v9754_v58, %v3862_v9  ;;  %v4065_v51 = vand.u32 4294901760, %v9763_v54  ;;  %v4043_v9 = vand.u32 4294901760, %v4042_v36 }
 0x505   : > { %11043 = vst [vmem:[#allocation25_spill] sm:$0xff] %v9791_v34  ;;  %v4036_v14 = vsub.f32 %v9721_v31, %v4035_v12  ;;  %v4071_v58 = vand.u32 4294901760, %v9760_v17  ;;  %v7019_v61 = vpack.c.bf16 %v4025_v55, %v4013_v1  ;;  %v4059_v19 = vand.u32 4294901760, %v9757_v21  ;;  %v498_v1 = vld [vmem:[%s10784_s7 + $0x38] sm:$0xff] }
 0x506   : > { %11041 = vst [vmem:[#allocation24_spill] sm:$0xff] %v9779_v44  ;;  %7014 = vmatprep.subr.bf16.mxu1 %v9779_v44  ;;  %v4089_v27 = vand.u32 4294901760, %v9782_v15  ;;  %v4066_v63 = vsub.f32 %v9763_v54, %v4065_v51  ;;  %v3829_v20 = vsel %vm1525_vm2, %v497_v23, 0  ;;  %v4031_v35 = vand.u32 4294901760, %v4030_v24 }
 0x507   : > { %7016 = vmatpush1.bf16.msra.mxu1 %v9791_v34  ;;  %v4049_v45 = vand.u32 4294901760, %v4048_v62  ;;  %v4054_v36 = vsub.f32 %v9737_v16, %v4053_v52  ;;  %v4077_v56 = vand.u32 4294901760, %v9774_v11  ;;  %v4072_v5 = vsub.f32 %v9760_v17, %v4071_v58 }
 0x508   : > { %7018 = vmatprep.subr.bf16.mxu1 %v7017_v8  ;;  %v4090_v50 = vsub.f32 %v9782_v15, %v4089_v27  ;;  %v4083_v25 = vand.u32 4294901760, %v9794_v42  ;;  %v4095_v55 = vand.u32 4294901760, %v9797_v7  ;;  %v11044_v8 = vand.u32 4294901760, %v9593_v32 }
 0x509   : > { %v7021_v24 = vpack.c.bf16 %v4043_v9, %v4031_v35  ;;  %v4037_v62 = vand.u32 4294901760, %v4036_v14  ;;  %v4067_v23 = vand.u32 4294901760, %v4066_v63  ;;  %v11045_v34 = vand.u32 4294901760, %v9609_v49 }
 0x50a   : > { %3920 = vmatmul.mubr.f32.vlgmr.msra.gmra.mrb[32].mxu1 %v11044_v8  ;;  %v4060_v2 = vsub.f32 %v9757_v21, %v4059_v19  ;;  %v9827_v0 = vsub.f32 %v9616_v28, %v9629_v46  ;;  %v9829_v32 = vand.u32 4294901760, %v3829_v20  ;;  %v4055_v9 = vand.u32 4294901760, %v4054_v36 }
 0x50b   : > { %v3951_v44 = vsub.f32 %v9609_v49, %v11045_v34  ;;  %7020 = vmatpush1.bf16.msra.mxu1 %v7019_v61  ;;  %3925 = vmatprep.mubr.f32.mxu1 %v10949_v60  ;;  %v7023_v35 = vpack.c.bf16 %v4049_v45, %v4037_v62  ;;  %v4078_v14 = vsub.f32 %v9774_v11, %v4077_v56  ;;  %v3832_v34 = vsel %vm1525_vm2, %v498_v1, 0 }
 0x50c   : > { %7022 = vmatprep.subr.bf16.mxu1 %v7021_v24  ;;  %v4073_v61 = vand.u32 4294901760, %v4072_v5  ;;  %v4091_v63 = vand.u32 4294901760, %v4090_v50  ;;  %v4084_v8 = vsub.f32 %v9794_v42, %v4083_v25  ;;  %v4096_v49 = vsub.f32 %v9797_v7, %v4095_v55 }
 0x50d   : > { %v7025_v28 = vpack.c.bf16 %v4067_v23, %v4055_v9  ;;  %v11047_v10 = vand.u32 4294901760, %v9676_v13  ;;  %v11048_v24 = vand.u32 4294901760, %v9679_v29  ;;  %v11049_v36 = vand.u32 4294901760, %v9687_v48 }
 0x50e   : > { %3931 = vmatmul.mubr.f32.gmra.mrb[34].mxu1 %v11046_v47  ;;  %v11050_v1 = vand.u32 4294901760, %v9692_v39  ;;  %v11051_v50 = vand.u32 4294901760, %v9715_v59  ;;  %v11052_v62 = vand.u32 4294901760, %v9718_v57  ;;  %v4061_v47 = vand.u32 4294901760, %v4060_v2 }
 0x50f   : > { %v9841_v45 = vpack.c.bf16 %v11048_v24, %v11047_v10  ;;  %7024 = vmatpush1.bf16.msra.mxu1 %v7023_v35  ;;  %3936 = vmatprep.mubr.f32.mxu1 %v10949_v60  ;;  %v11054_v26 = vand.u32 4294901760, %v9727_v41  ;;  %v9860_v23 = vpack.c.bf16 %v4065_v51, %v4053_v52  ;;  %v9862_v9 = vpack.c.bf16 %v4071_v58, %v4059_v19 }
 0x510   : > { %v9847_v5 = vpack.c.bf16 %v11050_v1, %v11049_v36  ;;  %v9853_v6 = vpack.c.bf16 %v11052_v62, %v11051_v50  ;;  %7026 = vmatprep.subr.bf16.mxu1 %v7025_v28  ;;  %v4079_v24 = vand.u32 4294901760, %v4078_v14  ;;  %v9864_v36 = vpack.c.bf16 %v4089_v27, %v4077_v56 }
 0x511   : > { %v9858_v10 = vpack.c.bf16 %v11054_v26, %v4035_v12  ;;  %v9866_v1 = vpack.c.bf16 %v4095_v55, %v4083_v25  ;;  %v7027_v50 = vpack.c.bf16 %v4073_v61, %v4061_v47  ;;  %v3952_v62 = vand.u32 4294901760, %v3951_v44 }
 0x512   : > { %11053 = vst [vmem:[#allocation29_spill] sm:$0xff] %v9853_v6  ;;  %v4097_v35 = vand.u32 4294901760, %v4096_v49  ;;  %v11055_v6 = vand.u32 4294901760, %v9626_v22  ;;  %v11056_v12 = vand.u32 4294901760, %v9606_v4  ;;  %v7029_v52 = vpack.c.bf16 %v4091_v63, %v4079_v24 }
 0x513   : > { %v3972_v19 = vand.u32 4294901760, %v9827_v0  ;;  %v9875_v58 = vsub.f32 %v3829_v20, %v9829_v32  ;;  %v9877_v27 = vand.u32 4294901760, %v3832_v34  ;;  %7028 = vmatpush1.bf16.msra.mxu1 %v7027_v50  ;;  %v4085_v56 = vand.u32 4294901760, %v4084_v8 }
 0x514   : > { %v3962_v2 = vsub.f32 %v9626_v22, %v11055_v6  ;;  %3942 = vmatmul.mubr.f32.gmra.mrb[36].mxu1 %v11056_v12  ;;  %7030 = vmatprep.subr.bf16.mxu1 %v7029_v52  ;;  %v7033_v6 = vpack.c.bf16 %v9679_v29, %v9676_v13  ;;  %v7035_v61 = vpack.c.bf16 %v9692_v39, %v9687_v48 }
 0x515   : > { %3947 = vmatprep.mubr.f32.mxu1 %v10949_v60  ;;  %v7031_v49 = vpack.c.bf16 %v4097_v35, %v4085_v56  ;;  %v3973_v4 = vsub.f32 %v9827_v0, %v3972_v19  ;;  %v3983_v44 = vand.u32 4294901760, %v9875_v58  ;;  %v9887_v51 = vsub.f32 %v3832_v34, %v9877_v27 }
 0x516   : > { %v3963_v25 = vand.u32 4294901760, %v3962_v2  ;;  %v7037_v63 = vpack.c.bf16 %v9718_v57, %v9715_v59  ;;  %v7039_v8 = vpack.c.bf16 %v9727_v41, %v9721_v31  ;;  %v7041_v28 = vpack.c.bf16 %v9763_v54, %v9737_v16  ;;  %v11058_v59 = vld [vmem:[#allocation12_spill] sm:$0xff]  ;;  %v11060_v31 = vld [vmem:[#allocation26_spill] sm:$0xff]  ;;  %v11061_v16 = vld [vmem:[#allocation19_spill] sm:$0xff] }
 0x517   : > { %7032 = vmatpush1.bf16.msra.mxu1 %v7031_v49  ;;  %v3974_v20 = vand.u32 4294901760, %v3973_v4  ;;  %v3984_v55 = vsub.f32 %v9875_v58, %v3983_v44  ;;  %v3994_v13 = vand.u32 4294901760, %v9887_v51  ;;  %v7043_v48 = vpack.c.bf16 %v9760_v17, %v9757_v21  ;;  %v11057_v17 = vld [vmem:[#allocation22_spill] sm:$0xff]  ;;  %v11059_v57 = vld [vmem:[#allocation16_spill] sm:$0xff]  ;;  %v11064_v54 = vld [vmem:[#allocation25_spill] sm:$0xff] }
 0x518   : > { %3953 = vmatmul.mubr.f32.gmra.mrb[38].mxu1 %v3952_v62  ;;  %7034 = vmatprep.subr.bf16.mxu1 %v7033_v6  ;;  %v7045_v39 = vpack.c.bf16 %v9782_v15, %v9774_v11  ;;  %v7047_v41 = vpack.c.bf16 %v9797_v7, %v9794_v42  ;;  %v11062_v15 = vld [vmem:[#allocation24_spill] sm:$0xff]  ;;  %v11063_v21 = vld [vmem:[#allocation6_spill] sm:$0xff]  ;;  %v11065_v11 = vand.u32 4294901760, %v9557_v3  ;;  %v11067_v7 = vand.u32 4294901760, %v11057_v17  ;;  %v3778_v62 = vpop.permute.xlu1 %3777 }
 0x519   : > { %3958 = vmatprep.mubr.f32.mxu1 %v10949_v60  ;;  %v3985_v29 = vand.u32 4294901760, %v3984_v55  ;;  %v3995_v14 = vsub.f32 %v9887_v51, %v3994_v13  ;;  %v11066_v42 = vld [vmem:[#allocation29_spill] sm:$0xff] }
 0x51b   : > { %v3996_v34 = vand.u32 4294901760, %v3995_v14 }
 0x51c   : > { %3964 = vmatmul.mubr.f32.gmra.mrb[40].mxu1 %v3963_v25 }
 0x51d   : > { %3969 = vmatprep.mubr.f32.mxu1 %v10949_v60 }
 0x520   : > { %3975 = vmatmul.mubr.f32.gmra.mrb[42].mxu1 %v3974_v20 }
 0x521   : > { %3980 = vmatprep.mubr.f32.mxu1 %v10949_v60 }
 0x524   : > { %3986 = vmatmul.mubr.f32.gmra.mrb[44].mxu1 %v3985_v29  ;;  %v512_v29 = vld [vmem:[%s10786_s9 + $0x28] sm:$0xff] }
 0x525   : > { %3991 = vmatprep.mubr.f32.mxu1 %v10949_v60 }
 0x528   : > { %3997 = vmatmul.mubr.f32.gmra.mrb[46].mxu1 %v3996_v34 }
 0x529   : > { %4147 = vmatprep.mubr.f32.mxu1 %v10949_v60 }
 0x52c   : > { %4149 = vmatmul.mubr.f32.vlgmr.msra.gmra.mrb[32].mxu1 %v9544_v53 }
 0x52d   : > { %7036 = vmatpush1.bf16.msra.mxu1 %v7035_v61  ;;  %4154 = vmatprep.mubr.f32.mxu1 %v10949_v60 }
 0x52e   : > { %7038 = vmatprep.subr.bf16.mxu1 %v7037_v63 }
 0x530   : > { %4156 = vmatmul.mubr.f32.gmra.mrb[34].mxu1 %v9546_v38 }
 0x531   : > { %7040 = vmatpush1.bf16.msra.mxu1 %v7039_v8  ;;  %4161 = vmatprep.mubr.f32.mxu1 %v10949_v60 }
 0x532   : > { %7042 = vmatprep.subr.bf16.mxu1 %v7041_v28 }
 0x534   : > { %4163 = vmatmul.mubr.f32.gmra.mrb[36].mxu1 %v9548_v30 }
 0x535   : > { %7044 = vmatpush1.bf16.msra.mxu1 %v7043_v48  ;;  %4168 = vmatprep.mubr.f32.mxu1 %v10949_v60 }
 0x536   : > { %7046 = vmatprep.subr.bf16.mxu1 %v7045_v39  ;;  %v10092_v39 = vsel %vm1525_vm2, %v512_v29, 0 }
 0x538   : > { %4170 = vmatmul.mubr.f32.gmra.mrb[38].mxu1 %v9585_v43 }
 0x539   : > { %7048 = vmatpush1.bf16.msra.mxu1 %v7047_v41  ;;  %4175 = vmatprep.mubr.f32.mxu1 %v10949_v60  ;;  %v3788_v41 = vpop.permute.xlu1 %3787 }
 0x53a   : > { %7050 = vmatprep.subr.bf16.mxu1 %v9656_v37 }
 0x53c   : > { %4177 = vmatmul.mubr.f32.gmra.mrb[40].mxu1 %v9612_v40 }
 0x53d   : > { %4182 = vmatprep.mubr.f32.mxu1 %v10949_v60 }
 0x540   : > { %4184 = vmatmul.mubr.f32.gmra.mrb[42].mxu1 %v9629_v46 }
 0x541   : > { %4189 = vmatprep.mubr.f32.mxu1 %v10949_v60 }
 0x544   : > { %4191 = vmatmul.mubr.f32.gmra.mrb[44].mxu1 %v9829_v32 }
 0x545   : > { %4196 = vmatprep.mubr.f32.mxu1 %v10949_v60 }
 0x548   : > { %4198 = vmatmul.mubr.f32.gmra.mrb[46].mxu1 %v9877_v27 }
 0x549   : > { %4300 = vmatprep.mubr.f32.mxu1 %v10949_v60 }
 0x54c   : > { %4303 = vmatmul.mubr.f32.vlgmr.msra.gmra.mrb[32].mxu1 %v9557_v3  ;;  %v11069_v3 = vand.u32 4294901760, %v11063_v21 }
 0x54d   : > { %7052 = vmatpush1.bf16.msra.mxu1 %v9671_v18  ;;  %4308 = vmatprep.mubr.f32.mxu1 %v10949_v60 }
 0x54e   : > { %7054 = vmatprep.subr.bf16.mxu1 %v9689_v33 }
 0x550   : > { %4311 = vmatmul.mubr.f32.gmra.mrb[34].mxu1 %v11057_v17 }
 0x551   : > { %7056 = vmatpush1.bf16.msra.mxu1 %v11058_v59  ;;  %4316 = vmatprep.mubr.f32.mxu1 %v10949_v60 }
 0x552   : > { %7058 = vmatprep.subr.bf16.mxu1 %v11059_v57 }
 0x554   : > { %4319 = vmatmul.mubr.f32.gmra.mrb[36].mxu1 %v11060_v31 }
 0x555   : > { %7060 = vmatpush1.bf16.msra.mxu1 %v11061_v16  ;;  %4324 = vmatprep.mubr.f32.mxu1 %v10949_v60 }
 0x556   : > { %7062 = vmatprep.subr.bf16.mxu1 %v11062_v15 }
 0x558   : > { %4327 = vmatmul.mubr.f32.gmra.mrb[38].mxu1 %v11063_v21 }
 0x559   : > { %7064 = vmatpush1.bf16.msra.mxu1 %v11064_v54  ;;  %4332 = vmatprep.mubr.f32.mxu1 %v10949_v60 }
 0x55a   : > { %7066 = vmatprep.subr.bf16.mxu1 %v9841_v45  ;;  %v11068_v45 = vand.u32 4294901760, %v11060_v31 }
 0x55c   : > { %4335 = vmatmul.mubr.f32.gmra.mrb[40].mxu1 %v9626_v22 }
 0x55d   : > { %4340 = vmatprep.mubr.f32.mxu1 %v10949_v60 }
 0x560   : > { %4343 = vmatmul.mubr.f32.gmra.mrb[42].mxu1 %v9827_v0 }
 0x561   : > { %4348 = vmatprep.mubr.f32.mxu1 %v10949_v60 }
 0x564   : > { %4351 = vmatmul.mubr.f32.gmra.mrb[44].mxu1 %v9875_v58 }
 0x565   : > { %4356 = vmatprep.mubr.f32.mxu1 %v10949_v60 }
 0x568   : > { %4359 = vmatmul.mubr.f32.gmra.mrb[46].mxu1 %v9887_v51 }
 0x569   : > { %4445 = vmatprep.mubr.f32.mxu1 %v10949_v60 }
 0x56c   : > { %4449 = vmatmul.mubr.f32.vlgmr.msra.gmra.mrb[32].mxu1 %v11065_v11 }
 0x56d   : > { %7068 = vmatpush1.bf16.msra.mxu1 %v9847_v5  ;;  %4454 = vmatprep.mubr.f32.mxu1 %v10949_v60  ;;  %v11070_v5 = vand.u32 4294901760, %v9626_v22 }
 0x56e   : > { %7070 = vmatprep.subr.bf16.mxu1 %v11066_v42 }
 0x570   : > { %4458 = vmatmul.mubr.f32.gmra.mrb[34].mxu1 %v11067_v7  ;;  %v10106_v7 = vand.u32 4294901760, %v10092_v39 }
 0x571   : > { %7072 = vmatpush1.bf16.msra.mxu1 %v9858_v10  ;;  %4463 = vmatprep.mubr.f32.mxu1 %v10949_v60 }
 0x572   : > { %7074 = vmatprep.subr.bf16.mxu1 %v9860_v23 }
 0x574   : > { %4467 = vmatmul.mubr.f32.gmra.mrb[36].mxu1 %v11068_v45 }
 0x575   : > { %7076 = vmatpush1.bf16.msra.mxu1 %v9862_v9  ;;  %4472 = vmatprep.mubr.f32.mxu1 %v10949_v60 }
 0x576   : > { %7078 = vmatprep.subr.bf16.mxu1 %v9864_v36 }
 0x578   : > { %4476 = vmatmul.mubr.f32.gmra.mrb[38].mxu1 %v11069_v3 }
 0x579   : > { %7080 = vmatpush1.bf16.msra.mxu1 %v9866_v1  ;;  %4481 = vmatprep.mubr.f32.mxu1 %v10949_v60 }
 0x57a   : > { %7082 = vmatprep.subr.bf16.mxu1 %v9656_v37 }
 0x57c   : > { %4485 = vmatmul.mubr.f32.gmra.mrb[40].mxu1 %v11070_v5 }
 0x57d   : > { %4490 = vmatprep.mubr.f32.mxu1 %v10949_v60 }
 0x580   : > { %4494 = vmatmul.mubr.f32.gmra.mrb[42].mxu1 %v3972_v19  ;;  %v511_v19 = vld [vmem:[%s10786_s9 + $0x20] sm:$0xff] }
 0x581   : > { %4499 = vmatprep.mubr.f32.mxu1 %v10949_v60  ;;  %v4957_v4 = vsel %vm1525_vm2, %v511_v19, 0 }
 0x582   : > { %v10089_v28 = vand.u32 4294901760, %v4957_v4 }
 0x584   : > { %4503 = vmatmul.mubr.f32.gmra.mrb[44].mxu1 %v3983_v44  ;;  %v10103_v42 = vsub.f32 %v4957_v4, %v10089_v28  ;;  %v3798_v4 = vpop.permute.xlu1 %3797 }
 0x585   : > { %4508 = vmatprep.mubr.f32.mxu1 %v10949_v60 }
 0x588   : > { %4512 = vmatmul.mubr.f32.gmra.mrb[46].mxu1 %v3994_v13 }
 0x589   : > { %4630 = vmatprep.mubr.f32.mxu1 %v10949_v60 }
 0x58c   : > { %4632 = vmatmul.mubr.f32.vlgmr.msra.gmra.mrb[32].mxu1 %v9544_v53 }
 0x58d   : > { %7084 = vmatpush1.bf16.msra.mxu1 %v9671_v18  ;;  %4637 = vmatprep.mubr.f32.mxu1 %v10949_v60 }
 0x58e   : > { %7086 = vmatprep.subr.bf16.mxu1 %v9689_v33 }
 0x590   : > { %4639 = vmatmul.mubr.f32.gmra.mrb[34].mxu1 %v9546_v38 }
 0x591   : > { %7088 = vmatpush1.bf16.msra.mxu1 %v11058_v59  ;;  %4644 = vmatprep.mubr.f32.mxu1 %v10949_v60 }
 0x592   : > { %7090 = vmatprep.subr.bf16.mxu1 %v11059_v57 }
 0x594   : > { %4646 = vmatmul.mubr.f32.gmra.mrb[36].mxu1 %v9548_v30 }
 0x595   : > { %7092 = vmatpush1.bf16.msra.mxu1 %v11061_v16  ;;  %4651 = vmatprep.mubr.f32.mxu1 %v10949_v60 }
 0x596   : > { %7094 = vmatprep.subr.bf16.mxu1 %v11062_v15 }
 0x598   : > { %4653 = vmatmul.mubr.f32.gmra.mrb[38].mxu1 %v9585_v43 }
 0x599   : > { %7096 = vmatpush1.bf16.msra.mxu1 %v11064_v54  ;;  %4658 = vmatprep.mubr.f32.mxu1 %v10949_v60 }
 0x59c   : > { %4660 = vmatmul.mubr.f32.gmra.mrb[40].mxu1 %v9612_v40 }
 0x59d   : > { %4665 = vmatprep.mubr.f32.mxu1 %v10949_v60 }
 0x5a0   : > { %4667 = vmatmul.mubr.f32.gmra.mrb[42].mxu1 %v9629_v46 }
 0x5a1   : > { %4672 = vmatprep.mubr.f32.mxu1 %v10949_v60 }
 0x5a4   : > { %4674 = vmatmul.mubr.f32.gmra.mrb[44].mxu1 %v9829_v32 }
 0x5a5   : > { %4679 = vmatprep.mubr.f32.mxu1 %v10949_v60 }
 0x5a8   : > { %4681 = vmatmul.mubr.f32.gmra.mrb[46].mxu1 %v9877_v27 }
 0x5a9   : > { %4767 = vmatprep.mubr.f32.mxu1 %v10949_v60 }
 0x5ac   : > { %4769 = vmatmul.mubr.f32.vlgmr.msra.gmra.mrb[32].mxu1 %v9544_v53  ;;  %v507_v53 = vld [vmem:[%s10786_s9] sm:$0xff] }
 0x5ad   : > { %4774 = vmatprep.mubr.f32.mxu1 %v10949_v60 }
 0x5b0   : > { %4776 = vmatmul.mubr.f32.gmra.mrb[34].mxu1 %v9546_v38  ;;  %v508_v38 = vld [vmem:[%s10786_s9 + $0x8] sm:$0xff] }
 0x5b1   : > { %4781 = vmatprep.mubr.f32.mxu1 %v10949_v60 }
 0x5b4   : > { %4783 = vmatmul.mubr.f32.gmra.mrb[36].mxu1 %v9548_v30  ;;  %v509_v30 = vld [vmem:[%s10786_s9 + $0x10] sm:$0xff] }
 0x5b5   : > { %4788 = vmatprep.mubr.f32.mxu1 %v10949_v60  ;;  %v4951_v22 = vsel %vm1525_vm2, %v509_v30, 0 }
 0x5b6   : > { %v10046_v33 = vand.u32 4294901760, %v4951_v22 }
 0x5b8   : > { %4790 = vmatmul.mubr.f32.gmra.mrb[38].mxu1 %v9585_v43  ;;  %v4945_v43 = vsel %vm1525_vm2, %v507_v53, 0  ;;  %v10056_v24 = vsub.f32 %v4951_v22, %v10046_v33 }
 0x5b9   : > { %4795 = vmatprep.mubr.f32.mxu1 %v10949_v60  ;;  %v10042_v37 = vand.u32 4294901760, %v4945_v43 }
 0x5ba   : > { %v10890_v56 = vand.u32 4294901760, %v10056_v24 }
 0x5bb   : > { %v10050_v26 = vsub.f32 %v4945_v43, %v10042_v37 }
 0x5bc   : > { %4797 = vmatmul.mubr.f32.gmra.mrb[40].mxu1 %v9612_v40  ;;  %v4948_v40 = vsel %vm1525_vm2, %v508_v38, 0  ;;  %v10086_v61 = vsub.f32 %v10056_v24, %v10890_v56 }
 0x5bd   : > { %4802 = vmatprep.mubr.f32.mxu1 %v10949_v60  ;;  %v10044_v18 = vand.u32 4294901760, %v4948_v40  ;;  %v10892_v12 = vand.u32 4294901760, %v10050_v26 }
 0x5bf   : > { %v10053_v10 = vsub.f32 %v4948_v40, %v10044_v18  ;;  %v10073_v55 = vsub.f32 %v10050_v26, %v10892_v12 }
 0x5c0   : > { %4804 = vmatmul.mubr.f32.gmra.mrb[42].mxu1 %v9629_v46  ;;  %v510_v46 = vld [vmem:[%s10786_s9 + $0x18] sm:$0xff] }
 0x5c1   : > { %4809 = vmatprep.mubr.f32.mxu1 %v10949_v60  ;;  %v4954_v0 = vsel %vm1525_vm2, %v510_v46, 0  ;;  %v10891_v52 = vand.u32 4294901760, %v10053_v10 }
 0x5c2   : > { %v10058_v36 = vand.u32 4294901760, %v4954_v0 }
 0x5c3   : > { %v10078_v13 = vsub.f32 %v10053_v10, %v10891_v52 }
 0x5c4   : > { %4811 = vmatmul.mubr.f32.gmra.mrb[44].mxu1 %v9829_v32  ;;  %v3773_v32 = vpop.permute.xlu0 %3772  ;;  %v10067_v49 = vsub.f32 %v4954_v0, %v10058_v36 }
 0x5c5   : > { %4816 = vmatprep.mubr.f32.mxu1 %v10949_v60 }
 0x5c6   : > { %11071 = vst [vmem:[#allocation22_spill] sm:$0xff] %v10067_v49  ;;  %v10889_v63 = vand.u32 4294901760, %v10067_v49 }
 0x5c8   : > { %4818 = vmatmul.mubr.f32.gmra.mrb[46].mxu1 %v9877_v27  ;;  %v3783_v44 = vpop.permute.xlu0 %3782  ;;  %v10100_v54 = vsub.f32 %v10067_v49, %v10889_v63 }
 0x5c9   : > { %6142 = vmatprep.mubr.f32.mxu1 %v10949_v60 }
 0x5cc   : > { %v3793_v43 = vpop.permute.xlu0 %3792 }
 0x67f   : > { %v4770_v47 = vpop.f32.mrb[32].mxu1 }
 0x680   : > { %v7355_v23 = vadd.f32 %v4770_v47, %v3773_v32  ;;  %v4772_v9 = vpop.f32.mrb[33].mxu1 }
 0x681   : > { %v7356_v1 = vadd.f32 %v4772_v9, %v3773_v32 }
 0x682   : > { %v4840_v50 = vmul.f32 0.70710677, %v7355_v23  ;;  %v4824_v3 = vmul.f32 0.5, %v7355_v23 }
 0x683   : > { %v4841_v35 = vmul.f32 0.70710677, %v7356_v1  ;;  %v4777_v2 = vpop.f32.mrb[34].mxu1  ;;  %v4825_v5 = vmul.f32 0.5, %v7356_v1 }
 0x684   : > { %7923 = verf.f32 %v4840_v50  ;;  %v7357_v58 = vadd.f32 %v4777_v2, %v3778_v62  ;;  %v4779_v27 = vpop.f32.mrb[35].mxu1 }
 0x685   : > { %7925 = verf.f32 %v4841_v35  ;;  %v7358_v25 = vadd.f32 %v4779_v27, %v3778_v62 }
 0x686   : > { %v4842_v6 = vmul.f32 0.70710677, %v7357_v58  ;;  %v4826_v53 = vmul.f32 0.5, %v7357_v58 }
 0x687   : > { %v4843_v51 = vmul.f32 0.70710677, %v7358_v25  ;;  %v4784_v20 = vpop.f32.mrb[36].mxu1  ;;  %v4827_v22 = vmul.f32 0.5, %v7358_v25 }
 0x688   : > { %7927 = verf.f32 %v4842_v6  ;;  %v7359_v14 = vadd.f32 %v4784_v20, %v3783_v44  ;;  %v4786_v34 = vpop.f32.mrb[37].mxu1 }
 0x689   : > { %7929 = verf.f32 %v4843_v51  ;;  %v7360_v8 = vadd.f32 %v4786_v34, %v3783_v44 }
 0x68a   : > { %v4844_v48 = vmul.f32 0.70710677, %v7359_v14  ;;  %v4828_v46 = vmul.f32 0.5, %v7359_v14 }
 0x68b   : > { %v4845_v17 = vmul.f32 0.70710677, %v7360_v8  ;;  %v4791_v59 = vpop.f32.mrb[38].mxu1  ;;  %v4829_v9 = vmul.f32 0.5, %v7360_v8 }
 0x68c   : > { %7931 = verf.f32 %v4844_v48  ;;  %v7361_v16 = vadd.f32 %v4791_v59, %v3788_v41  ;;  %v4793_v15 = vpop.f32.mrb[39].mxu1 }
 0x68d   : > { %7933 = verf.f32 %v4845_v17  ;;  %v7362_v11 = vadd.f32 %v4793_v15, %v3788_v41 }
 0x68e   : > { %v7924_v45 = vpop.eup %7923  ;;  %v4846_v38 = vmul.f32 0.70710677, %v7361_v16  ;;  %v10110_v2 = vmul.f32 0.5, %v7361_v16 }
 0x68f   : > { %v7926_v30 = vpop.eup %7925  ;;  %v4872_v40 = vadd.f32 1.0, %v7924_v45  ;;  %v4847_v0 = vmul.f32 0.70710677, %v7362_v11  ;;  %v4798_v32 = vpop.f32.mrb[40].mxu1  ;;  %v4831_v58 = vmul.f32 0.5, %v7362_v11 }
 0x690   : > { %v4873_v47 = vadd.f32 1.0, %v7926_v30  ;;  %7935 = verf.f32 %v4846_v38  ;;  %v7363_v50 = vadd.f32 %v4798_v32, %v3793_v43  ;;  %v4800_v62 = vpop.f32.mrb[41].mxu1  ;;  %v3803_v30 = vpop.permute.xlu0 %3802 }
 0x691   : > { %v10108_v35 = vmul.f32 %v4872_v40, %v4824_v3  ;;  %7937 = verf.f32 %v4847_v0  ;;  %v7364_v23 = vadd.f32 %v4800_v62, %v3793_v43 }
 0x692   : > { %v7928_v1 = vpop.eup %7927  ;;  %v4889_v19 = vmul.f32 %v4873_v47, %v4825_v5  ;;  %v10112_v27 = vmul.f32 0.5, %v7363_v50  ;;  %v4848_v25 = vmul.f32 0.70710677, %v7363_v50 }
 0x693   : > { %v7930_v6 = vpop.eup %7929  ;;  %v4970_v44 = vand.u32 4294901760, %v10108_v35  ;;  %v4874_v51 = vadd.f32 1.0, %v7928_v1  ;;  %v10115_v20 = vmul.f32 0.5, %v7364_v23  ;;  %v4849_v29 = vmul.f32 0.70710677, %v7364_v23  ;;  %v4805_v14 = vpop.f32.mrb[42].mxu1 }
 0x694   : > { %v4875_v34 = vadd.f32 1.0, %v7930_v6  ;;  %7939 = verf.f32 %v4848_v25  ;;  %v7365_v8 = vadd.f32 %v4805_v14, %v3798_v4  ;;  %v4807_v48 = vpop.f32.mrb[43].mxu1  ;;  %v4968_v41 = vand.u32 4294901760, %v4889_v19 }
 0x695   : > { %v10120_v17 = vsub.f32 %v10108_v35, %v4970_v44  ;;  %v10122_v59 = vmul.f32 %v4874_v51, %v4826_v53  ;;  %7941 = verf.f32 %v4849_v29  ;;  %v7366_v16 = vadd.f32 %v4807_v48, %v3798_v4 }
 0x696   : > { %v7932_v15 = vpop.eup %7931  ;;  %v4891_v11 = vmul.f32 %v4875_v34, %v4827_v22  ;;  %v10124_v45 = vmul.f32 0.5, %v7365_v8  ;;  %v4850_v3 = vmul.f32 0.70710677, %v7365_v8  ;;  %v10126_v5 = vsub.f32 %v4889_v19, %v4968_v41  ;;  %v3808_v34 = vpop.permute.xlu1 %3807 }
 0x697   : > { %v7934_v38 = vpop.eup %7933  ;;  %v10894_v43 = vand.u32 4294901760, %v10120_v17  ;;  %v4974_v40 = vand.u32 4294901760, %v10122_v59  ;;  %v4876_v0 = vadd.f32 1.0, %v7932_v15  ;;  %v10130_v32 = vmul.f32 0.5, %v7366_v16  ;;  %v4812_v53 = vpop.f32.mrb[44].mxu1 }
 0x698   : > { %v4877_v47 = vadd.f32 1.0, %v7934_v38  ;;  %7943 = verf.f32 %v4850_v3  ;;  %v4851_v50 = vmul.f32 0.70710677, %v7366_v16  ;;  %v7367_v62 = vadd.f32 %v4812_v53, %v3803_v30  ;;  %v4814_v22 = vpop.f32.mrb[45].mxu1 }
 0x699   : > { %v10133_v23 = vsub.f32 %v10122_v59, %v4974_v40  ;;  %v4892_v1 = vmul.f32 %v4876_v0, %v4828_v46  ;;  %v7368_v19 = vadd.f32 %v4814_v22, %v3803_v30  ;;  %v4972_v25 = vand.u32 4294901760, %v4891_v11 }
 0x69a   : > { %v7936_v6 = vpop.eup %7935  ;;  %v4893_v4 = vmul.f32 %v4877_v47, %v4829_v9  ;;  %7945 = verf.f32 %v4851_v50  ;;  %v10135_v51 = vmul.f32 0.5, %v7367_v62  ;;  %v4852_v29 = vmul.f32 0.70710677, %v7367_v62 }
 0x69b   : > { %v7938_v14 = vpop.eup %7937  ;;  %v10893_v8 = vand.u32 4294901760, %v10133_v23  ;;  %v4978_v48 = vand.u32 4294901760, %v4892_v1  ;;  %v4878_v16 = vadd.f32 1.0, %v7936_v6  ;;  %v10138_v15 = vmul.f32 0.5, %v7368_v19  ;;  %v4819_v3 = vpop.f32.mrb[46].mxu1 }
 0x69c   : > { %v4879_v59 = vadd.f32 1.0, %v7938_v14  ;;  %7947 = verf.f32 %v4852_v29  ;;  %v4853_v46 = vmul.f32 0.70710677, %v7368_v19  ;;  %v7369_v38 = vadd.f32 %v4819_v3, %v3808_v34  ;;  %v4821_v30 = vpop.f32.mrb[47].mxu1 }
 0x69d   : > { %v10140_v0 = vsub.f32 %v4892_v1, %v4978_v48  ;;  %v4894_v9 = vmul.f32 %v4878_v16, %v10110_v2  ;;  %v7370_v53 = vadd.f32 %v4821_v30, %v3808_v34  ;;  %v10143_v47 = vpack.c.bf16 %v4972_v25, %v4968_v41 }
 0x69e   : > { %v7940_v50 = vpop.eup %7939  ;;  %v4895_v62 = vmul.f32 %v4879_v59, %v4831_v58  ;;  %7949 = verf.f32 %v4853_v46  ;;  %v10145_v22 = vmul.f32 0.5, %v7369_v38  ;;  %v4854_v6 = vmul.f32 0.70710677, %v7369_v38 }
 0x69f   : > { %v7942_v63 = vpop.eup %7941  ;;  %v10898_v14 = vand.u32 4294901760, %v10140_v0  ;;  %v4982_v29 = vand.u32 4294901760, %v4894_v9  ;;  %v4880_v19 = vadd.f32 1.0, %v7940_v50  ;;  %v10148_v3 = vmul.f32 0.5, %v7370_v53  ;;  %7098 = vmatprep.subr.bf16.mxu0 %v10143_v47 }
 0x6a0   : > { %v4881_v1 = vadd.f32 1.0, %v7942_v63  ;;  %7951 = verf.f32 %v4854_v6  ;;  %v4855_v2 = vmul.f32 0.70710677, %v7370_v53  ;;  %v10151_v41 = vsub.f32 %v4891_v11, %v4972_v25 }
 0x6a1   : > { %v10153_v34 = vsub.f32 %v4894_v9, %v4982_v29  ;;  %v4896_v58 = vmul.f32 %v4880_v19, %v10112_v27  ;;  %v10158_v16 = vpack.c.bf16 %v4974_v40, %v4970_v44  ;;  %v4976_v59 = vand.u32 4294901760, %v4893_v4 }
 0x6a2   : > { %v7944_v46 = vpop.eup %7943  ;;  %v4897_v38 = vmul.f32 %v4881_v1, %v10115_v20  ;;  %7953 = verf.f32 %v4855_v2  ;;  %v4980_v30 = vand.u32 4294901760, %v4895_v62  ;;  %v10161_v50 = vpack.c.bf16 %v4982_v29, %v4978_v48 }
 0x6a3   : > { %v10897_v63 = vand.u32 4294901760, %v10153_v34  ;;  %v4986_v11 = vand.u32 4294901760, %v4896_v58  ;;  %v4882_v25 = vadd.f32 1.0, %v7944_v46  ;;  %7100 = vmatpush1.bf16.msra.mxu0 %v10158_v16  ;;  %v10165_v9 = vsub.f32 %v4893_v4, %v4976_v59 }
 0x6a4   : > { %v7946_v27 = vpop.eup %7945  ;;  %v10167_v35 = vpack.c.bf16 %v4980_v30, %v4976_v59  ;;  %v10169_v44 = vsub.f32 %v4895_v62, %v4980_v30  ;;  %v4984_v40 = vand.u32 4294901760, %v4897_v38  ;;  %v10895_v20 = vand.u32 4294901760, %v10126_v5 }
 0x6a5   : > { %v10172_v53 = vsub.f32 %v4896_v58, %v4986_v11  ;;  %v4898_v48 = vmul.f32 %v4882_v25, %v10124_v45  ;;  %v4883_v6 = vadd.f32 1.0, %v7946_v27  ;;  %v10896_v29 = vand.u32 4294901760, %v10151_v41 }
 0x6a6   : > { %v7948_v19 = vpop.eup %7947  ;;  %7102 = vmatprep.subr.bf16.mxu0 %v10167_v35  ;;  %v10177_v4 = vsub.f32 %v4897_v38, %v4984_v40  ;;  %v5140_v62 = vsub.f32 %v10126_v5, %v10895_v20  ;;  %v5146_v1 = vsub.f32 %v10120_v17, %v10894_v43  ;;  %v5158_v45 = vsub.f32 %v10133_v23, %v10893_v8 }
 0x6a7   : > { %v10901_v2 = vand.u32 4294901760, %v10172_v53  ;;  %v4990_v58 = vand.u32 4294901760, %v4898_v48  ;;  %v4899_v59 = vmul.f32 %v4883_v6, %v10130_v32  ;;  %v4884_v46 = vadd.f32 1.0, %v7948_v19  ;;  %7104 = vmatpush1.bf16.msra.mxu0 %v10161_v50 }
 0x6a8   : > { %v7950_v38 = vpop.eup %7949  ;;  %v5141_v30 = vand.u32 4294901760, %v5140_v62  ;;  %v5152_v25 = vsub.f32 %v10151_v41, %v10896_v29  ;;  %v5147_v27 = vand.u32 4294901760, %v5146_v1  ;;  %v5159_v56 = vand.u32 4294901760, %v5158_v45 }
 0x6a9   : > { %v10194_v52 = vsub.f32 %v4898_v48, %v4990_v58  ;;  %v4900_v12 = vmul.f32 %v4884_v46, %v10135_v51  ;;  %v4885_v21 = vadd.f32 1.0, %v7950_v38  ;;  %v4988_v31 = vand.u32 4294901760, %v4899_v59 }
 0x6aa   : > { %v7952_v8 = vpop.eup %7951  ;;  %v10197_v43 = vpack.c.bf16 %v4990_v58, %v4986_v11  ;;  %v5153_v32 = vand.u32 4294901760, %v5152_v25  ;;  %v10199_v6 = vpack.c.bf16 %v5159_v56, %v5147_v27  ;;  %v10899_v19 = vand.u32 4294901760, %v10165_v9 }
 0x6ab   : > { %v10902_v62 = vand.u32 4294901760, %v10194_v52  ;;  %v4994_v20 = vand.u32 4294901760, %v4900_v12  ;;  %v4901_v1 = vmul.f32 %v4885_v21, %v10138_v15  ;;  %v4886_v45 = vadd.f32 1.0, %v7952_v8 }
 0x6ac   : > { %v7954_v48 = vpop.eup %7953  ;;  %v10204_v29 = vpack.c.bf16 %v4988_v31, %v4984_v40  ;;  %v10206_v51 = vsub.f32 %v4899_v59, %v4988_v31  ;;  %v7113_v46 = vpack.c.bf16 %v5153_v32, %v5141_v30  ;;  %v5164_v11 = vsub.f32 %v10165_v9, %v10899_v19 }
 0x6ad   : > { %v10211_v56 = vsub.f32 %v4900_v12, %v4994_v20  ;;  %v4902_v58 = vmul.f32 %v4886_v45, %v10145_v22  ;;  %v4887_v38 = vadd.f32 1.0, %v7954_v48  ;;  %v4992_v25 = vand.u32 4294901760, %v4901_v1 }
 0x6ae   : > { %7106 = vmatprep.subr.bf16.mxu0 %v10204_v29  ;;  %v5165_v21 = vand.u32 4294901760, %v5164_v11  ;;  %v10900_v8 = vand.u32 4294901760, %v10169_v44  ;;  %v5170_v31 = vsub.f32 %v10140_v0, %v10898_v14  ;;  %v5182_v15 = vsub.f32 %v10153_v34, %v10897_v63 }
 0x6af   : > { %v10903_v12 = vand.u32 4294901760, %v10211_v56  ;;  %v4998_v40 = vand.u32 4294901760, %v4902_v58  ;;  %v4903_v22 = vmul.f32 %v4887_v38, %v10148_v3  ;;  %7108 = vmatpush1.bf16.msra.mxu0 %v10197_v43  ;;  %v10225_v59 = vsub.f32 %v4901_v1, %v4992_v25 }
 0x6b0   : > { %v5176_v30 = vsub.f32 %v10169_v44, %v10900_v8  ;;  %v5171_v27 = vand.u32 4294901760, %v5170_v31  ;;  %v5183_v32 = vand.u32 4294901760, %v5182_v15  ;;  %v5187_v45 = vand.u32 4294901760, %v10177_v4 }
 0x6b1   : > { %v10231_v48 = vsub.f32 %v4902_v58, %v4998_v40  ;;  %v4996_v11 = vand.u32 4294901760, %v4903_v22  ;;  %v10233_v63 = vpack.c.bf16 %v4998_v40, %v4994_v20  ;;  %v5199_v14 = vand.u32 4294901760, %v10206_v51 }
 0x6b2   : > { %v5177_v3 = vand.u32 4294901760, %v5176_v30  ;;  %v7119_v38 = vpack.c.bf16 %v5183_v32, %v5171_v27  ;;  %v5188_v1 = vsub.f32 %v10177_v4, %v5187_v45  ;;  %v5194_v19 = vsub.f32 %v10172_v53, %v10901_v2 }
 0x6b3   : > { %11072 = vst [vmem:[#allocation12_spill] sm:$0xff] %v10233_v63  ;;  %v5229_v31 = vand.u32 4294901760, %v10231_v48  ;;  %v10241_v15 = vpack.c.bf16 %v4996_v11, %v4992_v25  ;;  %v10243_v8 = vsub.f32 %v4903_v22, %v4996_v11  ;;  %v5200_v58 = vsub.f32 %v10206_v51, %v5199_v14 }
 0x6b4   : > { %v7117_v20 = vpack.c.bf16 %v5177_v3, %v5165_v21  ;;  %v5189_v40 = vand.u32 4294901760, %v5188_v1  ;;  %v5195_v57 = vand.u32 4294901760, %v5194_v19  ;;  %v5206_v30 = vsub.f32 %v10194_v52, %v10902_v62 }
 0x6b5   : > { %11073 = vst [vmem:[#allocation16_spill] sm:$0xff] %v10241_v15  ;;  %7110 = vmatprep.subr.bf16.mxu0 %v10241_v15  ;;  %v5201_v27 = vand.u32 4294901760, %v5200_v58  ;;  %v5211_v32 = vand.u32 4294901760, %v10225_v59  ;;  %v5223_v2 = vand.u32 4294901760, %v10243_v8  ;;  %v5218_v25 = vsub.f32 %v10211_v56, %v10903_v12  ;;  %v513_v12 = vld [vmem:[%s10786_s9 + $0x30] sm:$0xff] }
 0x6b6   : > { %7112 = vmatpush1.bf16.msra.mxu0 %v10233_v63  ;;  %v5207_v21 = vand.u32 4294901760, %v5206_v30  ;;  %v5230_v19 = vsub.f32 %v10231_v48, %v5229_v31  ;;  %v7129_v22 = vpack.c.bf16 %v10151_v41, %v10126_v5  ;;  %v7133_v49 = vpack.c.bf16 %v10169_v44, %v10165_v9 }
 0x6b7   : > { %7114 = vmatprep.subr.bf16.mxu0 %v7113_v46  ;;  %v7121_v3 = vpack.c.bf16 %v5201_v27, %v5189_v40  ;;  %v5212_v1 = vsub.f32 %v10225_v59, %v5211_v32  ;;  %v5224_v58 = vsub.f32 %v10243_v8, %v5223_v2  ;;  %v5219_v62 = vand.u32 4294901760, %v5218_v25 }
 0x6b8   : > { %v7123_v30 = vpack.c.bf16 %v5207_v21, %v5195_v57  ;;  %v5231_v63 = vand.u32 4294901760, %v5230_v19  ;;  %v7135_v15 = vpack.c.bf16 %v10153_v34, %v10140_v0  ;;  %v11074_v46 = vand.u32 4294901760, %v10073_v55 }
 0x6b9   : > { %v5213_v40 = vand.u32 4294901760, %v5212_v1  ;;  %v5225_v27 = vand.u32 4294901760, %v5224_v58  ;;  %v7137_v25 = vpack.c.bf16 %v10206_v51, %v10177_v4  ;;  %v4963_v21 = vsel %vm1525_vm2, %v513_v12, 0  ;;  %v514_v58 = vld [vmem:[%s10786_s9 + $0x38] sm:$0xff] }
 0x6ba   : > { %5054 = vmatmul.mubr.f32.vlgmr.msra.gmra.mrb[32].mxu0 %v11074_v46  ;;  %v7127_v57 = vpack.c.bf16 %v5231_v63, %v5219_v62  ;;  %v7141_v19 = vpack.c.bf16 %v10243_v8, %v10225_v59  ;;  %v11075_v46 = vand.u32 4294901760, %v10126_v5  ;;  %v11077_v63 = vand.u32 4294901760, %v10120_v17 }
 0x6bb   : > { %7116 = vmatpush1.bf16.msra.mxu0 %v10199_v6  ;;  %5059 = vmatprep.mubr.f32.mxu0 %v10949_v60  ;;  %v7125_v1 = vpack.c.bf16 %v5225_v27, %v5213_v40  ;;  %v11076_v6 = vand.u32 4294901760, %v10151_v41  ;;  %v11078_v62 = vand.u32 4294901760, %v10133_v23  ;;  %v11079_v12 = vand.u32 4294901760, %v10165_v9 }
 0x6bc   : > { %7118 = vmatprep.subr.bf16.mxu0 %v7117_v20  ;;  %v11080_v59 = vand.u32 4294901760, %v10169_v44  ;;  %v11081_v40 = vand.u32 4294901760, %v10140_v0  ;;  %v11082_v5 = vand.u32 4294901760, %v10153_v34  ;;  %v10310_v41 = vpack.c.bf16 %v5199_v14, %v5187_v45  ;;  %v11093_v0 = vld [vmem:[#allocation12_spill] sm:$0xff] }
 0x6bd   : > { %v10290_v11 = vpack.c.bf16 %v11076_v6, %v11075_v46  ;;  %v10296_v8 = vpack.c.bf16 %v11078_v62, %v11077_v63  ;;  %v11083_v46 = vand.u32 4294901760, %v10172_v53  ;;  %v11084_v6 = vand.u32 4294901760, %v10194_v52 }
 0x6be   : > { %v10302_v20 = vpack.c.bf16 %v11080_v59, %v11079_v12  ;;  %v10308_v27 = vpack.c.bf16 %v11082_v5, %v11081_v40  ;;  %v10318_v62 = vpack.c.bf16 %v5223_v2, %v5211_v32  ;;  %v11085_v55 = vand.u32 4294901760, %v10078_v13 }
 0x6bf   : > { %v10316_v63 = vpack.c.bf16 %v11084_v6, %v11083_v46  ;;  %v5095_v12 = vand.u32 4294901760, %v10103_v42  ;;  %v10325_v59 = vsub.f32 %v10092_v39, %v10106_v7  ;;  %v10327_v40 = vand.u32 4294901760, %v4963_v21  ;;  %7120 = vmatpush1.bf16.msra.mxu0 %v7119_v38 }
 0x6c0   : > { %5065 = vmatmul.mubr.f32.gmra.mrb[34].mxu0 %v11085_v55  ;;  %v11086_v14 = vand.u32 4294901760, %v10211_v56  ;;  %v4966_v2 = vsel %vm1525_vm2, %v514_v58, 0  ;;  %7122 = vmatprep.subr.bf16.mxu0 %v7121_v3  ;;  %v5086_v13 = vand.u32 4294901760, %v10100_v54  ;;  %v11087_v32 = vand.u32 4294901760, %v10086_v61 }
 0x6c1   : > { %5070 = vmatprep.mubr.f32.mxu0 %v10949_v60  ;;  %v5096_v39 = vsub.f32 %v10103_v42, %v5095_v12  ;;  %v5106_v55 = vand.u32 4294901760, %v10325_v59  ;;  %v10345_v38 = vand.u32 4294901760, %v4966_v2  ;;  %v11094_v34 = vand.u32 4294901760, %v10050_v26 }
 0x6c2   : > { %v10331_v45 = vpack.c.bf16 %v5229_v31, %v11086_v14  ;;  %v10343_v31 = vsub.f32 %v4963_v21, %v10327_v40  ;;  %v11095_v9 = vand.u32 4294901760, %v10053_v10  ;;  %v11096_v44 = vand.u32 4294901760, %v10056_v24 }
 0x6c3   : > { %7124 = vmatpush1.bf16.msra.mxu0 %v7123_v30  ;;  %v5097_v54 = vand.u32 4294901760, %v5096_v39  ;;  %v5107_v61 = vsub.f32 %v10325_v59, %v5106_v55  ;;  %v10353_v58 = vsub.f32 %v4966_v2, %v10345_v38  ;;  %v11103_v2 = vld [vmem:[#allocation10_spill] sm:$0xff] }
 0x6c4   : > { %5076 = vmatmul.mubr.f32.gmra.mrb[36].mxu0 %v11087_v32  ;;  %7126 = vmatprep.subr.bf16.mxu0 %v7125_v1  ;;  %v5117_v3 = vand.u32 4294901760, %v10343_v31 }
 0x6c5   : > { %5081 = vmatprep.mubr.f32.mxu0 %v10949_v60  ;;  %v5108_v30 = vand.u32 4294901760, %v5107_v61  ;;  %v5128_v1 = vand.u32 4294901760, %v10353_v58 }
 0x6c6   : > { %v5118_v21 = vsub.f32 %v10343_v31, %v5117_v3 }
 0x6c7   : > { %7128 = vmatpush1.bf16.msra.mxu0 %v7127_v57  ;;  %v5129_v46 = vsub.f32 %v10353_v58, %v5128_v1  ;;  %v11088_v57 = vpack.c.bf16 %v10133_v23, %v10120_v17  ;;  %v11089_v17 = vpack.c.bf16 %v10194_v52, %v10172_v53  ;;  %v11091_v52 = vld [vmem:[#allocation16_spill] sm:$0xff]  ;;  %v11092_v23 = vld [vmem:[#allocation22_spill] sm:$0xff] }
 0x6c8   : > { %5087 = vmatmul.mubr.f32.gmra.mrb[38].mxu0 %v5086_v13  ;;  %7130 = vmatprep.subr.bf16.mxu0 %v7129_v22  ;;  %v5119_v5 = vand.u32 4294901760, %v5118_v21 }
 0x6c9   : > { %5092 = vmatprep.mubr.f32.mxu0 %v10949_v60  ;;  %v5130_v22 = vand.u32 4294901760, %v5129_v46  ;;  %v11105_v46 = vld [vmem:[#allocation8_spill] sm:$0xff] }
 0x6cc   : > { %5098 = vmatmul.mubr.f32.gmra.mrb[40].mxu0 %v5097_v54 }
 0x6cd   : > { %5103 = vmatprep.mubr.f32.mxu0 %v10949_v60 }
 0x6d0   : > { %5109 = vmatmul.mubr.f32.gmra.mrb[42].mxu0 %v5108_v30 }
 0x6d1   : > { %5114 = vmatprep.mubr.f32.mxu0 %v10949_v60 }
 0x6d4   : > { %5120 = vmatmul.mubr.f32.gmra.mrb[44].mxu0 %v5119_v5 }
 0x6d5   : > { %5125 = vmatprep.mubr.f32.mxu0 %v10949_v60 }
 0x6d8   : > { %5131 = vmatmul.mubr.f32.gmra.mrb[46].mxu0 %v5130_v22 }
 0x6d9   : > { %5281 = vmatprep.mubr.f32.mxu0 %v10949_v60 }
 0x6dc   : > { %5283 = vmatmul.mubr.f32.vlgmr.msra.gmra.mrb[32].mxu0 %v10042_v37 }
 0x6dd   : > { %7132 = vmatpush1.bf16.msra.mxu0 %v11088_v57  ;;  %5288 = vmatprep.mubr.f32.mxu0 %v10949_v60 }
 0x6de   : > { %7134 = vmatprep.subr.bf16.mxu0 %v7133_v49  ;;  %v11090_v49 = vpack.c.bf16 %v10231_v48, %v10211_v56 }
 0x6e0   : > { %5290 = vmatmul.mubr.f32.gmra.mrb[34].mxu0 %v10044_v18 }
 0x6e1   : > { %7136 = vmatpush1.bf16.msra.mxu0 %v7135_v15  ;;  %5295 = vmatprep.mubr.f32.mxu0 %v10949_v60  ;;  %v11100_v15 = vld [vmem:[#allocation17_spill] sm:$0xff] }
 0x6e2   : > { %7138 = vmatprep.subr.bf16.mxu0 %v7137_v25 }
 0x6e4   : > { %5297 = vmatmul.mubr.f32.gmra.mrb[36].mxu0 %v10046_v33 }
 0x6e5   : > { %7140 = vmatpush1.bf16.msra.mxu0 %v11089_v17  ;;  %5302 = vmatprep.mubr.f32.mxu0 %v10949_v60 }
 0x6e6   : > { %7142 = vmatprep.subr.bf16.mxu0 %v7141_v19 }
 0x6e8   : > { %5304 = vmatmul.mubr.f32.gmra.mrb[38].mxu0 %v10058_v36 }
 0x6e9   : > { %7144 = vmatpush1.bf16.msra.mxu0 %v11090_v49  ;;  %5309 = vmatprep.mubr.f32.mxu0 %v10949_v60 }
 0x6ea   : > { %7146 = vmatprep.subr.bf16.mxu0 %v10143_v47 }
 0x6ec   : > { %5311 = vmatmul.mubr.f32.gmra.mrb[40].mxu0 %v10089_v28 }
 0x6ed   : > { %5316 = vmatprep.mubr.f32.mxu0 %v10949_v60 }
 0x6f0   : > { %5318 = vmatmul.mubr.f32.gmra.mrb[42].mxu0 %v10106_v7 }
 0x6f1   : > { %5323 = vmatprep.mubr.f32.mxu0 %v10949_v60 }
 0x6f4   : > { %5325 = vmatmul.mubr.f32.gmra.mrb[44].mxu0 %v10327_v40 }
 0x6f5   : > { %5330 = vmatprep.mubr.f32.mxu0 %v10949_v60 }
 0x6f8   : > { %5332 = vmatmul.mubr.f32.gmra.mrb[46].mxu0 %v10345_v38 }
 0x6f9   : > { %5434 = vmatprep.mubr.f32.mxu0 %v10949_v60 }
 0x6fc   : > { %5437 = vmatmul.mubr.f32.vlgmr.msra.gmra.mrb[32].mxu0 %v10050_v26  ;;  %v11097_v26 = vand.u32 4294901760, %v11092_v23 }
 0x6fd   : > { %7148 = vmatpush1.bf16.msra.mxu0 %v10158_v16  ;;  %5442 = vmatprep.mubr.f32.mxu0 %v10949_v60 }
 0x6fe   : > { %7150 = vmatprep.subr.bf16.mxu0 %v10167_v35 }
 0x700   : > { %5445 = vmatmul.mubr.f32.gmra.mrb[34].mxu0 %v10053_v10  ;;  %v4907_v10 = vpop.permute.xlu0 %4906 }
 0x701   : > { %7152 = vmatpush1.bf16.msra.mxu0 %v10161_v50  ;;  %5450 = vmatprep.mubr.f32.mxu0 %v10949_v60 }
 0x702   : > { %7154 = vmatprep.subr.bf16.mxu0 %v10204_v29 }
 0x704   : > { %5453 = vmatmul.mubr.f32.gmra.mrb[36].mxu0 %v10056_v24  ;;  %v4917_v19 = vpop.permute.xlu0 %4916 }
 0x705   : > { %7156 = vmatpush1.bf16.msra.mxu0 %v10197_v43  ;;  %5458 = vmatprep.mubr.f32.mxu0 %v10949_v60 }
 0x706   : > { %7158 = vmatprep.subr.bf16.mxu0 %v11091_v52 }
 0x708   : > { %5461 = vmatmul.mubr.f32.gmra.mrb[38].mxu0 %v11092_v23  ;;  %v4927_v21 = vpop.permute.xlu0 %4926 }
 0x709   : > { %7160 = vmatpush1.bf16.msra.mxu0 %v11093_v0  ;;  %5466 = vmatprep.mubr.f32.mxu0 %v10949_v60 }
 0x70a   : > { %7162 = vmatprep.subr.bf16.mxu0 %v10290_v11 }
 0x70c   : > { %5469 = vmatmul.mubr.f32.gmra.mrb[40].mxu0 %v10103_v42 }
 0x70d   : > { %5474 = vmatprep.mubr.f32.mxu0 %v10949_v60 }
 0x710   : > { %5477 = vmatmul.mubr.f32.gmra.mrb[42].mxu0 %v10325_v59  ;;  %v11102_v59 = vld [vmem:[#allocation21_spill] sm:$0xff] }
 0x711   : > { %5482 = vmatprep.mubr.f32.mxu0 %v10949_v60 }
 0x714   : > { %5485 = vmatmul.mubr.f32.gmra.mrb[44].mxu0 %v10343_v31 }
 0x715   : > { %5490 = vmatprep.mubr.f32.mxu0 %v10949_v60 }
 0x718   : > { %5493 = vmatmul.mubr.f32.gmra.mrb[46].mxu0 %v10353_v58 }
 0x719   : > { %5579 = vmatprep.mubr.f32.mxu0 %v10949_v60 }
 0x71c   : > { %5583 = vmatmul.mubr.f32.vlgmr.msra.gmra.mrb[32].mxu0 %v11094_v34 }
 0x71d   : > { %7164 = vmatpush1.bf16.msra.mxu0 %v10296_v8  ;;  %5588 = vmatprep.mubr.f32.mxu0 %v10949_v60  ;;  %v11101_v8 = vld [vmem:[#allocation28_spill] sm:$0xff] }
 0x71e   : > { %7166 = vmatprep.subr.bf16.mxu0 %v10302_v20 }
 0x720   : > { %5592 = vmatmul.mubr.f32.gmra.mrb[34].mxu0 %v11095_v9 }
 0x721   : > { %7168 = vmatpush1.bf16.msra.mxu0 %v10308_v27  ;;  %5597 = vmatprep.mubr.f32.mxu0 %v10949_v60 }
 0x722   : > { %7170 = vmatprep.subr.bf16.mxu0 %v10310_v41 }
 0x724   : > { %5601 = vmatmul.mubr.f32.gmra.mrb[36].mxu0 %v11096_v44 }
 0x725   : > { %7172 = vmatpush1.bf16.msra.mxu0 %v10316_v63  ;;  %5606 = vmatprep.mubr.f32.mxu0 %v10949_v60 }
 0x726   : > { %7174 = vmatprep.subr.bf16.mxu0 %v10318_v62 }
 0x728   : > { %5610 = vmatmul.mubr.f32.gmra.mrb[38].mxu0 %v11097_v26 }
 0x729   : > { %7176 = vmatpush1.bf16.msra.mxu0 %v10331_v45  ;;  %5615 = vmatprep.mubr.f32.mxu0 %v10949_v60 }
 0x72a   : > { %7178 = vmatprep.subr.bf16.mxu0 %v10143_v47 }
 0x72c   : > { %5619 = vmatmul.mubr.f32.gmra.mrb[40].mxu0 %v5095_v12 }
 0x72d   : > { %5624 = vmatprep.mubr.f32.mxu0 %v10949_v60 }
 0x730   : > { %5628 = vmatmul.mubr.f32.gmra.mrb[42].mxu0 %v5106_v55 }
 0x731   : > { %5633 = vmatprep.mubr.f32.mxu0 %v10949_v60 }
 0x734   : > { %5637 = vmatmul.mubr.f32.gmra.mrb[44].mxu0 %v5117_v3  ;;  %v11104_v3 = vld [vmem:[#allocation7_spill] sm:$0xff] }
 0x735   : > { %5642 = vmatprep.mubr.f32.mxu0 %v10949_v60 }
 0x738   : > { %5646 = vmatmul.mubr.f32.gmra.mrb[46].mxu0 %v5128_v1 }
 0x739   : > { %5764 = vmatprep.mubr.f32.mxu0 %v10949_v60 }
 0x73c   : > { %5766 = vmatmul.mubr.f32.vlgmr.msra.gmra.mrb[32].mxu0 %v10042_v37 }
 0x73d   : > { %7180 = vmatpush1.bf16.msra.mxu0 %v10158_v16  ;;  %5771 = vmatprep.mubr.f32.mxu0 %v10949_v60  ;;  %v4912_v16 = vpop.permute.xlu1 %4911 }
 0x73e   : > { %7182 = vmatprep.subr.bf16.mxu0 %v10167_v35 }
 0x740   : > { %5773 = vmatmul.mubr.f32.gmra.mrb[34].mxu0 %v10044_v18 }
 0x741   : > { %7184 = vmatpush1.bf16.msra.mxu0 %v10161_v50  ;;  %5778 = vmatprep.mubr.f32.mxu0 %v10949_v60  ;;  %v11099_v50 = vld [vmem:[#allocation27_spill] sm:$0xff]  ;;  %v4922_v45 = vpop.permute.xlu1 %4921 }
 0x742   : > { %7186 = vmatprep.subr.bf16.mxu0 %v10204_v29 }
 0x744   : > { %5780 = vmatmul.mubr.f32.gmra.mrb[36].mxu0 %v10046_v33 }
 0x745   : > { %7188 = vmatpush1.bf16.msra.mxu0 %v10197_v43  ;;  %5785 = vmatprep.mubr.f32.mxu0 %v10949_v60 }
 0x746   : > { %7190 = vmatprep.subr.bf16.mxu0 %v11091_v52 }
 0x748   : > { %5787 = vmatmul.mubr.f32.gmra.mrb[38].mxu0 %v10058_v36 }
 0x749   : > { %7192 = vmatpush1.bf16.msra.mxu0 %v11093_v0  ;;  %5792 = vmatprep.mubr.f32.mxu0 %v10949_v60 }
 0x74c   : > { %5794 = vmatmul.mubr.f32.gmra.mrb[40].mxu0 %v10089_v28 }
 0x74d   : > { %5799 = vmatprep.mubr.f32.mxu0 %v10949_v60 }
 0x750   : > { %5801 = vmatmul.mubr.f32.gmra.mrb[42].mxu0 %v10106_v7 }
 0x751   : > { %5806 = vmatprep.mubr.f32.mxu0 %v10949_v60 }
 0x754   : > { %5808 = vmatmul.mubr.f32.gmra.mrb[44].mxu0 %v10327_v40 }
 0x755   : > { %5813 = vmatprep.mubr.f32.mxu0 %v10949_v60 }
 0x758   : > { %5815 = vmatmul.mubr.f32.gmra.mrb[46].mxu0 %v10345_v38 }
 0x759   : > { %5901 = vmatprep.mubr.f32.mxu0 %v10949_v60 }
 0x75c   : > { %5903 = vmatmul.mubr.f32.vlgmr.msra.gmra.mrb[32].mxu0 %v10042_v37  ;;  %v523_v37 = vld [vmem:[%s10788_s11] sm:$0x3] }
 0x75d   : > { %5908 = vmatprep.mubr.f32.mxu0 %v10949_v60 }
 0x760   : > { %5910 = vmatmul.mubr.f32.gmra.mrb[34].mxu0 %v10044_v18  ;;  %v6060_v18 = vsel %vm1525_vm2, %v523_v37, 0 }
 0x761   : > { %5915 = vmatprep.mubr.f32.mxu0 %v10949_v60 }
 0x764   : > { %5917 = vmatmul.mubr.f32.gmra.mrb[36].mxu0 %v10046_v33  ;;  %v10500_v33 = vand.u32 4294901760, %v6060_v18 }
 0x765   : > { %5922 = vmatprep.mubr.f32.mxu0 %v10949_v60 }
 0x766   : > { %v10504_v47 = vsub.f32 %v6060_v18, %v10500_v33 }
 0x768   : > { %5924 = vmatmul.mubr.f32.gmra.mrb[38].mxu0 %v10058_v36  ;;  %v10910_v25 = vand.u32 4294901760, %v10504_v47 }
 0x769   : > { %5929 = vmatprep.mubr.f32.mxu0 %v10949_v60 }
 0x76a   : > { %v10514_v14 = vsub.f32 %v10504_v47, %v10910_v25 }
 0x76c   : > { %5931 = vmatmul.mubr.f32.gmra.mrb[40].mxu0 %v10089_v28  ;;  %v6147_v30 = vand.u32 4294901760, %v10514_v14 }
 0x76d   : > { %5936 = vmatprep.mubr.f32.mxu0 %v10949_v60 }
 0x770   : > { %5938 = vmatmul.mubr.f32.gmra.mrb[42].mxu0 %v10106_v7  ;;  %v11098_v7 = vld [vmem:[#allocation5_spill] sm:$0xff] }
 0x771   : > { %5943 = vmatprep.mubr.f32.mxu0 %v10949_v60 }
 0x774   : > { %5945 = vmatmul.mubr.f32.gmra.mrb[44].mxu0 %v10327_v40 }
 0x775   : > { %5950 = vmatprep.mubr.f32.mxu0 %v10949_v60 }
 0x778   : > { %5952 = vmatmul.mubr.f32.gmra.mrb[46].mxu0 %v10345_v38 }
 0x82f   : > { %v5904_v24 = vpop.f32.mrb[32].mxu0 }
 0x830   : > { %v7371_v36 = vadd.f32 %v5904_v24, %v4907_v10  ;;  %v5906_v28 = vpop.f32.mrb[33].mxu0 }
 0x831   : > { %v7372_v42 = vadd.f32 %v5906_v28, %v4907_v10 }
 0x832   : > { %v5958_v43 = vadd.f32 %v7371_v36, %v11098_v7  ;;  %v11106_v36 = vld [vmem:[#allocation11_spill] sm:$0xff] }
 0x833   : > { %v5959_v35 = vadd.f32 %v7372_v42, %v11099_v50  ;;  %v5911_v53 = vpop.f32.mrb[34].mxu0  ;;  %v4932_v42 = vpop.permute.xlu1 %4931 }
 0x834   : > { %v5990_v29 = vmul.f32 0.70710677, %v5958_v43  ;;  %v7373_v4 = vadd.f32 %v5911_v53, %v4912_v16  ;;  %v5913_v51 = vpop.f32.mrb[35].mxu0  ;;  %v5974_v61 = vmul.f32 0.5, %v5958_v43 }
 0x835   : > { %v5991_v56 = vmul.f32 0.70710677, %v5959_v35  ;;  %v7374_v48 = vadd.f32 %v5913_v51, %v4912_v16  ;;  %v5975_v1 = vmul.f32 0.5, %v5959_v35  ;;  %v11107_v16 = vld [vmem:[#allocation9_spill] sm:$0xff] }
 0x836   : > { %7955 = verf.f32 %v5990_v29  ;;  %v5960_v11 = vadd.f32 %v7373_v4, %v11100_v15 }
 0x837   : > { %7957 = verf.f32 %v5991_v56  ;;  %v5961_v20 = vadd.f32 %v7374_v48, %v11101_v8  ;;  %v5918_v27 = vpop.f32.mrb[36].mxu0 }
 0x838   : > { %v5992_v41 = vmul.f32 0.70710677, %v5960_v11  ;;  %v7375_v6 = vadd.f32 %v5918_v27, %v4917_v19  ;;  %v5920_v63 = vpop.f32.mrb[37].mxu0  ;;  %v5976_v5 = vmul.f32 0.5, %v5960_v11 }
 0x839   : > { %v5993_v62 = vmul.f32 0.70710677, %v5961_v20  ;;  %v7376_v12 = vadd.f32 %v5920_v63, %v4917_v19  ;;  %v5977_v49 = vmul.f32 0.5, %v5961_v20 }
 0x83a   : > { %7959 = verf.f32 %v5992_v41  ;;  %v5962_v40 = vadd.f32 %v7375_v6, %v11102_v59  ;;  %v11108_v41 = vld [vmem:[#allocation13_spill] sm:$0xff] }
 0x83b   : > { %7961 = verf.f32 %v5993_v62  ;;  %v5963_v13 = vadd.f32 %v7376_v12, %v11103_v2  ;;  %v5925_v32 = vpop.f32.mrb[38].mxu0  ;;  %v4937_v2 = vpop.permute.xlu0 %4936 }
 0x83c   : > { %v5994_v39 = vmul.f32 0.70710677, %v5962_v40  ;;  %v7377_v55 = vadd.f32 %v5925_v32, %v4922_v45  ;;  %v5927_v31 = vpop.f32.mrb[39].mxu0  ;;  %v5978_v52 = vmul.f32 0.5, %v5962_v40 }
 0x83d   : > { %v5995_v38 = vmul.f32 0.70710677, %v5963_v13  ;;  %v7378_v54 = vadd.f32 %v5927_v31, %v4922_v45  ;;  %v5979_v26 = vmul.f32 0.5, %v5963_v13 }
 0x83e   : > { %7963 = verf.f32 %v5994_v39  ;;  %v5964_v58 = vadd.f32 %v7377_v55, %v11104_v3  ;;  %v11109_v55 = vld [vmem:[#allocation14_spill] sm:$0xff] }
 0x83f   : > { %7965 = verf.f32 %v5995_v38  ;;  %v5965_v22 = vadd.f32 %v7378_v54, %v11105_v46  ;;  %v5932_v57 = vpop.f32.mrb[40].mxu0 }
 0x840   : > { %v7956_v17 = vpop.eup %7955  ;;  %v5996_v23 = vmul.f32 0.70710677, %v5964_v58  ;;  %v7379_v0 = vadd.f32 %v5932_v57, %v4927_v21  ;;  %v5934_v34 = vpop.f32.mrb[41].mxu0  ;;  %v10520_v24 = vmul.f32 0.5, %v5964_v58 }
 0x841   : > { %v7958_v9 = vpop.eup %7957  ;;  %v6022_v44 = vadd.f32 1.0, %v7956_v17  ;;  %v5997_v37 = vmul.f32 0.70710677, %v5965_v22  ;;  %v7380_v18 = vadd.f32 %v5934_v34, %v4927_v21  ;;  %v10525_v43 = vmul.f32 0.5, %v5965_v22  ;;  %v4942_v22 = vpop.permute.xlu1 %4941 }
 0x842   : > { %v6023_v10 = vadd.f32 1.0, %v7958_v9  ;;  %7967 = verf.f32 %v5996_v23  ;;  %v5966_v28 = vadd.f32 %v7379_v0, %v11106_v36  ;;  %v11111_v0 = vld [vmem:[#allocation15_spill] sm:$0xff] }
 0x843   : > { %v10523_v7 = vmul.f32 %v6022_v44, %v5974_v61  ;;  %7969 = verf.f32 %v5997_v37  ;;  %v5967_v50 = vadd.f32 %v7380_v18, %v11107_v16  ;;  %v5939_v35 = vpop.f32.mrb[42].mxu0 }
 0x844   : > { %v7960_v53 = vpop.eup %7959  ;;  %v10528_v29 = vmul.f32 %v6023_v10, %v5975_v1  ;;  %v10530_v4 = vmul.f32 0.5, %v5966_v28  ;;  %v5998_v51 = vmul.f32 0.70710677, %v5966_v28  ;;  %v7381_v56 = vadd.f32 %v5939_v35, %v4932_v42  ;;  %v5941_v48 = vpop.f32.mrb[43].mxu0 }
 0x845   : > { %v7962_v15 = vpop.eup %7961  ;;  %v6064_v11 = vand.u32 4294901760, %v10523_v7  ;;  %v6024_v19 = vadd.f32 1.0, %v7960_v53  ;;  %v10533_v8 = vmul.f32 0.5, %v5967_v50  ;;  %v5999_v20 = vmul.f32 0.70710677, %v5967_v50 }
 0x846   : > { %v6025_v27 = vadd.f32 1.0, %v7962_v15  ;;  %7971 = verf.f32 %v5998_v51  ;;  %v5968_v6 = vadd.f32 %v7381_v56, %v11108_v41  ;;  %v7382_v63 = vadd.f32 %v5941_v48, %v4932_v42  ;;  %v11112_v56 = vld [vmem:[#allocation23_spill] sm:$0xff] }
 0x847   : > { %v10539_v62 = vsub.f32 %v10523_v7, %v6064_v11  ;;  %v10541_v12 = vmul.f32 %v6024_v19, %v5976_v5  ;;  %7973 = verf.f32 %v5999_v20  ;;  %v5946_v59 = vpop.f32.mrb[44].mxu0  ;;  %v6062_v40 = vand.u32 4294901760, %v10528_v29 }
 0x848   : > { %v7964_v45 = vpop.eup %7963  ;;  %v6041_v13 = vmul.f32 %v6025_v27, %v5977_v49  ;;  %v10544_v32 = vmul.f32 0.5, %v5968_v6  ;;  %v6000_v39 = vmul.f32 0.70710677, %v5968_v6  ;;  %v5969_v31 = vadd.f32 %v7382_v63, %v11109_v55  ;;  %v5948_v38 = vpop.f32.mrb[45].mxu0  ;;  %v11110_v49 = vld [vmem:[#allocation18_spill] sm:$0xff] }
 0x849   : > { %v7966_v54 = vpop.eup %7965  ;;  %v6068_v61 = vand.u32 4294901760, %v10541_v12  ;;  %v6026_v3 = vadd.f32 1.0, %v7964_v45  ;;  %v7383_v58 = vadd.f32 %v5946_v59, %v4937_v2  ;;  %v7384_v21 = vadd.f32 %v5948_v38, %v4937_v2  ;;  %v11113_v45 = vld [vmem:[#allocation20_spill] sm:$0xff] }
 0x84a   : > { %v6027_v1 = vadd.f32 1.0, %v7966_v54  ;;  %7975 = verf.f32 %v6000_v39  ;;  %v10548_v5 = vmul.f32 0.5, %v5969_v31  ;;  %v6001_v46 = vmul.f32 0.70710677, %v5969_v31 }
 0x84b   : > { %v10551_v57 = vsub.f32 %v10541_v12, %v6068_v61  ;;  %v6042_v17 = vmul.f32 %v6026_v3, %v5978_v52  ;;  %v5970_v23 = vadd.f32 %v7383_v58, %v11110_v49  ;;  %v5971_v34 = vadd.f32 %v7384_v21, %v11111_v0  ;;  %v5953_v9 = vpop.f32.mrb[46].mxu0 }
 0x84c   : > { %v7968_v44 = vpop.eup %7967  ;;  %v6043_v37 = vmul.f32 %v6027_v1, %v5979_v26  ;;  %7977 = verf.f32 %v6001_v46  ;;  %v7385_v18 = vadd.f32 %v5953_v9, %v4942_v22  ;;  %v5955_v10 = vpop.f32.mrb[47].mxu0  ;;  %v6066_v36 = vand.u32 4294901760, %v6041_v13 }
 0x84d   : > { %v7970_v28 = vpop.eup %7969  ;;  %v6072_v42 = vand.u32 4294901760, %v6042_v17  ;;  %v6028_v16 = vadd.f32 1.0, %v7968_v44  ;;  %v10555_v50 = vmul.f32 0.5, %v5970_v23  ;;  %v6002_v35 = vmul.f32 0.70710677, %v5970_v23 }
 0x84e   : > { %v6029_v53 = vadd.f32 1.0, %v7970_v28  ;;  %v10557_v51 = vmul.f32 0.5, %v5971_v34  ;;  %v6003_v52 = vmul.f32 0.70710677, %v5971_v34  ;;  %v5972_v48 = vadd.f32 %v7385_v18, %v11112_v56 }
 0x84f   : > { %v10560_v15 = vsub.f32 %v6042_v17, %v6072_v42  ;;  %v6044_v26 = vmul.f32 %v6028_v16, %v10520_v24  ;;  %7979 = verf.f32 %v6002_v35  ;;  %v7386_v19 = vadd.f32 %v5955_v10, %v4942_v22 }
 0x850   : > { %v7972_v20 = vpop.eup %7971  ;;  %v6045_v27 = vmul.f32 %v6029_v53, %v10525_v43  ;;  %7981 = verf.f32 %v6003_v52  ;;  %v10564_v41 = vmul.f32 0.5, %v5972_v48  ;;  %v6004_v6 = vmul.f32 0.70710677, %v5972_v48 }
 0x851   : > { %v7974_v63 = vpop.eup %7973  ;;  %v6076_v12 = vand.u32 4294901760, %v6044_v26  ;;  %v6030_v59 = vadd.f32 1.0, %v7972_v20  ;;  %v5973_v2 = vadd.f32 %v7386_v19, %v11113_v45  ;;  %v10567_v39 = vpack.c.bf16 %v6066_v36, %v6062_v40 }
 0x852   : > { %v6031_v55 = vadd.f32 1.0, %v7974_v63  ;;  %7983 = verf.f32 %v6004_v6  ;;  %v10570_v24 = vsub.f32 %v10528_v29, %v6062_v40  ;;  %v10572_v31 = vsub.f32 %v6041_v13, %v6066_v36 }
 0x853   : > { %v10574_v38 = vsub.f32 %v6044_v26, %v6076_v12  ;;  %v6046_v43 = vmul.f32 %v6030_v59, %v10530_v4  ;;  %v10577_v54 = vmul.f32 0.5, %v5973_v2  ;;  %v6005_v3 = vmul.f32 0.70710677, %v5973_v2  ;;  %7194 = vmatprep.subr.bf16.mxu1 %v10567_v39 }
 0x854   : > { %v7976_v58 = vpop.eup %7975  ;;  %v6047_v21 = vmul.f32 %v6031_v55, %v10533_v8  ;;  %v10583_v1 = vpack.c.bf16 %v6068_v61, %v6064_v11  ;;  %v6070_v29 = vand.u32 4294901760, %v6043_v37  ;;  %v6074_v40 = vand.u32 4294901760, %v6045_v27 }
 0x855   : > { %v6080_v13 = vand.u32 4294901760, %v6046_v43  ;;  %v6032_v46 = vadd.f32 1.0, %v7976_v58  ;;  %7985 = verf.f32 %v6005_v3  ;;  %v10585_v22 = vpack.c.bf16 %v6076_v12, %v6072_v42 }
 0x856   : > { %v7978_v4 = vpop.eup %7977  ;;  %7196 = vmatpush1.bf16.msra.mxu1 %v10583_v1  ;;  %v10588_v17 = vpack.c.bf16 %v6074_v40, %v6070_v29  ;;  %v10590_v49 = vsub.f32 %v6043_v37, %v6070_v29  ;;  %v10592_v23 = vsub.f32 %v6045_v27, %v6074_v40  ;;  %v6078_v8 = vand.u32 4294901760, %v6047_v21 }
 0x857   : > { %v10594_v7 = vsub.f32 %v6046_v43, %v6080_v13  ;;  %v6048_v11 = vmul.f32 %v6032_v46, %v10544_v32  ;;  %v6033_v61 = vadd.f32 1.0, %v7978_v4  ;;  %v6156_v0 = vand.u32 4294901760, %v10570_v24 }
 0x858   : > { %7198 = vmatprep.subr.bf16.mxu1 %v10588_v17  ;;  %v10599_v34 = vsub.f32 %v6047_v21, %v6078_v8  ;;  %v6168_v9 = vand.u32 4294901760, %v10572_v31  ;;  %v6162_v44 = vand.u32 4294901760, %v10539_v62  ;;  %v6174_v37 = vand.u32 4294901760, %v10551_v57 }
 0x859   : > { %v7980_v18 = vpop.eup %7979  ;;  %v6084_v10 = vand.u32 4294901760, %v6048_v11  ;;  %v6049_v36 = vmul.f32 %v6033_v61, %v10548_v5  ;;  %v6157_v32 = vsub.f32 %v10570_v24, %v6156_v0  ;;  %v6180_v28 = vand.u32 4294901760, %v10590_v49 }
 0x85a   : > { %v7982_v42 = vpop.eup %7981  ;;  %v6034_v16 = vadd.f32 1.0, %v7980_v18  ;;  %7200 = vmatpush1.bf16.msra.mxu1 %v10585_v22  ;;  %v6169_v35 = vsub.f32 %v10572_v31, %v6168_v9  ;;  %v6163_v53 = vsub.f32 %v10539_v62, %v6162_v44  ;;  %v6175_v5 = vsub.f32 %v10551_v57, %v6174_v37 }
 0x85b   : > { %v10619_v52 = vsub.f32 %v6048_v11, %v6084_v10  ;;  %v6035_v56 = vadd.f32 1.0, %v7982_v42  ;;  %v6082_v48 = vand.u32 4294901760, %v6049_v36  ;;  %v10621_v26 = vpack.c.bf16 %v6084_v10, %v6080_v13 }
 0x85c   : > { %v7984_v19 = vpop.eup %7983  ;;  %v6050_v20 = vmul.f32 %v6034_v16, %v10555_v50  ;;  %v6158_v27 = vand.u32 4294901760, %v6157_v32  ;;  %v6170_v6 = vand.u32 4294901760, %v6169_v35  ;;  %v6164_v63 = vand.u32 4294901760, %v6163_v53 }
 0x85d   : > { %v6051_v12 = vmul.f32 %v6035_v56, %v10557_v51  ;;  %v6036_v59 = vadd.f32 1.0, %v7984_v19  ;;  %v10625_v45 = vpack.c.bf16 %v6082_v48, %v6078_v8  ;;  %v10627_v2 = vsub.f32 %v6049_v36, %v6082_v48 }
 0x85e   : > { %v6088_v55 = vand.u32 4294901760, %v6050_v20  ;;  %v7209_v43 = vpack.c.bf16 %v6170_v6, %v6158_v27  ;;  %v6176_v3 = vand.u32 4294901760, %v6175_v5  ;;  %v6181_v58 = vsub.f32 %v10590_v49, %v6180_v28 }
 0x85f   : > { %v7986_v21 = vpop.eup %7985  ;;  %v6052_v50 = vmul.f32 %v6036_v59, %v10564_v41  ;;  %7202 = vmatprep.subr.bf16.mxu1 %v10625_v45  ;;  %v6086_v29 = vand.u32 4294901760, %v6051_v12  ;;  %v6192_v51 = vand.u32 4294901760, %v10592_v23  ;;  %v10911_v40 = vand.u32 4294901760, %v10560_v15 }
 0x860   : > { %v10636_v13 = vsub.f32 %v6050_v20, %v6088_v55  ;;  %v6037_v46 = vadd.f32 1.0, %v7986_v21  ;;  %7204 = vmatpush1.bf16.msra.mxu1 %v10621_v26  ;;  %v7211_v4 = vpack.c.bf16 %v6176_v3, %v6164_v63  ;;  %v6182_v8 = vand.u32 4294901760, %v6181_v58 }
 0x861   : > { %v6092_v11 = vand.u32 4294901760, %v6052_v50  ;;  %v10639_v61 = vsub.f32 %v6051_v12, %v6086_v29  ;;  %v6193_v41 = vsub.f32 %v10592_v23, %v6192_v51  ;;  %v6187_v18 = vsub.f32 %v10560_v15, %v10911_v40 }
 0x862   : > { %v6053_v10 = vmul.f32 %v6037_v46, %v10577_v54  ;;  %v6198_v36 = vand.u32 4294901760, %v10574_v38  ;;  %v6204_v32 = vand.u32 4294901760, %v10599_v34  ;;  %v6216_v42 = vand.u32 4294901760, %v10627_v2 }
 0x863   : > { %v10651_v16 = vsub.f32 %v6052_v50, %v6092_v11  ;;  %v10653_v35 = vpack.c.bf16 %v6092_v11, %v6088_v55  ;;  %v6194_v53 = vand.u32 4294901760, %v6193_v41  ;;  %v6188_v5 = vand.u32 4294901760, %v6187_v18 }
 0x864   : > { %v6090_v56 = vand.u32 4294901760, %v6053_v10  ;;  %v6199_v48 = vsub.f32 %v10574_v38, %v6198_v36  ;;  %v6205_v19 = vsub.f32 %v10599_v34, %v6204_v32  ;;  %v6217_v20 = vsub.f32 %v10627_v2, %v6216_v42 }
 0x865   : > { %v7213_v54 = vpack.c.bf16 %v6194_v53, %v6182_v8  ;;  %v6210_v27 = vand.u32 4294901760, %v10594_v7  ;;  %v6222_v6 = vand.u32 4294901760, %v10619_v52  ;;  %v6228_v63 = vand.u32 4294901760, %v10639_v61 }
 0x866   : > { %v10661_v12 = vpack.c.bf16 %v6090_v56, %v6086_v29  ;;  %v6239_v59 = vsub.f32 %v6053_v10, %v6090_v56  ;;  %v6200_v55 = vand.u32 4294901760, %v6199_v48  ;;  %v6206_v3 = vand.u32 4294901760, %v6205_v19 }
 0x867   : > { %v6218_v58 = vand.u32 4294901760, %v6217_v20  ;;  %v6211_v21 = vsub.f32 %v10594_v7, %v6210_v27  ;;  %v6223_v50 = vsub.f32 %v10619_v52, %v6222_v6  ;;  %v6229_v46 = vsub.f32 %v10639_v61, %v6228_v63 }
 0x868   : > { %7206 = vmatprep.subr.bf16.mxu1 %v10661_v12  ;;  %v7215_v8 = vpack.c.bf16 %v6200_v55, %v6188_v5  ;;  %v6240_v11 = vand.u32 4294901760, %v6239_v59  ;;  %v6234_v41 = vand.u32 4294901760, %v10636_v13  ;;  %v6246_v18 = vand.u32 4294901760, %v10651_v16 }
 0x869   : > { %7208 = vmatpush1.bf16.msra.mxu1 %v10653_v35  ;;  %v7217_v29 = vpack.c.bf16 %v6218_v58, %v6206_v3  ;;  %v6212_v10 = vand.u32 4294901760, %v6211_v21  ;;  %v6224_v53 = vand.u32 4294901760, %v6223_v50  ;;  %v6230_v56 = vand.u32 4294901760, %v6229_v46 }
 0x86a   : > { %7210 = vmatprep.subr.bf16.mxu1 %v7209_v43  ;;  %v6241_v48 = vsub.f32 %v6239_v59, %v6240_v11  ;;  %v6235_v19 = vsub.f32 %v10636_v13, %v6234_v41  ;;  %v6247_v20 = vsub.f32 %v10651_v16, %v6246_v18  ;;  %v7225_v5 = vpack.c.bf16 %v10572_v31, %v10570_v24 }
 0x86b   : > { %v7219_v55 = vpack.c.bf16 %v6224_v53, %v6212_v10  ;;  %v7227_v25 = vpack.c.bf16 %v10551_v57, %v10539_v62  ;;  %v7229_v40 = vpack.c.bf16 %v10592_v23, %v10590_v49  ;;  %v7231_v3 = vpack.c.bf16 %v10574_v38, %v10560_v15 }
 0x86c   : > { %6148 = vmatmul.mubr.f32.vlgmr.msra.gmra.mrb[48].mxu1 %v6147_v30  ;;  %v6242_v43 = vand.u32 4294901760, %v6241_v48  ;;  %v6236_v58 = vand.u32 4294901760, %v6235_v19  ;;  %v6248_v21 = vand.u32 4294901760, %v6247_v20  ;;  %v7233_v50 = vpack.c.bf16 %v10627_v2, %v10599_v34 }
 0x86d   : > { %7212 = vmatpush1.bf16.msra.mxu1 %v7211_v4  ;;  %6298 = vmatprep.mubr.f32.mxu1 %v10949_v60  ;;  %v7235_v46 = vpack.c.bf16 %v10619_v52, %v10594_v7  ;;  %v7237_v10 = vpack.c.bf16 %v6239_v59, %v10639_v61  ;;  %v7239_v38 = vpack.c.bf16 %v10651_v16, %v10636_v13  ;;  %v11114_v52 = vand.u32 4294901760, %v10560_v15 }
 0x86e   : > { %7214 = vmatprep.subr.bf16.mxu1 %v7213_v54  ;;  %v7221_v14 = vpack.c.bf16 %v6242_v43, %v6230_v56  ;;  %v7223_v30 = vpack.c.bf16 %v6248_v21, %v6236_v58  ;;  %v7257_v53 = vpack.c.bf16 %v6168_v9, %v6156_v0  ;;  %v7259_v34 = vpack.c.bf16 %v6174_v37, %v6162_v44 }
 0x86f   : > { %v7261_v7 = vpack.c.bf16 %v6192_v51, %v6180_v28  ;;  %v7263_v2 = vpack.c.bf16 %v6198_v36, %v11114_v52  ;;  %v7265_v13 = vpack.c.bf16 %v6216_v42, %v6204_v32  ;;  %v7267_v4 = vpack.c.bf16 %v6222_v6, %v6210_v27 }
 0x870   : > { %v7269_v61 = vpack.c.bf16 %v6240_v11, %v6228_v63  ;;  %v7271_v24 = vpack.c.bf16 %v6246_v18, %v6234_v41 }
 0x871   : > { %7216 = vmatpush1.bf16.msra.mxu1 %v7215_v8 }
 0x872   : > { %7218 = vmatprep.subr.bf16.mxu1 %v7217_v29 }
 0x875   : > { %7220 = vmatpush1.bf16.msra.mxu1 %v7219_v55 }
 0x876   : > { %7222 = vmatprep.subr.bf16.mxu1 %v7221_v14 }
 0x879   : > { %7224 = vmatpush1.bf16.msra.mxu1 %v7223_v30 }
 0x87a   : > { %7226 = vmatprep.subr.bf16.mxu1 %v7225_v5 }
 0x87c   : > { %6300 = vmatmul.mubr.f32.vlgmr.msra.gmra.mrb[48].mxu1 %v10500_v33 }
 0x87d   : > { %7228 = vmatpush1.bf16.msra.mxu1 %v7227_v25  ;;  %6402 = vmatprep.mubr.f32.mxu1 %v10949_v60  ;;  %v11115_v25 = vand.u32 4294901760, %v10504_v47 }
 0x87e   : > { %7230 = vmatprep.subr.bf16.mxu1 %v7229_v40 }
 0x881   : > { %7232 = vmatpush1.bf16.msra.mxu1 %v7231_v3 }
 0x882   : > { %7234 = vmatprep.subr.bf16.mxu1 %v7233_v50 }
 0x885   : > { %7236 = vmatpush1.bf16.msra.mxu1 %v7235_v46 }
 0x886   : > { %7238 = vmatprep.subr.bf16.mxu1 %v7237_v10 }
 0x889   : > { %7240 = vmatpush1.bf16.msra.mxu1 %v7239_v38 }
 0x88a   : > { %7242 = vmatprep.subr.bf16.mxu1 %v10567_v39 }
 0x88c   : > { %6405 = vmatmul.mubr.f32.vlgmr.msra.gmra.mrb[48].mxu1 %v10504_v47  ;;  %v6057_v47 = vpop.permute.xlu0 %6056 }
 0x88d   : > { %7244 = vmatpush1.bf16.msra.mxu1 %v10583_v1  ;;  %6491 = vmatprep.mubr.f32.mxu1 %v10949_v60 }
 0x88e   : > { %7246 = vmatprep.subr.bf16.mxu1 %v10588_v17 }
 0x891   : > { %7248 = vmatpush1.bf16.msra.mxu1 %v10585_v22 }
 0x892   : > { %7250 = vmatprep.subr.bf16.mxu1 %v10625_v45 }
 0x895   : > { %7252 = vmatpush1.bf16.msra.mxu1 %v10621_v26 }
 0x896   : > { %7254 = vmatprep.subr.bf16.mxu1 %v10661_v12 }
 0x899   : > { %7256 = vmatpush1.bf16.msra.mxu1 %v10653_v35 }
 0x89a   : > { %7258 = vmatprep.subr.bf16.mxu1 %v7257_v53 }
 0x89c   : > { %6495 = vmatmul.mubr.f32.vlgmr.msra.gmra.mrb[48].mxu1 %v11115_v25 }
 0x89d   : > { %7260 = vmatpush1.bf16.msra.mxu1 %v7259_v34  ;;  %6613 = vmatprep.mubr.f32.mxu1 %v10949_v60 }
 0x89e   : > { %7262 = vmatprep.subr.bf16.mxu1 %v7261_v7 }
 0x8a1   : > { %7264 = vmatpush1.bf16.msra.mxu1 %v7263_v2 }
 0x8a2   : > { %7266 = vmatprep.subr.bf16.mxu1 %v7265_v13 }
 0x8a5   : > { %7268 = vmatpush1.bf16.msra.mxu1 %v7267_v4 }
 0x8a6   : > { %7270 = vmatprep.subr.bf16.mxu1 %v7269_v61 }
 0x8a9   : > { %7272 = vmatpush1.bf16.msra.mxu1 %v7271_v24 }
 0x8aa   : > { %7274 = vmatprep.subr.bf16.mxu1 %v10567_v39 }
 0x8ac   : > { %6615 = vmatmul.mubr.f32.vlgmr.msra.gmra.mrb[48].mxu1 %v10500_v33 }
 0x8ad   : > { %7276 = vmatpush1.bf16.msra.mxu1 %v10583_v1  ;;  %6701 = vmatprep.mubr.f32.mxu1 %v10949_v60 }
 0x8ae   : > { %7278 = vmatprep.subr.bf16.mxu1 %v10588_v17 }
 0x8b1   : > { %7280 = vmatpush1.bf16.msra.mxu1 %v10585_v22 }
 0x8b2   : > { %7282 = vmatprep.subr.bf16.mxu1 %v10625_v45 }
 0x8b5   : > { %7284 = vmatpush1.bf16.msra.mxu1 %v10621_v26 }
 0x8b6   : > { %7286 = vmatprep.subr.bf16.mxu1 %v10661_v12 }
 0x8b9   : > { %7288 = vmatpush1.bf16.msra.mxu1 %v10653_v35 }
 0x8bc   : > { %6703 = vmatmul.mubr.f32.vlgmr.msra.gmra.mrb[48].mxu1 %v10500_v33 }
 0x98f   : > { %v6704_v62 = vpop.f32.mrb[48].mxu1 }
 0x990   : > { %v7387_v60 = vadd.f32 %v6704_v62, %v6057_v47  ;;  %v6706_v57 = vpop.f32.mrb[49].mxu1 }
 0x991   : > { %v7388_v15 = vadd.f32 %v6706_v57, %v6057_v47 }
 0x993   : > { %v6711_v39 = vcombine.low %v7387_v60, %v7388_v15 }
 0x995   : > { %6802 = vst.sshfl [vmem:[%s434_s30] sm:$0x33 pattern:$0x76325410] %v6711_v39 }
 0x996   : > { %8000 = shalt.err (!%p7997_p3)
}
 0x997   : > { %s8001_s22 = scalar_lea.hbm %s10735_s21, 64  ;;  %s8005_s15 = scalar_lea.hbm %s10790_s13, 128 }
 0x998   : > { %p8002_p4 = scmp.ne.s32.totalorder %s10735_s21, %s8001_s22  ;;  %p8006_p9 = scmp.lt.u32.totalorder %s10735_s21, %s10790_s13 }
 0x999   : > { %p8007_p10 = scmp.lt.u32.totalorder %s8005_s15, %s8001_s22  ;;  %p8009_p12 = scmp.lt.u32.totalorder %s8001_s22, %s10735_s21 }
 0x99a   : > { %p8003_p7 = pnand %p8002_p4, %p8162_p5 }
 0x99b   : > { %p8008_p11 = por %p8007_p10, %p8006_p9 }
 0x99c   : > { %p8004_p8 = pneg %p8003_p7 }
 0x99d   : > { %p8010_p13 = por %p8009_p12, %p8008_p11 }
 0x99f   : > { %p8011_p0 = pnand %p8010_p13, %p8004_p8 }
 0x9a1   : > { %8014 = shalt.err (!%p8011_p0)
}
 0x9a2   : > { %7783 = dma.vmem_to_hbm [thread:$0]  (%p8162_p5), %s10737_s20, 64, %s10735_s21, %s6722_s0  }
 0x9a3 PF: > { %p7789_p1 = scmp.ge.s32.totalorder %s8049_s28, 2  ;;  %s6748_s1 = sand.u32 1, %s8037_s25  }
 0x9a4   : > { %s6749_s2 = scalar_lea.sflag [#allocation3], %s6748_s1 }
 0x9a5   : > { %p7786_p2 = pnand %p7789_p1, %p8166_p6 }
 0x9a7   : > { %8032 = dma.done.wait (!%p7786_p2), %s6749_s2, 64  }
 0x9a8   : > { %8034 = vsyncadd (!%p7786_p2), %s6749_s2, 4294967232  ;;  %p23_p3 = scmp.ge.s32.totalorder %s8149_s14, 4   ;;  %s11116_s25 = smov %s8041_s26 }
 0x9a9   : > { %s11117_s26 = smov %s8045_s27  ;;  %s11118_s27 = smov %s8160_s17 }
 0x9aa   : > { %s11119_s28 = smov %s8149_s14  ;;  %25 = sbr.rel (!%p23_p3) target bundleno = 7 (0x7), region = 107 }
 0x9b1   :  { %6754 = vsyncpa [#allocation3], 1 }
 0x9b2   :  { %6756 = vsyncpa [#allocation3 + $0x1], 1 }

</bundles_post_ra>
